<compile_context>
chip_gen: v5e
topology: v5e:2x2
jax: 0.10.0
libtpu: 0.0.40
codegen_flags: <defaults>
</compile_context>

<pallas_src>
import functools
import numpy as np
import jax
import jax.numpy as jnp
from jax import lax
from jax.experimental import pallas as pl
from jax.experimental.pallas import tpu as pltpu

PAD = 0  # Constants.PAD


# ------------------------------ fused kernel --------------------------------

def _fused_encoder_kernel(bias_ref, pool_ref, npadcol_ref, x_ref,
                          wqkv_ref, bqkv_ref, wfc_ref, bfc_ref,
                          ln1g_ref, ln1b_ref,
                          w1_ref, b1_ref, w2_ref, b2_ref,
                          ln2g_ref, ln2b_ref,
                          wenc_ref, benc_ref,
                          wm1_ref, bm1_ref, wm2_ref, bm2_ref,
                          o_ref, x_scratch,
                          *, B, L, n_head, d_k, d_v):
    f32 = jnp.float32
    bf16 = jnp.bfloat16
    l = pl.program_id(0)

    # Load the (emb + pos-enc) activation into the carried VMEM scratch once.
    @pl.when(l == 0)
    def _():
        x_scratch[...] = x_ref[...]

    def layer_norm(y, g, b):
        # torch.nn.LayerNorm: eps=1e-5, biased variance — stats kept in f32.
        mean = jnp.mean(y, axis=-1, keepdims=True)
        var = jnp.mean(jnp.square(y - mean), axis=-1, keepdims=True)
        return (y - mean) * lax.rsqrt(var + 1e-5) * g + b

    hk = n_head * d_k
    hv = n_head * d_v

    x = x_scratch[...]                 # [B*L, D] f32 (carried across layers)
    npad_col = npadcol_ref[...]        # [B*L, 1]  non-pad mask (1.0 = keep)
    bias = bias_ref[...]               # [B*L, B*L] additive mask:
                                       #   0 within same batch & key-not-pad,
                                       #   -1e9 otherwise (block-diag + keypad)

    # ---------------- multi-head self attention ----------------
    residual = x
    # merged QKV projection (softmax temperature folded into the Q columns)
    qkv = jnp.dot(x.astype(bf16), wqkv_ref[0],
                  preferred_element_type=f32) + bqkv_ref[0]       # [B*L, 2hk+hv]
    qb = qkv[:, 0:hk].astype(bf16)
    kb = qkv[:, hk:2 * hk].astype(bf16)
    vb = qkv[:, 2 * hk:2 * hk + hv].astype(bf16)
    wfc = wfc_ref[0]                                               # [hv, D] bf16

    acc = jnp.zeros(x.shape, f32)
    for h in range(n_head):            # static loop (n_head=2)
        qh = qb[:, h * d_k:(h + 1) * d_k]                          # [B*L, d_k]
        kh = kb[:, h * d_k:(h + 1) * d_k]                          # [B*L, d_k]
        vh = vb[:, h * d_v:(h + 1) * d_v]                          # [B*L, d_v]
        # whole-batch scores + hoisted additive mask (no per-b compare/select)
        scores = lax.dot_general(qh, kh, (((1,), (1,)), ((), ())),
                                 preferred_element_type=f32) + bias
        mx = jnp.max(scores, axis=-1, keepdims=True)
        e = jnp.exp(scores - mx)
        denom = jnp.sum(e, axis=-1, keepdims=True)
        attn = (e * pl.reciprocal(denom, approx=True)).astype(bf16)
        head_out = jnp.dot(attn, vh, preferred_element_type=f32).astype(bf16)
        # head concat eliminated: sum per-head partial projections through wfc
        acc = acc + jnp.dot(head_out, wfc[h * d_v:(h + 1) * d_v, :],
                            preferred_element_type=f32)
    o = acc + bfc_ref[0]
    x = layer_norm(o + residual, ln1g_ref[0], ln1b_ref[0]) * npad_col

    # ---------------- position-wise feed-forward ----------------
    residual = x
    h1 = jnp.dot(x.astype(bf16), w1_ref[0], preferred_element_type=f32) + b1_ref[0]
    h1 = jnp.maximum(h1, 0.0)
    h2 = jnp.dot(h1.astype(bf16), w2_ref[0], preferred_element_type=f32) + b2_ref[0]
    x = layer_norm(h2 + residual, ln2g_ref[0], ln2b_ref[0]) * npad_col
    x_scratch[...] = x

    # -------- tail: sum-pool folded before Encoder.linear + MLP head --------
    @pl.when(l == pl.num_programs(0) - 1)
    def _():
        # pooled_x[b] = sum_j x[b, j, :]  via one matmul with a 0/1 pool matrix
        pooled = jnp.dot(pool_ref[...], x, preferred_element_type=f32)   # [B, D]
        # sum_j (x_j @ W + b) == (sum_j x_j) @ W + L * b   (exact)
        enc_pooled = (jnp.dot(pooled.astype(bf16), wenc_ref[...],
                              preferred_element_type=f32)
                      + float(L) * benc_ref[...])                        # [B, 512]
        hm = jnp.dot(enc_pooled, wm1_ref[...], preferred_element_type=f32) + bm1_ref[...]
        hm = jnp.maximum(hm, 0.0)
        o_ref[...] = jnp.dot(hm, wm2_ref[...], preferred_element_type=f32) + bm2_ref[...]


# ----------------------------- model glue (JAX) -----------------------------

def get_sinusoid_encoding_table(n_position, d_hid, padding_idx=None):
    pos = np.arange(n_position)[:, None].astype(np.float64)
    hid = np.arange(d_hid)[None, :]
    angle = pos / np.power(10000, 2 * (hid // 2) / d_hid)
    table = angle.copy()
    table[:, 0::2] = np.sin(angle[:, 0::2])
    table[:, 1::2] = np.cos(angle[:, 1::2])
    if padding_idx is not None:
        table[padding_idx] = 0.0
    return jnp.asarray(table, dtype=jnp.float32)


def init_params(key, *, n_vocab, len_max_seq, d_model, d_inner, n_layers,
                n_head, d_k, d_v):
    n_position = len_max_seq + 1
    ks = iter(jax.random.split(key, 4 + 6 * n_layers))

    def dense(k, shape, scale=0.02):
        return (scale * jax.random.normal(k, shape)).astype(jnp.float32)

    emb = dense(next(ks), (n_vocab, d_model)).at[PAD].set(0.0)   # padding_idx=PAD

    temp = 1.0 / float(np.sqrt(d_k))   # fold softmax temperature into W_q

    wqkv, bqkv, wfc, bfc = [], [], [], []
    ln1g, ln1b, w1, b1, w2, b2, ln2g, ln2b = [], [], [], [], [], [], [], []
    for _ in range(n_layers):
        w_q = dense(next(ks), (d_model, n_head * d_k))
        w_k = dense(next(ks), (d_model, n_head * d_k))
        w_v = dense(next(ks), (d_model, n_head * d_v))
        wqkv.append(jnp.concatenate([w_q * temp, w_k, w_v], axis=1))
        bqkv.append(jnp.zeros((1, 2 * n_head * d_k + n_head * d_v), jnp.float32))
        wfc.append(dense(next(ks), (n_head * d_v, d_model)))
        bfc.append(jnp.zeros((1, d_model), jnp.float32))
        ln1g.append(jnp.ones((1, d_model), jnp.float32))
        ln1b.append(jnp.zeros((1, d_model), jnp.float32))
        w1.append(dense(next(ks), (d_model, d_inner)))
        b1.append(jnp.zeros((1, d_inner), jnp.float32))
        w2.append(dense(next(ks), (d_inner, d_model)))
        b2.append(jnp.zeros((1, d_model), jnp.float32))
        ln2g.append(jnp.ones((1, d_model), jnp.float32))
        ln2b.append(jnp.zeros((1, d_model), jnp.float32))

    return dict(
        emb=emb,
        pos_table=get_sinusoid_encoding_table(n_position, d_model, padding_idx=0),
        wqkv=jnp.stack(wqkv), bqkv=jnp.stack(bqkv),
        wfc=jnp.stack(wfc), bfc=jnp.stack(bfc),
        ln1g=jnp.stack(ln1g), ln1b=jnp.stack(ln1b),
        w1=jnp.stack(w1), b1=jnp.stack(b1),
        w2=jnp.stack(w2), b2=jnp.stack(b2),
        ln2g=jnp.stack(ln2g), ln2b=jnp.stack(ln2b),
        w_enc_lin=dense(next(ks), (d_model, 512)),     # Encoder.linear = Linear(d_model, 512)
        b_enc_lin=jnp.zeros((1, 512), jnp.float32),
        w_m1=dense(next(ks), (512, 16)),               # mlp: Linear(d_model,16)->ReLU->Linear(16,2)
        b_m1=jnp.zeros((1, 16), jnp.float32),
        w_m2=dense(next(ks), (16, 2)),
        b_m2=jnp.zeros((1, 2), jnp.float32),
    )


def transformer_forward(params, src_seq, src_pos, tgt_seq, tgt_pos,
                        *, n_head, d_k, d_v, n_layers):
    # tgt_seq/tgt_pos are sliced [:, :-1] in PyTorch then unused (dead code path).
    del tgt_seq, tgt_pos
    B, L = src_seq.shape
    D = params["emb"].shape[1]
    d_inner = params["w1"].shape[2]
    hk = n_head * d_k
    hv = n_head * d_v
    qkv_cols = 2 * hk + hv
    BL = B * L

    # embeddings + positional encodings (gathers are glue; done in XLA)
    x = (params["emb"][src_seq] + params["pos_table"][src_pos]).reshape(BL, D)
    npad = (src_seq != PAD)                                 # [B, L] bool (key not pad)
    npad_col = npad.astype(jnp.float32).reshape(BL, 1)      # [B*L, 1] for *non_pad_mask

    # Hoisted additive attention bias: 0 inside same batch & key-not-pad, else -1e9.
    batch_ids = jnp.arange(BL, dtype=jnp.int32) // L
    same_batch = batch_ids[:, None] == batch_ids[None, :]
    key_keep = npad.reshape(BL)
    attn_bias = jnp.where(same_batch & key_keep[None, :], 0.0, -1e9).astype(jnp.float32)

    # 0/1 pooling matrix: pooled = pool @ x  sums the L rows of each batch.
    pool = (batch_ids[None, :] == jnp.arange(B, dtype=jnp.int32)[:, None]).astype(jnp.float32)

    # bf16 matmul weights at the boundary (halves weight DMA; f32 accumulation kept).
    bf16 = jnp.bfloat16
    wqkv_bf = params["wqkv"].astype(bf16)
    wfc_bf = params["wfc"].astype(bf16)
    w1_bf = params["w1"].astype(bf16)
    w2_bf = params["w2"].astype(bf16)
    wenc_bf = params["w_enc_lin"].astype(bf16)

    kern = functools.partial(_fused_encoder_kernel, B=B, L=L,
                             n_head=n_head, d_k=d_k, d_v=d_v)

    def per_layer(tail):
        return pl.BlockSpec((1,) + tail, lambda l: (l, 0, 0))

    def resident(shape):
        return pl.BlockSpec(shape, lambda l: (0, 0))

    in_specs = [
        resident((BL, BL)),              # attn_bias
        resident((B, BL)),               # pool
        resident((BL, 1)),               # npad_col
        resident((BL, D)),               # x
        per_layer((D, qkv_cols)),        # wqkv   (bf16)
        per_layer((1, qkv_cols)),        # bqkv
        per_layer((hv, D)),              # wfc    (bf16)
        per_layer((1, D)),               # bfc
        per_layer((1, D)),               # ln1g
        per_layer((1, D)),               # ln1b
        per_layer((D, d_inner)),         # w1     (bf16)
        per_layer((1, d_inner)),         # b1
        per_layer((d_inner, D)),         # w2     (bf16)
        per_layer((1, D)),               # b2
        per_layer((1, D)),               # ln2g
        per_layer((1, D)),               # ln2b
        resident((D, 512)),              # w_enc  (bf16)
        resident((1, 512)),              # b_enc
        resident((512, 16)),             # w_m1
        resident((1, 16)),               # b_m1
        resident((16, 2)),               # w_m2
        resident((1, 2)),                # b_m2
    ]

    out = pl.pallas_call(
        kern,
        out_shape=jax.ShapeDtypeStruct((B, 2), jnp.float32),
        grid_spec=pltpu.PrefetchScalarGridSpec(
            num_scalar_prefetch=0,
            grid=(n_layers,),
            in_specs=in_specs,
            out_specs=pl.BlockSpec((B, 2), lambda l: (0, 0)),
            scratch_shapes=[pltpu.VMEM((BL, D), jnp.float32)],
        ),
        compiler_params=pltpu.CompilerParams(
            dimension_semantics=("arbitrary",),
            # ~2x ~1 MiB double-buffered per-layer weights + ~0.6 MiB tail +
            # tiny activations; 16 MiB leaves headroom and fits v7x (64 MiB).
            vmem_limit_bytes=16 * 1024 * 1024),
    )(attn_bias, pool, npad_col, x,
      wqkv_bf, params["bqkv"], wfc_bf, params["bfc"],
      params["ln1g"], params["ln1b"],
      w1_bf, params["b1"], w2_bf, params["b2"],
      params["ln2g"], params["ln2b"],
      wenc_bf, params["b_enc_lin"],
      params["w_m1"], params["b_m1"], params["w_m2"], params["b_m2"])
    return out                                         # [B, 2]


# ----------------------------------- main -----------------------------------

if __name__ == "__main__":
    B = 2
    LEN_MAX_SEQ = 8
    L = LEN_MAX_SEQ
    N_VOCAB = 32
    D_MODEL = 512       # required: Encoder.linear outputs 512 and mlp expects d_model inputs
    D_INNER = 256
    N_LAYERS = 2
    N_HEAD = 2
    D_K = D_V = 64

    key = jax.random.PRNGKey(0)
    k_param, k_src, k_tgt = jax.random.split(key, 3)

    params = init_params(k_param, n_vocab=N_VOCAB, len_max_seq=LEN_MAX_SEQ,
                         d_model=D_MODEL, d_inner=D_INNER, n_layers=N_LAYERS,
                         n_head=N_HEAD, d_k=D_K, d_v=D_V)

    # token ids in [1, N_VOCAB) -> no PAD tokens; positions 1..L (0 is the pad position)
    src_seq = jax.random.randint(k_src, (B, L), 1, N_VOCAB, dtype=jnp.int32)
    src_pos = jnp.broadcast_to(jnp.arange(1, L + 1, dtype=jnp.int32)[None, :], (B, L))
    tgt_seq = jax.random.randint(k_tgt, (B, L), 1, N_VOCAB, dtype=jnp.int32)  # unused (dead code)
    tgt_pos = src_pos

    fwd = jax.jit(functools.partial(transformer_forward,
                                    n_head=N_HEAD, d_k=D_K, d_v=D_V, n_layers=N_LAYERS))
    out = fwd(params, src_seq, src_pos, tgt_seq, tgt_pos)
    out = jax.block_until_ready(out)
    assert out.shape == (B, 2) and out.dtype == jnp.float32
    assert bool(jnp.all(jnp.isfinite(out)))
    print("KERNEL_OK")
</pallas_src>

<mosaic_0001>
module attributes {stable_mosaic.version = 11 : i64} {
  func.func @_fused_encoder_kernel(%arg0: i32, %arg1: memref<16x16xf32, #tpu.memory_space<vmem>>, %arg2: memref<2x16xf32, #tpu.memory_space<vmem>>, %arg3: memref<16x1xf32, #tpu.memory_space<vmem>>, %arg4: memref<16x512xf32, #tpu.memory_space<vmem>>, %arg5: memref<1x512x384xbf16, #tpu.memory_space<vmem>>, %arg6: memref<1x1x384xf32, #tpu.memory_space<vmem>>, %arg7: memref<1x128x512xbf16, #tpu.memory_space<vmem>>, %arg8: memref<1x1x512xf32, #tpu.memory_space<vmem>>, %arg9: memref<1x1x512xf32, #tpu.memory_space<vmem>>, %arg10: memref<1x1x512xf32, #tpu.memory_space<vmem>>, %arg11: memref<1x512x256xbf16, #tpu.memory_space<vmem>>, %arg12: memref<1x1x256xf32, #tpu.memory_space<vmem>>, %arg13: memref<1x256x512xbf16, #tpu.memory_space<vmem>>, %arg14: memref<1x1x512xf32, #tpu.memory_space<vmem>>, %arg15: memref<1x1x512xf32, #tpu.memory_space<vmem>>, %arg16: memref<1x1x512xf32, #tpu.memory_space<vmem>>, %arg17: memref<512x512xbf16, #tpu.memory_space<vmem>>, %arg18: memref<1x512xf32, #tpu.memory_space<vmem>>, %arg19: memref<512x16xf32, #tpu.memory_space<vmem>>, %arg20: memref<1x16xf32, #tpu.memory_space<vmem>>, %arg21: memref<16x2xf32, #tpu.memory_space<vmem>>, %arg22: memref<1x2xf32, #tpu.memory_space<vmem>>, %arg23: memref<2x2xf32, #tpu.memory_space<vmem>>, %arg24: memref<16x512xf32, #tpu.memory_space<vmem>>) attributes {dimension_semantics = [#tpu.dimension_semantics<arbitrary>], iteration_bounds = array<i64: 2>, scalar_prefetch = 0 : i64, scratch_operands = 1 : i64, tpu.core_type = #tpu.core_type<tc>, window_params = [{pipeline_mode = #tpu.pipeline_mode<synchronous>, transform_indices = @transform_0, window_bounds = array<i64: 16, 16>}, {pipeline_mode = #tpu.pipeline_mode<synchronous>, transform_indices = @transform_1, window_bounds = array<i64: 2, 16>}, {pipeline_mode = #tpu.pipeline_mode<synchronous>, transform_indices = @transform_2, window_bounds = array<i64: 16, 1>}, {pipeline_mode = #tpu.pipeline_mode<synchronous>, transform_indices = @transform_3, window_bounds = array<i64: 16, 512>}, {transform_indices = @transform_4, window_bounds = array<i64: 1, 512, 384>}, {transform_indices = @transform_5, window_bounds = array<i64: 1, 1, 384>}, {transform_indices = @transform_6, window_bounds = array<i64: 1, 128, 512>}, {transform_indices = @transform_7, window_bounds = array<i64: 1, 1, 512>}, {transform_indices = @transform_8, window_bounds = array<i64: 1, 1, 512>}, {transform_indices = @transform_9, window_bounds = array<i64: 1, 1, 512>}, {transform_indices = @transform_10, window_bounds = array<i64: 1, 512, 256>}, {transform_indices = @transform_11, window_bounds = array<i64: 1, 1, 256>}, {transform_indices = @transform_12, window_bounds = array<i64: 1, 256, 512>}, {transform_indices = @transform_13, window_bounds = array<i64: 1, 1, 512>}, {transform_indices = @transform_14, window_bounds = array<i64: 1, 1, 512>}, {transform_indices = @transform_15, window_bounds = array<i64: 1, 1, 512>}, {pipeline_mode = #tpu.pipeline_mode<synchronous>, transform_indices = @transform_16, window_bounds = array<i64: 512, 512>}, {pipeline_mode = #tpu.pipeline_mode<synchronous>, transform_indices = @transform_17, window_bounds = array<i64: 1, 512>}, {pipeline_mode = #tpu.pipeline_mode<synchronous>, transform_indices = @transform_18, window_bounds = array<i64: 512, 16>}, {pipeline_mode = #tpu.pipeline_mode<synchronous>, transform_indices = @transform_19, window_bounds = array<i64: 1, 16>}, {pipeline_mode = #tpu.pipeline_mode<synchronous>, transform_indices = @transform_20, window_bounds = array<i64: 16, 2>}, {pipeline_mode = #tpu.pipeline_mode<synchronous>, transform_indices = @transform_21, window_bounds = array<i64: 1, 2>}, {pipeline_mode = #tpu.pipeline_mode<synchronous>, transform_indices = @transform_22, window_bounds = array<i64: 2, 2>}]} {
    %c0_i32 = arith.constant 0 : i32
    %0 = arith.cmpi eq, %arg0, %c0_i32 : i32
    %1 = arith.extui %0 : i1 to i32
    %c0_i32_0 = arith.constant 0 : i32
    %2 = arith.cmpi ne, %1, %c0_i32_0 : i32
    scf.if %2 {
      %c0_69 = arith.constant 0 : index
      %c0_70 = arith.constant 0 : index
      %149 = vector.load %arg4[%c0_69, %c0_70] : memref<16x512xf32, #tpu.memory_space<vmem>>, vector<16x512xf32>
      %c0_71 = arith.constant 0 : index
      %c0_72 = arith.constant 0 : index
      %150 = vector.load %arg24[%c0_71, %c0_72] : memref<16x512xf32, #tpu.memory_space<vmem>>, vector<16x512xf32>
      tpu.vector_store %arg24[%c0_71, %c0_72], %149 {strides = array<i32>} : memref<16x512xf32, #tpu.memory_space<vmem>>, vector<16x512xf32>,
    } else {
    }
    %c0 = arith.constant 0 : index
    %c0_1 = arith.constant 0 : index
    %3 = vector.load %arg24[%c0, %c0_1] : memref<16x512xf32, #tpu.memory_space<vmem>>, vector<16x512xf32>
    %c0_2 = arith.constant 0 : index
    %c0_3 = arith.constant 0 : index
    %4 = vector.load %arg3[%c0_2, %c0_3] : memref<16x1xf32, #tpu.memory_space<vmem>>, vector<16x1xf32>
    %c0_4 = arith.constant 0 : index
    %c0_5 = arith.constant 0 : index
    %5 = vector.load %arg1[%c0_4, %c0_5] : memref<16x16xf32, #tpu.memory_space<vmem>>, vector<16x16xf32>
    %6 = arith.truncf %3 : vector<16x512xf32> to vector<16x512xbf16>
    %c0_6 = arith.constant 0 : index
    %c0_7 = arith.constant 0 : index
    %c0_8 = arith.constant 0 : index
    %7 = vector.load %arg5[%c0_6, %c0_7, %c0_8] : memref<1x512x384xbf16, #tpu.memory_space<vmem>>, vector<1x512x384xbf16>
    %8 = vector.shape_cast %7 : vector<1x512x384xbf16> to vector<512x384xbf16>
    %cst = arith.constant dense<0.000000e+00> : vector<16x384xf32>
    %9 = tpu.matmul %6, %8, %cst {dimension_numbers = #tpu.dot_dimension_numbers<[1], [0], [0], [1], [0, 0, 1, 1], [], []>} : vector<16x512xbf16>, vector<512x384xbf16>, vector<16x384xf32> -> vector<16x384xf32>
    %c0_9 = arith.constant 0 : index
    %c0_10 = arith.constant 0 : index
    %c0_11 = arith.constant 0 : index
    %10 = vector.load %arg6[%c0_9, %c0_10, %c0_11] : memref<1x1x384xf32, #tpu.memory_space<vmem>>, vector<1x1x384xf32>
    %11 = vector.shape_cast %10 : vector<1x1x384xf32> to vector<1x384xf32>
    %12 = vector.broadcast %11 : vector<1x384xf32> to vector<16x384xf32>
    %13 = arith.addf %9, %12 : vector<16x384xf32>
    %14 = vector.extract_strided_slice %13 {offsets = [0, 0], sizes = [16, 128], strides = [1, 1]} : vector<16x384xf32> to vector<16x128xf32>
    %15 = arith.truncf %14 : vector<16x128xf32> to vector<16x128xbf16>
    %16 = vector.extract_strided_slice %13 {offsets = [0, 128], sizes = [16, 128], strides = [1, 1]} : vector<16x384xf32> to vector<16x128xf32>
    %17 = arith.truncf %16 : vector<16x128xf32> to vector<16x128xbf16>
    %18 = vector.extract_strided_slice %13 {offsets = [0, 256], sizes = [16, 128], strides = [1, 1]} : vector<16x384xf32> to vector<16x128xf32>
    %19 = arith.truncf %18 : vector<16x128xf32> to vector<16x128xbf16>
    %c0_12 = arith.constant 0 : index
    %c0_13 = arith.constant 0 : index
    %c0_14 = arith.constant 0 : index
    %20 = vector.load %arg7[%c0_12, %c0_13, %c0_14] : memref<1x128x512xbf16, #tpu.memory_space<vmem>>, vector<1x128x512xbf16>
    %21 = vector.shape_cast %20 : vector<1x128x512xbf16> to vector<128x512xbf16>
    %cst_15 = arith.constant 0.000000e+00 : f32
    %22 = vector.broadcast %cst_15 : f32 to vector<16x512xf32>
    %23 = vector.extract_strided_slice %15 {offsets = [0, 0], sizes = [16, 64], strides = [1, 1]} : vector<16x128xbf16> to vector<16x64xbf16>
    %24 = vector.extract_strided_slice %17 {offsets = [0, 0], sizes = [16, 64], strides = [1, 1]} : vector<16x128xbf16> to vector<16x64xbf16>
    %25 = vector.extract_strided_slice %19 {offsets = [0, 0], sizes = [16, 64], strides = [1, 1]} : vector<16x128xbf16> to vector<16x64xbf16>
    %cst_16 = arith.constant dense<0.000000e+00> : vector<16x16xf32>
    %26 = tpu.matmul %23, %24, %cst_16 {dimension_numbers = #tpu.dot_dimension_numbers<[1], [1], [0], [0], [0, 0, 1, 0], [], []>} : vector<16x64xbf16>, vector<16x64xbf16>, vector<16x16xf32> -> vector<16x16xf32>
    %27 = arith.addf %26, %5 : vector<16x16xf32>
    %cst_17 = arith.constant dense<0xFF800000> : vector<16xf32>
    %28 = vector.multi_reduction <maximumf>, %27, %cst_17 [1] : vector<16x16xf32> to vector<16xf32>
    %29 = vector.shape_cast %28 : vector<16xf32> to vector<16x1xf32>
    %30 = vector.broadcast %29 : vector<16x1xf32> to vector<16x16xf32>
    %31 = arith.subf %27, %30 : vector<16x16xf32>
    %32 = math.exp %31 : vector<16x16xf32>
    %cst_18 = arith.constant dense<0.000000e+00> : vector<16xf32>
    %33 = vector.multi_reduction <add>, %32, %cst_18 [1] : vector<16x16xf32> to vector<16xf32>
    %34 = vector.shape_cast %33 : vector<16xf32> to vector<16x1xf32>
    %35 = tpu.reciprocal %34 {approx = true} : vector<16x1xf32> -> vector<16x1xf32>
    %36 = vector.broadcast %35 : vector<16x1xf32> to vector<16x16xf32>
    %37 = arith.mulf %32, %36 : vector<16x16xf32>
    %38 = arith.truncf %37 : vector<16x16xf32> to vector<16x16xbf16>
    %cst_19 = arith.constant dense<0.000000e+00> : vector<16x64xf32>
    %39 = tpu.matmul %38, %25, %cst_19 {dimension_numbers = #tpu.dot_dimension_numbers<[1], [0], [0], [1], [0, 0, 1, 1], [], []>} : vector<16x16xbf16>, vector<16x64xbf16>, vector<16x64xf32> -> vector<16x64xf32>
    %40 = arith.truncf %39 : vector<16x64xf32> to vector<16x64xbf16>
    %41 = vector.extract_strided_slice %21 {offsets = [0, 0], sizes = [64, 512], strides = [1, 1]} : vector<128x512xbf16> to vector<64x512xbf16>
    %cst_20 = arith.constant dense<0.000000e+00> : vector<16x512xf32>
    %42 = tpu.matmul %40, %41, %cst_20 {dimension_numbers = #tpu.dot_dimension_numbers<[1], [0], [0], [1], [0, 0, 1, 1], [], []>} : vector<16x64xbf16>, vector<64x512xbf16>, vector<16x512xf32> -> vector<16x512xf32>
    %43 = arith.addf %22, %42 : vector<16x512xf32>
    %44 = vector.extract_strided_slice %15 {offsets = [0, 64], sizes = [16, 64], strides = [1, 1]} : vector<16x128xbf16> to vector<16x64xbf16>
    %45 = vector.extract_strided_slice %17 {offsets = [0, 64], sizes = [16, 64], strides = [1, 1]} : vector<16x128xbf16> to vector<16x64xbf16>
    %46 = vector.extract_strided_slice %19 {offsets = [0, 64], sizes = [16, 64], strides = [1, 1]} : vector<16x128xbf16> to vector<16x64xbf16>
    %cst_21 = arith.constant dense<0.000000e+00> : vector<16x16xf32>
    %47 = tpu.matmul %44, %45, %cst_21 {dimension_numbers = #tpu.dot_dimension_numbers<[1], [1], [0], [0], [0, 0, 1, 0], [], []>} : vector<16x64xbf16>, vector<16x64xbf16>, vector<16x16xf32> -> vector<16x16xf32>
    %48 = arith.addf %47, %5 : vector<16x16xf32>
    %cst_22 = arith.constant dense<0xFF800000> : vector<16xf32>
    %49 = vector.multi_reduction <maximumf>, %48, %cst_22 [1] : vector<16x16xf32> to vector<16xf32>
    %50 = vector.shape_cast %49 : vector<16xf32> to vector<16x1xf32>
    %51 = vector.broadcast %50 : vector<16x1xf32> to vector<16x16xf32>
    %52 = arith.subf %48, %51 : vector<16x16xf32>
    %53 = math.exp %52 : vector<16x16xf32>
    %cst_23 = arith.constant dense<0.000000e+00> : vector<16xf32>
    %54 = vector.multi_reduction <add>, %53, %cst_23 [1] : vector<16x16xf32> to vector<16xf32>
    %55 = vector.shape_cast %54 : vector<16xf32> to vector<16x1xf32>
    %56 = tpu.reciprocal %55 {approx = true} : vector<16x1xf32> -> vector<16x1xf32>
    %57 = vector.broadcast %56 : vector<16x1xf32> to vector<16x16xf32>
    %58 = arith.mulf %53, %57 : vector<16x16xf32>
    %59 = arith.truncf %58 : vector<16x16xf32> to vector<16x16xbf16>
    %cst_24 = arith.constant dense<0.000000e+00> : vector<16x64xf32>
    %60 = tpu.matmul %59, %46, %cst_24 {dimension_numbers = #tpu.dot_dimension_numbers<[1], [0], [0], [1], [0, 0, 1, 1], [], []>} : vector<16x16xbf16>, vector<16x64xbf16>, vector<16x64xf32> -> vector<16x64xf32>
    %61 = arith.truncf %60 : vector<16x64xf32> to vector<16x64xbf16>
    %62 = vector.extract_strided_slice %21 {offsets = [64, 0], sizes = [64, 512], strides = [1, 1]} : vector<128x512xbf16> to vector<64x512xbf16>
    %cst_25 = arith.constant dense<0.000000e+00> : vector<16x512xf32>
    %63 = tpu.matmul %61, %62, %cst_25 {dimension_numbers = #tpu.dot_dimension_numbers<[1], [0], [0], [1], [0, 0, 1, 1], [], []>} : vector<16x64xbf16>, vector<64x512xbf16>, vector<16x512xf32> -> vector<16x512xf32>
    %64 = arith.addf %43, %63 : vector<16x512xf32>
    %c0_26 = arith.constant 0 : index
    %c0_27 = arith.constant 0 : index
    %c0_28 = arith.constant 0 : index
    %65 = vector.load %arg8[%c0_26, %c0_27, %c0_28] : memref<1x1x512xf32, #tpu.memory_space<vmem>>, vector<1x1x512xf32>
    %66 = vector.shape_cast %65 : vector<1x1x512xf32> to vector<1x512xf32>
    %67 = vector.broadcast %66 : vector<1x512xf32> to vector<16x512xf32>
    %68 = arith.addf %64, %67 : vector<16x512xf32>
    %69 = arith.addf %68, %3 : vector<16x512xf32>
    %c0_29 = arith.constant 0 : index
    %c0_30 = arith.constant 0 : index
    %c0_31 = arith.constant 0 : index
    %70 = vector.load %arg9[%c0_29, %c0_30, %c0_31] : memref<1x1x512xf32, #tpu.memory_space<vmem>>, vector<1x1x512xf32>
    %71 = vector.shape_cast %70 : vector<1x1x512xf32> to vector<1x512xf32>
    %c0_32 = arith.constant 0 : index
    %c0_33 = arith.constant 0 : index
    %c0_34 = arith.constant 0 : index
    %72 = vector.load %arg10[%c0_32, %c0_33, %c0_34] : memref<1x1x512xf32, #tpu.memory_space<vmem>>, vector<1x1x512xf32>
    %73 = vector.shape_cast %72 : vector<1x1x512xf32> to vector<1x512xf32>
    %cst_35 = arith.constant dense<0.000000e+00> : vector<16xf32>
    %74 = vector.multi_reduction <add>, %69, %cst_35 [1] : vector<16x512xf32> to vector<16xf32>
    %75 = vector.shape_cast %74 : vector<16xf32> to vector<16x1xf32>
    %cst_36 = arith.constant 5.120000e+02 : f32
    %76 = vector.broadcast %cst_36 : f32 to vector<16x1xf32>
    %77 = arith.divf %75, %76 : vector<16x1xf32>
    %78 = vector.broadcast %77 : vector<16x1xf32> to vector<16x512xf32>
    %79 = arith.subf %69, %78 : vector<16x512xf32>
    %80 = arith.mulf %79, %79 : vector<16x512xf32>
    %cst_37 = arith.constant dense<0.000000e+00> : vector<16xf32>
    %81 = vector.multi_reduction <add>, %80, %cst_37 [1] : vector<16x512xf32> to vector<16xf32>
    %82 = vector.shape_cast %81 : vector<16xf32> to vector<16x1xf32>
    %cst_38 = arith.constant 5.120000e+02 : f32
    %83 = vector.broadcast %cst_38 : f32 to vector<16x1xf32>
    %84 = arith.divf %82, %83 : vector<16x1xf32>
    %85 = vector.broadcast %77 : vector<16x1xf32> to vector<16x512xf32>
    %86 = arith.subf %69, %85 : vector<16x512xf32>
    %cst_39 = arith.constant 9.99999974E-6 : f32
    %87 = vector.broadcast %cst_39 : f32 to vector<16x1xf32>
    %88 = arith.addf %84, %87 : vector<16x1xf32>
    %89 = math.rsqrt %88 : vector<16x1xf32>
    %90 = vector.broadcast %89 : vector<16x1xf32> to vector<16x512xf32>
    %91 = arith.mulf %86, %90 : vector<16x512xf32>
    %92 = vector.broadcast %71 : vector<1x512xf32> to vector<16x512xf32>
    %93 = arith.mulf %91, %92 : vector<16x512xf32>
    %94 = vector.broadcast %73 : vector<1x512xf32> to vector<16x512xf32>
    %95 = arith.addf %93, %94 : vector<16x512xf32>
    %96 = vector.broadcast %4 : vector<16x1xf32> to vector<16x512xf32>
    %97 = arith.mulf %95, %96 : vector<16x512xf32>
    %98 = arith.truncf %97 : vector<16x512xf32> to vector<16x512xbf16>
    %c0_40 = arith.constant 0 : index
    %c0_41 = arith.constant 0 : index
    %c0_42 = arith.constant 0 : index
    %99 = vector.load %arg11[%c0_40, %c0_41, %c0_42] : memref<1x512x256xbf16, #tpu.memory_space<vmem>>, vector<1x512x256xbf16>
    %100 = vector.shape_cast %99 : vector<1x512x256xbf16> to vector<512x256xbf16>
    %cst_43 = arith.constant dense<0.000000e+00> : vector<16x256xf32>
    %101 = tpu.matmul %98, %100, %cst_43 {dimension_numbers = #tpu.dot_dimension_numbers<[1], [0], [0], [1], [0, 0, 1, 1], [], []>} : vector<16x512xbf16>, vector<512x256xbf16>, vector<16x256xf32> -> vector<16x256xf32>
    %c0_44 = arith.constant 0 : index
    %c0_45 = arith.constant 0 : index
    %c0_46 = arith.constant 0 : index
    %102 = vector.load %arg12[%c0_44, %c0_45, %c0_46] : memref<1x1x256xf32, #tpu.memory_space<vmem>>, vector<1x1x256xf32>
    %103 = vector.shape_cast %102 : vector<1x1x256xf32> to vector<1x256xf32>
    %104 = vector.broadcast %103 : vector<1x256xf32> to vector<16x256xf32>
    %105 = arith.addf %101, %104 : vector<16x256xf32>
    %cst_47 = arith.constant 0.000000e+00 : f32
    %106 = vector.broadcast %cst_47 : f32 to vector<16x256xf32>
    %107 = arith.maximumf %105, %106 : vector<16x256xf32>
    %108 = arith.truncf %107 : vector<16x256xf32> to vector<16x256xbf16>
    %c0_48 = arith.constant 0 : index
    %c0_49 = arith.constant 0 : index
    %c0_50 = arith.constant 0 : index
    %109 = vector.load %arg13[%c0_48, %c0_49, %c0_50] : memref<1x256x512xbf16, #tpu.memory_space<vmem>>, vector<1x256x512xbf16>
    %110 = vector.shape_cast %109 : vector<1x256x512xbf16> to vector<256x512xbf16>
    %cst_51 = arith.constant dense<0.000000e+00> : vector<16x512xf32>
    %111 = tpu.matmul %108, %110, %cst_51 {dimension_numbers = #tpu.dot_dimension_numbers<[1], [0], [0], [1], [0, 0, 1, 1], [], []>} : vector<16x256xbf16>, vector<256x512xbf16>, vector<16x512xf32> -> vector<16x512xf32>
    %c0_52 = arith.constant 0 : index
    %c0_53 = arith.constant 0 : index
    %c0_54 = arith.constant 0 : index
    %112 = vector.load %arg14[%c0_52, %c0_53, %c0_54] : memref<1x1x512xf32, #tpu.memory_space<vmem>>, vector<1x1x512xf32>
    %113 = vector.shape_cast %112 : vector<1x1x512xf32> to vector<1x512xf32>
    %114 = vector.broadcast %113 : vector<1x512xf32> to vector<16x512xf32>
    %115 = arith.addf %111, %114 : vector<16x512xf32>
    %116 = arith.addf %115, %97 : vector<16x512xf32>
    %c0_55 = arith.constant 0 : index
    %c0_56 = arith.constant 0 : index
    %c0_57 = arith.constant 0 : index
    %117 = vector.load %arg15[%c0_55, %c0_56, %c0_57] : memref<1x1x512xf32, #tpu.memory_space<vmem>>, vector<1x1x512xf32>
    %118 = vector.shape_cast %117 : vector<1x1x512xf32> to vector<1x512xf32>
    %c0_58 = arith.constant 0 : index
    %c0_59 = arith.constant 0 : index
    %c0_60 = arith.constant 0 : index
    %119 = vector.load %arg16[%c0_58, %c0_59, %c0_60] : memref<1x1x512xf32, #tpu.memory_space<vmem>>, vector<1x1x512xf32>
    %120 = vector.shape_cast %119 : vector<1x1x512xf32> to vector<1x512xf32>
    %cst_61 = arith.constant dense<0.000000e+00> : vector<16xf32>
    %121 = vector.multi_reduction <add>, %116, %cst_61 [1] : vector<16x512xf32> to vector<16xf32>
    %122 = vector.shape_cast %121 : vector<16xf32> to vector<16x1xf32>
    %cst_62 = arith.constant 5.120000e+02 : f32
    %123 = vector.broadcast %cst_62 : f32 to vector<16x1xf32>
    %124 = arith.divf %122, %123 : vector<16x1xf32>
    %125 = vector.broadcast %124 : vector<16x1xf32> to vector<16x512xf32>
    %126 = arith.subf %116, %125 : vector<16x512xf32>
    %127 = arith.mulf %126, %126 : vector<16x512xf32>
    %cst_63 = arith.constant dense<0.000000e+00> : vector<16xf32>
    %128 = vector.multi_reduction <add>, %127, %cst_63 [1] : vector<16x512xf32> to vector<16xf32>
    %129 = vector.shape_cast %128 : vector<16xf32> to vector<16x1xf32>
    %cst_64 = arith.constant 5.120000e+02 : f32
    %130 = vector.broadcast %cst_64 : f32 to vector<16x1xf32>
    %131 = arith.divf %129, %130 : vector<16x1xf32>
    %132 = vector.broadcast %124 : vector<16x1xf32> to vector<16x512xf32>
    %133 = arith.subf %116, %132 : vector<16x512xf32>
    %cst_65 = arith.constant 9.99999974E-6 : f32
    %134 = vector.broadcast %cst_65 : f32 to vector<16x1xf32>
    %135 = arith.addf %131, %134 : vector<16x1xf32>
    %136 = math.rsqrt %135 : vector<16x1xf32>
    %137 = vector.broadcast %136 : vector<16x1xf32> to vector<16x512xf32>
    %138 = arith.mulf %133, %137 : vector<16x512xf32>
    %139 = vector.broadcast %118 : vector<1x512xf32> to vector<16x512xf32>
    %140 = arith.mulf %138, %139 : vector<16x512xf32>
    %141 = vector.broadcast %120 : vector<1x512xf32> to vector<16x512xf32>
    %142 = arith.addf %140, %141 : vector<16x512xf32>
    %143 = vector.broadcast %4 : vector<16x1xf32> to vector<16x512xf32>
    %144 = arith.mulf %142, %143 : vector<16x512xf32>
    %c0_66 = arith.constant 0 : index
    %c0_67 = arith.constant 0 : index
    %145 = vector.load %arg24[%c0_66, %c0_67] : memref<16x512xf32, #tpu.memory_space<vmem>>, vector<16x512xf32>
    tpu.vector_store %arg24[%c0_66, %c0_67], %144 {strides = array<i32>} : memref<16x512xf32, #tpu.memory_space<vmem>>, vector<16x512xf32>,
    %c1_i32 = arith.constant 1 : i32
    %146 = arith.cmpi eq, %arg0, %c1_i32 : i32
    %147 = arith.extui %146 : i1 to i32
    %c0_i32_68 = arith.constant 0 : i32
    %148 = arith.cmpi ne, %147, %c0_i32_68 : i32
    scf.if %148 {
      %c0_69 = arith.constant 0 : index
      %c0_70 = arith.constant 0 : index
      %149 = vector.load %arg2[%c0_69, %c0_70] : memref<2x16xf32, #tpu.memory_space<vmem>>, vector<2x16xf32>
      %cst_71 = arith.constant dense<0.000000e+00> : vector<2x512xf32>
      %150 = tpu.matmul %149, %144, %cst_71 {dimension_numbers = #tpu.dot_dimension_numbers<[1], [0], [0], [1], [0, 0, 1, 1], [], []>} : vector<2x16xf32>, vector<16x512xf32>, vector<2x512xf32> -> vector<2x512xf32>
      %151 = arith.truncf %150 : vector<2x512xf32> to vector<2x512xbf16>
      %c0_72 = arith.constant 0 : index
      %c0_73 = arith.constant 0 : index
      %152 = vector.load %arg17[%c0_72, %c0_73] : memref<512x512xbf16, #tpu.memory_space<vmem>>, vector<512x512xbf16>
      %cst_74 = arith.constant dense<0.000000e+00> : vector<2x512xf32>
      %153 = tpu.matmul %151, %152, %cst_74 {dimension_numbers = #tpu.dot_dimension_numbers<[1], [0], [0], [1], [0, 0, 1, 1], [], []>} : vector<2x512xbf16>, vector<512x512xbf16>, vector<2x512xf32> -> vector<2x512xf32>
      %c0_75 = arith.constant 0 : index
      %c0_76 = arith.constant 0 : index
      %154 = vector.load %arg18[%c0_75, %c0_76] : memref<1x512xf32, #tpu.memory_space<vmem>>, vector<1x512xf32>
      %cst_77 = arith.constant 8.000000e+00 : f32
      %155 = vector.broadcast %cst_77 : f32 to vector<1x512xf32>
      %156 = arith.mulf %155, %154 : vector<1x512xf32>
      %157 = vector.broadcast %156 : vector<1x512xf32> to vector<2x512xf32>
      %158 = arith.addf %153, %157 : vector<2x512xf32>
      %c0_78 = arith.constant 0 : index
      %c0_79 = arith.constant 0 : index
      %159 = vector.load %arg19[%c0_78, %c0_79] : memref<512x16xf32, #tpu.memory_space<vmem>>, vector<512x16xf32>
      %cst_80 = arith.constant dense<0.000000e+00> : vector<2x16xf32>
      %160 = tpu.matmul %158, %159, %cst_80 {dimension_numbers = #tpu.dot_dimension_numbers<[1], [0], [0], [1], [0, 0, 1, 1], [], []>} : vector<2x512xf32>, vector<512x16xf32>, vector<2x16xf32> -> vector<2x16xf32>
      %c0_81 = arith.constant 0 : index
      %c0_82 = arith.constant 0 : index
      %161 = vector.load %arg20[%c0_81, %c0_82] : memref<1x16xf32, #tpu.memory_space<vmem>>, vector<1x16xf32>
      %162 = vector.broadcast %161 : vector<1x16xf32> to vector<2x16xf32>
      %163 = arith.addf %160, %162 : vector<2x16xf32>
      %cst_83 = arith.constant 0.000000e+00 : f32
      %164 = vector.broadcast %cst_83 : f32 to vector<2x16xf32>
      %165 = arith.maximumf %163, %164 : vector<2x16xf32>
      %c0_84 = arith.constant 0 : index
      %c0_85 = arith.constant 0 : index
      %166 = vector.load %arg21[%c0_84, %c0_85] : memref<16x2xf32, #tpu.memory_space<vmem>>, vector<16x2xf32>
      %cst_86 = arith.constant dense<0.000000e+00> : vector<2x2xf32>
      %167 = tpu.matmul %165, %166, %cst_86 {dimension_numbers = #tpu.dot_dimension_numbers<[1], [0], [0], [1], [0, 0, 1, 1], [], []>} : vector<2x16xf32>, vector<16x2xf32>, vector<2x2xf32> -> vector<2x2xf32>
      %c0_87 = arith.constant 0 : index
      %c0_88 = arith.constant 0 : index
      %168 = vector.load %arg22[%c0_87, %c0_88] : memref<1x2xf32, #tpu.memory_space<vmem>>, vector<1x2xf32>
      %169 = vector.broadcast %168 : vector<1x2xf32> to vector<2x2xf32>
      %170 = arith.addf %167, %169 : vector<2x2xf32>
      %c0_89 = arith.constant 0 : index
      %c0_90 = arith.constant 0 : index
      %171 = vector.load %arg23[%c0_89, %c0_90] : memref<2x2xf32, #tpu.memory_space<vmem>>, vector<2x2xf32>
      tpu.vector_store %arg23[%c0_89, %c0_90], %170 {strides = array<i32>} : memref<2x2xf32, #tpu.memory_space<vmem>>, vector<2x2xf32>,
    } else {
    }
    return
  }
  func.func @transform_0(%arg0: i32) -> (i32, i32) {
    %c0_i32 = arith.constant 0 : i32
    %c0_i32_0 = arith.constant 0 : i32
    %c0_i32_1 = arith.constant 0 : i32
    return %c0_i32, %c0_i32_0 : i32, i32
  }
  func.func @transform_1(%arg0: i32) -> (i32, i32) {
    %c0_i32 = arith.constant 0 : i32
    %c0_i32_0 = arith.constant 0 : i32
    %c0_i32_1 = arith.constant 0 : i32
    return %c0_i32, %c0_i32_0 : i32, i32
  }
  func.func @transform_2(%arg0: i32) -> (i32, i32) {
    %c0_i32 = arith.constant 0 : i32
    %c0_i32_0 = arith.constant 0 : i32
    %c0_i32_1 = arith.constant 0 : i32
    return %c0_i32, %c0_i32_0 : i32, i32
  }
  func.func @transform_3(%arg0: i32) -> (i32, i32) {
    %c0_i32 = arith.constant 0 : i32
    %c0_i32_0 = arith.constant 0 : i32
    %c0_i32_1 = arith.constant 0 : i32
    return %c0_i32, %c0_i32_0 : i32, i32
  }
  func.func @transform_4(%arg0: i32) -> (i32, i32, i32) {
    %c0_i32 = arith.constant 0 : i32
    %c0_i32_0 = arith.constant 0 : i32
    %c0_i32_1 = arith.constant 0 : i32
    return %arg0, %c0_i32, %c0_i32_0 : i32, i32, i32
  }
  func.func @transform_5(%arg0: i32) -> (i32, i32, i32) {
    %c0_i32 = arith.constant 0 : i32
    %c0_i32_0 = arith.constant 0 : i32
    %c0_i32_1 = arith.constant 0 : i32
    return %arg0, %c0_i32, %c0_i32_0 : i32, i32, i32
  }
  func.func @transform_6(%arg0: i32) -> (i32, i32, i32) {
    %c0_i32 = arith.constant 0 : i32
    %c0_i32_0 = arith.constant 0 : i32
    %c0_i32_1 = arith.constant 0 : i32
    return %arg0, %c0_i32, %c0_i32_0 : i32, i32, i32
  }
  func.func @transform_7(%arg0: i32) -> (i32, i32, i32) {
    %c0_i32 = arith.constant 0 : i32
    %c0_i32_0 = arith.constant 0 : i32
    %c0_i32_1 = arith.constant 0 : i32
    return %arg0, %c0_i32, %c0_i32_0 : i32, i32, i32
  }
  func.func @transform_8(%arg0: i32) -> (i32, i32, i32) {
    %c0_i32 = arith.constant 0 : i32
    %c0_i32_0 = arith.constant 0 : i32
    %c0_i32_1 = arith.constant 0 : i32
    return %arg0, %c0_i32, %c0_i32_0 : i32, i32, i32
  }
  func.func @transform_9(%arg0: i32) -> (i32, i32, i32) {
    %c0_i32 = arith.constant 0 : i32
    %c0_i32_0 = arith.constant 0 : i32
    %c0_i32_1 = arith.constant 0 : i32
    return %arg0, %c0_i32, %c0_i32_0 : i32, i32, i32
  }
  func.func @transform_10(%arg0: i32) -> (i32, i32, i32) {
    %c0_i32 = arith.constant 0 : i32
    %c0_i32_0 = arith.constant 0 : i32
    %c0_i32_1 = arith.constant 0 : i32
    return %arg0, %c0_i32, %c0_i32_0 : i32, i32, i32
  }
  func.func @transform_11(%arg0: i32) -> (i32, i32, i32) {
    %c0_i32 = arith.constant 0 : i32
    %c0_i32_0 = arith.constant 0 : i32
    %c0_i32_1 = arith.constant 0 : i32
    return %arg0, %c0_i32, %c0_i32_0 : i32, i32, i32
  }
  func.func @transform_12(%arg0: i32) -> (i32, i32, i32) {
    %c0_i32 = arith.constant 0 : i32
    %c0_i32_0 = arith.constant 0 : i32
    %c0_i32_1 = arith.constant 0 : i32
    return %arg0, %c0_i32, %c0_i32_0 : i32, i32, i32
  }
  func.func @transform_13(%arg0: i32) -> (i32, i32, i32) {
    %c0_i32 = arith.constant 0 : i32
    %c0_i32_0 = arith.constant 0 : i32
    %c0_i32_1 = arith.constant 0 : i32
    return %arg0, %c0_i32, %c0_i32_0 : i32, i32, i32
  }
  func.func @transform_14(%arg0: i32) -> (i32, i32, i32) {
    %c0_i32 = arith.constant 0 : i32
    %c0_i32_0 = arith.constant 0 : i32
    %c0_i32_1 = arith.constant 0 : i32
    return %arg0, %c0_i32, %c0_i32_0 : i32, i32, i32
  }
  func.func @transform_15(%arg0: i32) -> (i32, i32, i32) {
    %c0_i32 = arith.constant 0 : i32
    %c0_i32_0 = arith.constant 0 : i32
    %c0_i32_1 = arith.constant 0 : i32
    return %arg0, %c0_i32, %c0_i32_0 : i32, i32, i32
  }
  func.func @transform_16(%arg0: i32) -> (i32, i32) {
    %c0_i32 = arith.constant 0 : i32
    %c0_i32_0 = arith.constant 0 : i32
    %c0_i32_1 = arith.constant 0 : i32
    return %c0_i32, %c0_i32_0 : i32, i32
  }
  func.func @transform_17(%arg0: i32) -> (i32, i32) {
    %c0_i32 = arith.constant 0 : i32
    %c0_i32_0 = arith.constant 0 : i32
    %c0_i32_1 = arith.constant 0 : i32
    return %c0_i32, %c0_i32_0 : i32, i32
  }
  func.func @transform_18(%arg0: i32) -> (i32, i32) {
    %c0_i32 = arith.constant 0 : i32
    %c0_i32_0 = arith.constant 0 : i32
    %c0_i32_1 = arith.constant 0 : i32
    return %c0_i32, %c0_i32_0 : i32, i32
  }
  func.func @transform_19(%arg0: i32) -> (i32, i32) {
    %c0_i32 = arith.constant 0 : i32
    %c0_i32_0 = arith.constant 0 : i32
    %c0_i32_1 = arith.constant 0 : i32
    return %c0_i32, %c0_i32_0 : i32, i32
  }
  func.func @transform_20(%arg0: i32) -> (i32, i32) {
    %c0_i32 = arith.constant 0 : i32
    %c0_i32_0 = arith.constant 0 : i32
    %c0_i32_1 = arith.constant 0 : i32
    return %c0_i32, %c0_i32_0 : i32, i32
  }
  func.func @transform_21(%arg0: i32) -> (i32, i32) {
    %c0_i32 = arith.constant 0 : i32
    %c0_i32_0 = arith.constant 0 : i32
    %c0_i32_1 = arith.constant 0 : i32
    return %c0_i32, %c0_i32_0 : i32, i32
  }
  func.func @transform_22(%arg0: i32) -> (i32, i32) {
    %c0_i32 = arith.constant 0 : i32
    %c0_i32_0 = arith.constant 0 : i32
    %c0_i32_1 = arith.constant 0 : i32
    return %c0_i32, %c0_i32_0 : i32, i32
  }
}

</mosaic_0001>

<bundles_post_ra>
// kernel: transformer_forward.1
= control target key start
LH: loop header
LB: loop body
LE: loop exit
PB: predicated region body
PF: predicated region fallthrough
CT: control target
= control target key end

     0   :  { %s8982_s0 = inlined_call_operand.vmem [shape: f32[16,16], index: 0, kind: input, shape index: {}]   ;;  %s8983_s1 = inlined_call_operand.vmem [shape: f32[2,16], index: 1, kind: input, shape index: {}]   ;;  %s8984_s2 = inlined_call_operand.vmem [shape: f32[16,1], index: 2, kind: input, shape index: {}]   ;;  %s8985_s3 = inlined_call_operand.vmem [shape: f32[16,512], index: 3, kind: input, shape index: {}]   ;;  %s8986_s4 = inlined_call_operand.vmem [shape: bf16[2,512,384], index: 4, kind: input, shape index: {}]   ;;  %s8987_s5 = inlined_call_operand.vmem [shape: f32[2,1,384], index: 5, kind: input, shape index: {}]   ;;  %s8988_s6 = inlined_call_operand.vmem [shape: bf16[2,128,512], index: 6, kind: input, shape index: {}]   ;;  %s8989_s7 = inlined_call_operand.vmem [shape: f32[2,1,512], index: 7, kind: input, shape index: {}]   ;;  %s8990_s8 = inlined_call_operand.vmem [shape: f32[2,1,512], index: 8, kind: input, shape index: {}]   ;;  %s8991_s9 = inlined_call_operand.vmem [shape: f32[2,1,512], index: 9, kind: input, shape index: {}]   ;;  %s8992_s10 = inlined_call_operand.vmem [shape: bf16[2,512,256], index: 10, kind: input, shape index: {}]   ;;  %s8993_s11 = inlined_call_operand.vmem [shape: f32[2,1,256], index: 11, kind: input, shape index: {}]   ;;  %s8994_s12 = inlined_call_operand.vmem [shape: bf16[2,256,512], index: 12, kind: input, shape index: {}]   ;;  %s8995_s13 = inlined_call_operand.vmem [shape: f32[2,1,512], index: 13, kind: input, shape index: {}]   ;;  %s8996_s14 = inlined_call_operand.vmem [shape: f32[2,1,512], index: 14, kind: input, shape index: {}]   ;;  %s8997_s15 = inlined_call_operand.vmem [shape: f32[2,1,512], index: 15, kind: input, shape index: {}]   ;;  %s8998_s16 = inlined_call_operand.vmem [shape: bf16[512,512], index: 16, kind: input, shape index: {}]   ;;  %s8999_s17 = inlined_call_operand.vmem [shape: f32[1,512], index: 17, kind: input, shape index: {}]   ;;  %s9000_s18 = inlined_call_operand.vmem [shape: f32[512,16], index: 18, kind: input, shape index: {}]   ;;  %s9001_s19 = inlined_call_operand.vmem [shape: f32[1,16], index: 19, kind: input, shape index: {}]   ;;  %s9002_s20 = inlined_call_operand.vmem [shape: f32[16,2], index: 20, kind: input, shape index: {}]   ;;  %s9003_s21 = inlined_call_operand.vmem [shape: f32[1,2], index: 21, kind: input, shape index: {}]   ;;  %s9004_s22 = inlined_call_operand.hbm [shape: f32[2,2], index: 22, kind: output, shape index: {}]  }
   0x1   :  { %9012 = sst [smem:[#allocation7_spill]] %s8982_s0 }
   0x2   :  { %9013 = sst [smem:[#allocation8_spill]] %s8983_s1 }
   0x3   :  { %9014 = sst [smem:[#allocation9_spill]] %s8984_s2 }
   0x4   :  { %9015 = sst [smem:[#allocation10_spill]] %s8985_s3 }
   0x5   :  { %9016 = sst [smem:[#allocation11_spill]] %s8986_s4 }
   0x6   :  { %9017 = sst [smem:[#allocation12_spill]] %s8987_s5 }
   0x7   :  { %9018 = sst [smem:[#allocation13_spill]] %s8988_s6 }
   0x8   :  { %9019 = sst [smem:[#allocation14_spill]] %s8992_s10 }
   0x9   :  { %9020 = sst [smem:[#allocation15_spill]] %s8998_s16 }
   0xa   :  { %9021 = sst [smem:[#allocation16_spill]] %s8999_s17 }
   0xb   :  { %9022 = sst [smem:[#allocation17_spill]] %s9000_s18 }
   0xc   :  { %9023 = sst [smem:[#allocation18_spill]] %s9001_s19 }
   0xd   :  { %9024 = sst [smem:[#allocation19_spill]] %s9002_s20 }
   0xe   :  { %9025 = sst [smem:[#allocation20_spill]] %s9003_s21 }
   0xf   :  { %9026 = sst [smem:[#allocation21_spill]] %s9004_s22 }
  0x10   :  { %27 = vsyncpa [#allocation4], 0  ;;  %s7107_s3 = smov 0  }
  0x11 LB: > { %9027 = sst [smem:[#allocation6_spill]] %s6986_s3  ;;  %s7113_s28 = sadd.s32 4294967295, %s6986_s3   ;;  %s6986_s3 = sphi %s7107_s3, %s33_s3  }
  0x12   : > { %p4929_p0 = scmp.ge.s32.totalorder %s6986_s3, 1  ;;  %p710_p1 = scmp.lt.s32.totalorder %s6986_s3, 3 }
  0x14   : > { %p711_p2 = pnand %p4929_p0, %p710_p1 }
  0x15   : > { %p814_p3 = scmp.lt.s32.totalorder (!%p711_p2), %s7113_s28, 1  ;;  %s9028_s5 = sld [smem:[#allocation13_spill]] (!%p711_p2) }
  0x16   : > { %714 = sbr.rel (%p711_p2) target bundleno = 2594 (0xa22), region = 108  ;;  %s9029_s26 = sld [smem:[#allocation11_spill]] (!%p711_p2) }
  0x17   : > { %s9030_s21 = sld [smem:[#allocation12_spill]] (!%p711_p2)  ;;  %p4944_p4 = scmp.ne.s32.totalorder (!%p711_p2), %s7113_s28, 0 }
  0x18   : > { %s9031_s10 = sld [smem:[#allocation14_spill]] (!%p711_p2) }
  0x1b   : > { %s815_s29 = scalar_select %p814_p3, %s7113_s28, 1 }
  0x1c   : > { %s9032_s1 = sld [smem:[#allocation10_spill]] (!%p4944_p4) }
  0x1d   : > { %s6890_s30 = smul.u32 768, %s815_s29  ;;  %s6503_s4 = sshll.u32 %s815_s29, 8 }
  0x1e   : > { %s6891_s0 = smul.u32 3, %s815_s29  ;;  %s7122_s24 = scalar_lea.vmem %s9028_s5, %s6503_s4 }
  0x1f   : > { %s7127_s2 = scalar_lea.vmem %s9029_s26, %s6890_s30  ;;  %s7129_s27 = sshll.u32 %s815_s29, 2 }
  0x20   : > { %s7134_s19 = scalar_lea.vmem %s9030_s21, %s6891_s0  ;;  %s6504_s3 = sshll.u32 %s815_s29, 9 }
  0x21   : > { %s4938_s20 = sshll.u32 %s815_s29, 1  ;;  %s7151_s16 = scalar_lea.vmem %s9031_s10, %s6504_s3 }
  0x22   : > { %s7156_s4 = scalar_lea.vmem %s8993_s11, %s4938_s20  ;;  %s7161_s5 = scalar_lea.vmem %s8994_s12, %s6504_s3 }
  0x23   : > { %s857_s26 = scalar_lea.vmem %s8995_s13, %s7129_s27  ;;  %s861_s17 = scalar_lea.vmem %s8996_s14, %s7129_s27 }
  0x24   : > { %s865_s10 = scalar_lea.vmem %s8997_s15, %s7129_s27  ;;  %870 = sbr.rel (%p4944_p4) target bundleno = 50 (0x32), region = 112 }
  0x29   : > { %v871_v0 = vld [vmem:[%s9032_s1] sm:$0xff]  ;;  %v872_v1 = vld [vmem:[%s9032_s1 + $0x8] sm:$0xff]  ;;  %v873_v2 = vld [vmem:[%s9032_s1 + $0x10] sm:$0xff] }
  0x2a   : > { %879 = vst [vmem:[#allocation2 + $0x30] sm:$0xff] %v871_v0  ;;  %v874_v3 = vld [vmem:[%s9032_s1 + $0x18] sm:$0xff]  ;;  %v875_v4 = vld [vmem:[%s9032_s1 + $0x20] sm:$0xff]  ;;  %v876_v5 = vld [vmem:[%s9032_s1 + $0x28] sm:$0xff] }
  0x2b   : > { %880 = vst [vmem:[#allocation2] sm:$0xff] %v872_v1  ;;  %v877_v6 = vld [vmem:[%s9032_s1 + $0x30] sm:$0xff]  ;;  %v878_v7 = vld [vmem:[%s9032_s1 + $0x38] sm:$0xff] }
  0x2c   : > { %881 = vst [vmem:[#allocation2 + $0x18] sm:$0xff] %v873_v2 }
  0x2d   : > { %882 = vst [vmem:[#allocation2 + $0x10] sm:$0xff] %v874_v3 }
  0x2e   : > { %883 = vst [vmem:[#allocation2 + $0x8] sm:$0xff] %v875_v4 }
  0x2f   : > { %884 = vst [vmem:[#allocation2 + $0x20] sm:$0xff] %v876_v5 }
  0x30   : > { %885 = vst [vmem:[#allocation2 + $0x28] sm:$0xff] %v877_v6 }
  0x31   : > { %886 = vst [vmem:[#allocation2 + $0x38] sm:$0xff] %v878_v7 }
  0x32 PF: > { %v5031_v8 = vld [vmem:[%s7127_s2 + $0xa8] sm:$0xf]  ;;  %v6528_v9 = vld [vmem:[%s7127_s2 + $0xb0] sm:$0xf0]  ;;  %v5019_v19 = vld [vmem:[%s7127_s2 + $0x90] sm:$0xf]  ;;  %s9034_s18 = scalar_lea.vmem %s8989_s7, %s7129_s27  ;;  %s9037_s25 = scalar_lea.vmem %s8990_s8, %s7129_s27 }
  0x33   : > { %v5127_v10 = vld [vmem:[%s7127_s2 + $0x168] sm:$0xf]  ;;  %v5032_v11 = vor.u32 %v6528_v9, %v5031_v8  ;;  %v6552_v12 = vld [vmem:[%s7127_s2 + $0x170] sm:$0xf0]  ;;  %v6525_v21 = vld [vmem:[%s7127_s2 + $0x98] sm:$0xf0] }
  0x34   : > { %v5223_v13 = vld [vmem:[%s7127_s2 + $0x228] sm:$0xf]  ;;  %v6576_v14 = vld [vmem:[%s7127_s2 + $0x230] sm:$0xf0]  ;;  %v5128_v15 = vor.u32 %v6552_v12, %v5127_v10  ;;  %v5115_v22 = vld [vmem:[%s7127_s2 + $0x150] sm:$0xf]  ;;  %v5020_v24 = vor.u32 %v6525_v21, %v5019_v19 }
  0x35   : > { %v5224_v16 = vor.u32 %v6576_v14, %v5223_v13  ;;  %v5319_v17 = vld [vmem:[%s7127_s2 + $0x2e8] sm:$0xf]  ;;  %v6600_v18 = vld [vmem:[%s7127_s2 + $0x2f0] sm:$0xf0]  ;;  %1551 = vmatpush.bf16.msra.mxu0 %v5032_v11  ;;  %v6549_v23 = vld [vmem:[%s7127_s2 + $0x158] sm:$0xf0] }
  0x36   : > { %v5320_v20 = vor.u32 %v6600_v18, %v5319_v17  ;;  %1565 = vmatpush.bf16.msra.mxu1 %v5128_v15  ;;  %v5116_v25 = vor.u32 %v6549_v23, %v5115_v22  ;;  %v5211_v26 = vld [vmem:[%s7127_s2 + $0x210] sm:$0xf]  ;;  %v6573_v27 = vld [vmem:[%s7127_s2 + $0x218] sm:$0xf0]  ;;  %v5007_v31 = vld [vmem:[%s7127_s2 + $0x78] sm:$0xf] }
  0x37   : > { %1579 = vmatpush.bf16.msra.mxu2 %v5224_v16  ;;  %v5307_v28 = vld [vmem:[%s7127_s2 + $0x2d0] sm:$0xf]  ;;  %v5212_v29 = vor.u32 %v6573_v27, %v5211_v26  ;;  %v6597_v30 = vld [vmem:[%s7127_s2 + $0x2d8] sm:$0xf0]  ;;  %v6522_v32 = vld [vmem:[%s7127_s2 + $0x80] sm:$0xf0] }
  0x38   : > { %1593 = vmatpush.bf16.msra.mxu3 %v5320_v20  ;;  %v5308_v33 = vor.u32 %v6597_v30, %v5307_v28  ;;  %v5103_v34 = vld [vmem:[%s7127_s2 + $0x138] sm:$0xf]  ;;  %v6546_v35 = vld [vmem:[%s7127_s2 + $0x140] sm:$0xf0]  ;;  %v5008_v37 = vor.u32 %v6522_v32, %v5007_v31  ;;  %v4995_v43 = vld [vmem:[%s7127_s2 + $0x60] sm:$0xf] }
  0x39   : > { %v5199_v36 = vld [vmem:[%s7127_s2 + $0x1f8] sm:$0xf]  ;;  %1552 = vmatpush.bf16.msra.mxu0 %v5020_v24  ;;  %v6570_v38 = vld [vmem:[%s7127_s2 + $0x200] sm:$0xf0]  ;;  %v5104_v41 = vor.u32 %v6546_v35, %v5103_v34  ;;  %v6519_v44 = vld [vmem:[%s7127_s2 + $0x68] sm:$0xf0] }
  0x3a   : > { %v5295_v39 = vld [vmem:[%s7127_s2 + $0x2b8] sm:$0xf]  ;;  %v6594_v40 = vld [vmem:[%s7127_s2 + $0x2c0] sm:$0xf0]  ;;  %1566 = vmatpush.bf16.msra.mxu1 %v5116_v25  ;;  %v5200_v42 = vor.u32 %v6570_v38, %v5199_v36  ;;  %v5091_v45 = vld [vmem:[%s7127_s2 + $0x120] sm:$0xf]  ;;  %v4996_v52 = vor.u32 %v6519_v44, %v4995_v43 }
  0x3b   : > { %1580 = vmatpush.bf16.msra.mxu2 %v5212_v29  ;;  %v5296_v46 = vor.u32 %v6594_v40, %v5295_v39  ;;  %v6543_v47 = vld [vmem:[%s7127_s2 + $0x128] sm:$0xf0]  ;;  %v5187_v48 = vld [vmem:[%s7127_s2 + $0x1e0] sm:$0xf]  ;;  %v4983_v55 = vld [vmem:[%s7127_s2 + $0x48] sm:$0xf] }
  0x3c   : > { %1594 = vmatpush.bf16.msra.mxu3 %v5308_v33  ;;  %v6567_v49 = vld [vmem:[%s7127_s2 + $0x1e8] sm:$0xf0]  ;;  %v5283_v50 = vld [vmem:[%s7127_s2 + $0x2a0] sm:$0xf]  ;;  %v5092_v53 = vor.u32 %v6543_v47, %v5091_v45  ;;  %v6516_v56 = vld [vmem:[%s7127_s2 + $0x50] sm:$0xf0] }
  0x3d   : > { %v6591_v51 = vld [vmem:[%s7127_s2 + $0x2a8] sm:$0xf0]  ;;  %1553 = vmatpush.bf16.msra.mxu0 %v5008_v37  ;;  %v5188_v54 = vor.u32 %v6567_v49, %v5187_v48  ;;  %v5079_v57 = vld [vmem:[%s7127_s2 + $0x108] sm:$0xf]  ;;  %v6540_v59 = vld [vmem:[%s7127_s2 + $0x110] sm:$0xf0]  ;;  %v4984_v0 = vor.u32 %v6516_v56, %v4983_v55 }
  0x3e   : > { %1567 = vmatpush.bf16.msra.mxu1 %v5104_v41  ;;  %v5284_v58 = vor.u32 %v6591_v51, %v5283_v50  ;;  %v5175_v60 = vld [vmem:[%s7127_s2 + $0x1c8] sm:$0xf]  ;;  %v6564_v61 = vld [vmem:[%s7127_s2 + $0x1d0] sm:$0xf0]  ;;  %v5080_v1 = vor.u32 %v6540_v59, %v5079_v57  ;;  %v4971_v3 = vld [vmem:[%s7127_s2 + $0x30] sm:$0xf] }
  0x3f   : > { %1581 = vmatpush.bf16.msra.mxu2 %v5200_v42  ;;  %v5271_v62 = vld [vmem:[%s7127_s2 + $0x288] sm:$0xf]  ;;  %v6588_v63 = vld [vmem:[%s7127_s2 + $0x290] sm:$0xf0]  ;;  %v5176_v2 = vor.u32 %v6564_v61, %v5175_v60  ;;  %v6513_v4 = vld [vmem:[%s7127_s2 + $0x38] sm:$0xf0] }
  0x40   : > { %1595 = vmatpush.bf16.msra.mxu3 %v5296_v46  ;;  %v5067_v5 = vld [vmem:[%s7127_s2 + $0xf0] sm:$0xf]  ;;  %v5272_v6 = vor.u32 %v6588_v63, %v5271_v62  ;;  %v6537_v7 = vld [vmem:[%s7127_s2 + $0xf8] sm:$0xf0]  ;;  %v4972_v12 = vor.u32 %v6513_v4, %v4971_v3  ;;  %v4959_v15 = vld [vmem:[%s7127_s2 + $0x18] sm:$0xf] }
  0x41   : > { %1554 = vmatpush.bf16.msra.mxu0 %v4996_v52  ;;  %v5163_v8 = vld [vmem:[%s7127_s2 + $0x1b0] sm:$0xf]  ;;  %v6561_v9 = vld [vmem:[%s7127_s2 + $0x1b8] sm:$0xf0]  ;;  %v5068_v13 = vor.u32 %v6537_v7, %v5067_v5  ;;  %v6510_v16 = vld [vmem:[%s7127_s2 + $0x20] sm:$0xf0] }
  0x42   : > { %1568 = vmatpush.bf16.msra.mxu1 %v5092_v53  ;;  %v5259_v10 = vld [vmem:[%s7127_s2 + $0x270] sm:$0xf]  ;;  %v6585_v11 = vld [vmem:[%s7127_s2 + $0x278] sm:$0xf0]  ;;  %v5164_v14 = vor.u32 %v6561_v9, %v5163_v8  ;;  %v5055_v17 = vld [vmem:[%s7127_s2 + $0xd8] sm:$0xf]  ;;  %v4960_v25 = vor.u32 %v6510_v16, %v4959_v15 }
  0x43   : > { %1582 = vmatpush.bf16.msra.mxu2 %v5188_v54  ;;  %v5260_v18 = vor.u32 %v6585_v11, %v5259_v10  ;;  %v6534_v19 = vld [vmem:[%s7127_s2 + $0xe0] sm:$0xf0]  ;;  %v5151_v20 = vld [vmem:[%s7127_s2 + $0x198] sm:$0xf]  ;;  %v4947_v24 = vld [vmem:[%s7127_s2] sm:$0xf] }
  0x44   : > { %1596 = vmatpush.bf16.msra.mxu3 %v5284_v58  ;;  %v6558_v21 = vld [vmem:[%s7127_s2 + $0x1a0] sm:$0xf0]  ;;  %v5247_v22 = vld [vmem:[%s7127_s2 + $0x258] sm:$0xf]  ;;  %v6507_v26 = vld [vmem:[%s7127_s2 + $0x8] sm:$0xf0]  ;;  %v5056_v29 = vor.u32 %v6534_v19, %v5055_v17 }
  0x45   : > { %1555 = vmatpush.bf16.msra.mxu0 %v4984_v0  ;;  %v6582_v23 = vld [vmem:[%s7127_s2 + $0x260] sm:$0xf0]  ;;  %v5043_v27 = vld [vmem:[%s7127_s2 + $0xc0] sm:$0xf]  ;;  %v6531_v28 = vld [vmem:[%s7127_s2 + $0xc8] sm:$0xf0]  ;;  %v5152_v30 = vor.u32 %v6558_v21, %v5151_v20  ;;  %v4948_v41 = vor.u32 %v6507_v26, %v4947_v24 }
  0x46   : > { %1569 = vmatpush.bf16.msra.mxu1 %v5080_v1  ;;  %v5139_v31 = vld [vmem:[%s7127_s2 + $0x180] sm:$0xf]  ;;  %v6555_v32 = vld [vmem:[%s7127_s2 + $0x188] sm:$0xf0]  ;;  %v5248_v34 = vor.u32 %v6582_v23, %v5247_v22  ;;  %v5033_v37 = vld [vmem:[%s7127_s2 + $0xb4] sm:$0xf0]  ;;  %v5044_v45 = vor.u32 %v6531_v28, %v5043_v27 }
  0x47   : > { %1583 = vmatpush.bf16.msra.mxu2 %v5176_v2  ;;  %v5235_v33 = vld [vmem:[%s7127_s2 + $0x240] sm:$0xf]  ;;  %v6579_v35 = vld [vmem:[%s7127_s2 + $0x248] sm:$0xf0]  ;;  %v5129_v39 = vld [vmem:[%s7127_s2 + $0x174] sm:$0xf0]  ;;  %v5140_v46 = vor.u32 %v6555_v32, %v5139_v31 }
  0x48   : > { %1597 = vmatpush.bf16.msra.mxu3 %v5272_v6  ;;  %v6527_v36 = vld [vmem:[%s7127_s2 + $0xac] sm:$0xf]  ;;  %v5225_v42 = vld [vmem:[%s7127_s2 + $0x234] sm:$0xf0]  ;;  %v6524_v47 = vld [vmem:[%s7127_s2 + $0x94] sm:$0xf]  ;;  %v5236_v51 = vor.u32 %v6579_v35, %v5235_v33 }
  0x49   : > { %1556 = vmatpush.bf16.msra.mxu0 %v4972_v12  ;;  %v6551_v38 = vld [vmem:[%s7127_s2 + $0x16c] sm:$0xf]  ;;  %v5321_v44 = vld [vmem:[%s7127_s2 + $0x2f4] sm:$0xf0]  ;;  %v5021_v48 = vld [vmem:[%s7127_s2 + $0x9c] sm:$0xf0]  ;;  %v5036_v52 = vor.u32 %v6527_v36, %v5033_v37 }
  0x4a   : > { %1570 = vmatpush.bf16.msra.mxu1 %v5068_v13  ;;  %v6575_v40 = vld [vmem:[%s7127_s2 + $0x22c] sm:$0xf]  ;;  %v889_v49 = vld [vmem:[#allocation2 + $0x18] sm:$0xff]  ;;  %v6548_v53 = vld [vmem:[%s7127_s2 + $0x154] sm:$0xf]  ;;  %v5132_v57 = vor.u32 %v6551_v38, %v5129_v39  ;;  %v5024_v7 = vor.u32 %v6524_v47, %v5021_v48  ;;  %vm1767_vm0 = vcmask 523264  }
  0x4b   : > { %1584 = vmatpush.bf16.msra.mxu2 %v5164_v14  ;;  %v6599_v43 = vld [vmem:[%s7127_s2 + $0x2ec] sm:$0xf]  ;;  %v5117_v54 = vld [vmem:[%s7127_s2 + $0x15c] sm:$0xf0]  ;;  %v6572_v55 = vld [vmem:[%s7127_s2 + $0x214] sm:$0xf]  ;;  %v5228_v58 = vor.u32 %v6575_v40, %v5225_v42 }
  0x4c   : > { %1598 = vmatpush.bf16.msra.mxu3 %v5260_v18  ;;  %v893_v50 = vld [vmem:[#allocation2 + $0x28] sm:$0xff]  ;;  %v5213_v56 = vld [vmem:[%s7127_s2 + $0x21c] sm:$0xf0]  ;;  %v887_v59 = vld [vmem:[#allocation2 + $0x30] sm:$0xff]  ;;  %v5324_v62 = vor.u32 %v6599_v43, %v5321_v44  ;;  %v5120_v9 = vor.u32 %v6548_v53, %v5117_v54  ;;  %s9033_s22 = sld [smem:[#allocation7_spill]]  ;;  %vm1788_vm1 = vcmask 130048  }
  0x4d   : > { %1557 = vmatpush.bf16.msra.mxu0 %v4960_v25  ;;  %v891_v60 = vld [vmem:[#allocation2 + $0x8] sm:$0xff]  ;;  %v890_v61 = vld [vmem:[#allocation2 + $0x10] sm:$0xff]  ;;  %v7278_v63 = vpack.c.bf16 %v893_v50, %v889_v49  ;;  %v894_v0 = vld [vmem:[#allocation2 + $0x38] sm:$0xff]  ;;  %v5216_v10 = vor.u32 %v6572_v55, %v5213_v56  ;;  %s9035_s3 = sld [smem:[#allocation9_spill]]  ;;  %p5981_p5 = scmp.ne.s32.totalorder %s7113_s28, 1 }
  0x4e   : > { %1571 = vmatpush.bf16.msra.mxu1 %v5056_v29  ;;  %v888_v1 = vld [vmem:[#allocation2] sm:$0xff]  ;;  %v6596_v3 = vld [vmem:[%s7127_s2 + $0x2d4] sm:$0xf]  ;;  %v7282_v5 = vpack.c.bf16 %v891_v60, %v887_v59  ;;  %v7284_v6 = vpack.c.bf16 %v894_v0, %v890_v61  ;;  %v6521_v11 = vld [vmem:[%s7127_s2 + $0x7c] sm:$0xf]  ;;  %s9040_s23 = sld [smem:[#allocation15_spill]] (!%p5981_p5) }
  0x4f   : > { %1585 = vmatpush.bf16.msra.mxu2 %v5152_v30  ;;  %v892_v2 = vld [vmem:[#allocation2 + $0x20] sm:$0xff]  ;;  %v5009_v12 = vld [vmem:[%s7127_s2 + $0x84] sm:$0xf0]  ;;  %v6545_v13 = vld [vmem:[%s7127_s2 + $0x13c] sm:$0xf]  ;;  %s9041_s30 = sld [smem:[#allocation17_spill]] (!%p5981_p5) }
  0x50   : > { %1599 = vmatpush.bf16.msra.mxu3 %v5248_v34  ;;  %v5309_v4 = vld [vmem:[%s7127_s2 + $0x2dc] sm:$0xf0]  ;;  %v7286_v8 = vpack.c.bf16 %v892_v2, %v888_v1  ;;  %v5105_v15 = vld [vmem:[%s7127_s2 + $0x144] sm:$0xf0]  ;;  %v6569_v16 = vld [vmem:[%s7127_s2 + $0x1fc] sm:$0xf]  ;;  %v5012_v20 = vor.u32 %v6521_v11, %v5009_v12 }
  0x51   : > { %1558 = vmatpush.bf16.msra.mxu0 %v4948_v41  ;;  %v5312_v14 = vor.u32 %v6596_v3, %v5309_v4  ;;  %v5201_v17 = vld [vmem:[%s7127_s2 + $0x204] sm:$0xf0]  ;;  %v6593_v18 = vld [vmem:[%s7127_s2 + $0x2bc] sm:$0xf]  ;;  %v5108_v21 = vor.u32 %v6545_v13, %v5105_v15  ;;  %v6518_v23 = vld [vmem:[%s7127_s2 + $0x64] sm:$0xf] }
  0x52   : > { %1572 = vmatpush.bf16.msra.mxu1 %v5044_v45  ;;  %v5297_v19 = vld [vmem:[%s7127_s2 + $0x2c4] sm:$0xf0]  ;;  %v5204_v22 = vor.u32 %v6569_v16, %v5201_v17  ;;  %v4997_v24 = vld [vmem:[%s7127_s2 + $0x6c] sm:$0xf0]  ;;  %v6542_v25 = vld [vmem:[%s7127_s2 + $0x124] sm:$0xf] }
  0x53   : > { %1586 = vmatpush.bf16.msra.mxu2 %v5140_v46  ;;  %v5300_v26 = vor.u32 %v6593_v18, %v5297_v19  ;;  %v5093_v27 = vld [vmem:[%s7127_s2 + $0x12c] sm:$0xf0]  ;;  %v6566_v28 = vld [vmem:[%s7127_s2 + $0x1e4] sm:$0xf]  ;;  %v5000_v32 = vor.u32 %v6518_v23, %v4997_v24  ;;  %v6515_v35 = vld [vmem:[%s7127_s2 + $0x4c] sm:$0xf]  ;;  %s9036_s0 = smov %s9035_s3 }
  0x54   : > { %1600 = vmatpush.bf16.msra.mxu3 %v5236_v51  ;;  %1559 = vmatmul.bf16.vlgmr.msra.gmra.mxu0 %v7282_v5  ;;  %v5189_v29 = vld [vmem:[%s7127_s2 + $0x1ec] sm:$0xf0]  ;;  %v6590_v30 = vld [vmem:[%s7127_s2 + $0x2a4] sm:$0xf]  ;;  %v5096_v33 = vor.u32 %v6542_v25, %v5093_v27  ;;  %v4985_v36 = vld [vmem:[%s7127_s2 + $0x54] sm:$0xf0] }
  0x55   : > { %1607 = vmatpush.bf16.msrb.mxu0 %v5036_v52  ;;  %1573 = vmatmul.bf16.vlgmr.msra.gmra.mxu1 %v7286_v8  ;;  %v5285_v31 = vld [vmem:[%s7127_s2 + $0x2ac] sm:$0xf0]  ;;  %v5192_v34 = vor.u32 %v6566_v28, %v5189_v29  ;;  %v6539_v37 = vld [vmem:[%s7127_s2 + $0x10c] sm:$0xf]  ;;  %v5081_v39 = vld [vmem:[%s7127_s2 + $0x114] sm:$0xf0]  ;;  %v4988_v44 = vor.u32 %v6515_v35, %v4985_v36 }
  0x56   : > { %1621 = vmatpush.bf16.msrb.mxu1 %v5132_v57  ;;  %1587 = vmatmul.bf16.vlgmr.msra.gmra.mxu2 %v7278_v63  ;;  %v5288_v38 = vor.u32 %v6590_v30, %v5285_v31  ;;  %v6563_v40 = vld [vmem:[%s7127_s2 + $0x1cc] sm:$0xf]  ;;  %v5177_v41 = vld [vmem:[%s7127_s2 + $0x1d4] sm:$0xf0]  ;;  %v5084_v45 = vor.u32 %v6539_v37, %v5081_v39  ;;  %v6512_v47 = vld [vmem:[%s7127_s2 + $0x34] sm:$0xf] }
  0x57   : > { %1635 = vmatpush.bf16.msrb.mxu2 %v5228_v58  ;;  %1601 = vmatmul.bf16.vlgmr.msra.gmra.mxu3 %v7284_v6  ;;  %v6587_v42 = vld [vmem:[%s7127_s2 + $0x28c] sm:$0xf]  ;;  %v5273_v43 = vld [vmem:[%s7127_s2 + $0x294] sm:$0xf0]  ;;  %v5180_v46 = vor.u32 %v6563_v40, %v5177_v41  ;;  %v4973_v48 = vld [vmem:[%s7127_s2 + $0x3c] sm:$0xf0] }
  0x58   : > { %1649 = vmatpush.bf16.msrb.mxu3 %v5324_v62  ;;  %v6536_v49 = vld [vmem:[%s7127_s2 + $0xf4] sm:$0xf]  ;;  %v5276_v50 = vor.u32 %v6587_v42, %v5273_v43  ;;  %v5069_v51 = vld [vmem:[%s7127_s2 + $0xfc] sm:$0xf0]  ;;  %v4976_v56 = vor.u32 %v6512_v47, %v4973_v48  ;;  %v6509_v59 = vld [vmem:[%s7127_s2 + $0x1c] sm:$0xf] }
  0x59   : > { %1608 = vmatpush.bf16.msrb.mxu0 %v5024_v7  ;;  %v6560_v52 = vld [vmem:[%s7127_s2 + $0x1b4] sm:$0xf]  ;;  %v5165_v53 = vld [vmem:[%s7127_s2 + $0x1bc] sm:$0xf0]  ;;  %v5072_v57 = vor.u32 %v6536_v49, %v5069_v51  ;;  %v4961_v60 = vld [vmem:[%s7127_s2 + $0x24] sm:$0xf0] }
  0x5a   : > { %1622 = vmatpush.bf16.msrb.mxu1 %v5120_v9  ;;  %v6584_v54 = vld [vmem:[%s7127_s2 + $0x274] sm:$0xf]  ;;  %v5261_v55 = vld [vmem:[%s7127_s2 + $0x27c] sm:$0xf0]  ;;  %v5168_v58 = vor.u32 %v6560_v52, %v5165_v53  ;;  %v6533_v61 = vld [vmem:[%s7127_s2 + $0xdc] sm:$0xf]  ;;  %v4964_v7 = vor.u32 %v6509_v59, %v4961_v60 }
  0x5b   : > { %1636 = vmatpush.bf16.msrb.mxu2 %v5216_v10  ;;  %v5264_v62 = vor.u32 %v6584_v54, %v5261_v55  ;;  %v5057_v0 = vld [vmem:[%s7127_s2 + $0xe4] sm:$0xf0]  ;;  %v6557_v1 = vld [vmem:[%s7127_s2 + $0x19c] sm:$0xf]  ;;  %v6506_v11 = vld [vmem:[%s7127_s2 + $0x4] sm:$0xf] }
  0x5c   : > { %1650 = vmatpush.bf16.msrb.mxu3 %v5312_v14  ;;  %v5153_v2 = vld [vmem:[%s7127_s2 + $0x1a4] sm:$0xf0]  ;;  %v6581_v3 = vld [vmem:[%s7127_s2 + $0x25c] sm:$0xf]  ;;  %v5060_v9 = vor.u32 %v6533_v61, %v5057_v0  ;;  %v4949_v12 = vld [vmem:[%s7127_s2 + $0xc] sm:$0xf0] }
  0x5d   : > { %1609 = vmatpush.bf16.msrb.mxu0 %v5012_v20  ;;  %v5249_v4 = vld [vmem:[%s7127_s2 + $0x264] sm:$0xf0]  ;;  %v5156_v10 = vor.u32 %v6557_v1, %v5153_v2  ;;  %v6530_v13 = vld [vmem:[%s7127_s2 + $0xc4] sm:$0xf]  ;;  %v5045_v15 = vld [vmem:[%s7127_s2 + $0xcc] sm:$0xf0]  ;;  %v4952_v20 = vor.u32 %v6506_v11, %v4949_v12 }
  0x5e   : > { %1623 = vmatpush.bf16.msrb.mxu1 %v5108_v21  ;;  %v5252_v14 = vor.u32 %v6581_v3, %v5249_v4  ;;  %v6554_v16 = vld [vmem:[%s7127_s2 + $0x184] sm:$0xf]  ;;  %v5141_v17 = vld [vmem:[%s7127_s2 + $0x18c] sm:$0xf0]  ;;  %v5048_v21 = vor.u32 %v6530_v13, %v5045_v15  ;;  %v6529_v25 = vld [vmem:[%s7127_s2 + $0xb8] sm:$0xf0] }
  0x5f   : > { %1637 = vmatpush.bf16.msrb.mxu2 %v5204_v22  ;;  %v6578_v18 = vld [vmem:[%s7127_s2 + $0x244] sm:$0xf]  ;;  %v5237_v19 = vld [vmem:[%s7127_s2 + $0x24c] sm:$0xf0]  ;;  %v5144_v22 = vor.u32 %v6554_v16, %v5141_v17  ;;  %v5027_v27 = vld [vmem:[%s7127_s2 + $0x98] sm:$0xf] }
  0x60   : > { %1651 = vmatpush.bf16.msrb.mxu3 %v5300_v26  ;;  %v5240_v23 = vor.u32 %v6578_v18, %v5237_v19  ;;  %v5039_v24 = vld [vmem:[%s7127_s2 + $0xb0] sm:$0xf]  ;;  %v6526_v28 = vld [vmem:[%s7127_s2 + $0xa0] sm:$0xf0]  ;;  %v5015_v30 = vld [vmem:[%s7127_s2 + $0x80] sm:$0xf] }
  0x61   : > { %1610 = vmatpush.bf16.msrb.mxu0 %v5000_v32  ;;  %v5040_v26 = vor.u32 %v6529_v25, %v5039_v24  ;;  %v5028_v29 = vor.u32 %v6526_v28, %v5027_v27  ;;  %v6523_v31 = vld [vmem:[%s7127_s2 + $0x88] sm:$0xf0]  ;;  %v4991_v36 = vld [vmem:[%s7127_s2 + $0x50] sm:$0xf]  ;;  %v6517_v37 = vld [vmem:[%s7127_s2 + $0x58] sm:$0xf0] }
  0x62   : > { %1624 = vmatpush.bf16.msrb.mxu1 %v5096_v33  ;;  %v5016_v32 = vor.u32 %v6523_v31, %v5015_v30  ;;  %v5003_v33 = vld [vmem:[%s7127_s2 + $0x68] sm:$0xf]  ;;  %v4979_v39 = vld [vmem:[%s7127_s2 + $0x38] sm:$0xf]  ;;  %v6514_v40 = vld [vmem:[%s7127_s2 + $0x40] sm:$0xf0] }
  0x63   : > { %1638 = vmatpush.bf16.msrb.mxu2 %v5192_v34  ;;  %v6520_v34 = vld [vmem:[%s7127_s2 + $0x70] sm:$0xf0]  ;;  %v4980_v41 = vor.u32 %v6514_v40, %v4979_v39  ;;  %v4967_v42 = vld [vmem:[%s7127_s2 + $0x20] sm:$0xf]  ;;  %v6511_v43 = vld [vmem:[%s7127_s2 + $0x28] sm:$0xf0] }
  0x64   : > { %1652 = vmatpush.bf16.msrb.mxu3 %v5288_v38  ;;  %v5004_v35 = vor.u32 %v6520_v34, %v5003_v33  ;;  %v4992_v38 = vor.u32 %v6517_v37, %v4991_v36  ;;  %v7366_v54 = vld [vmem:[%s7134_s19] sm:$0x7]  ;;  %v5231_v60 = vld [vmem:[%s7127_s2 + $0x230] sm:$0xf]  ;;  %v6577_v61 = vld [vmem:[%s7127_s2 + $0x238] sm:$0xf0] }
  0x65   : > { %1611 = vmatpush.bf16.msrb.mxu0 %v4988_v44  ;;  %v4968_v44 = vor.u32 %v6511_v43, %v4967_v42  ;;  %v1034_v55 = vperm.slane %v7366_v54, 1  ;;  %v5232_v1 = vor.u32 %v6577_v61, %v5231_v60  ;;  %v6601_v2 = vld [vmem:[%s7127_s2 + $0x2f8] sm:$0xf0]  ;;  %v5219_v3 = vld [vmem:[%s7127_s2 + $0x218] sm:$0xf]  ;;  %s6988_s19 = smov 64  }
  0x66   : > { %1625 = vmatpush.bf16.msrb.mxu1 %v5084_v45  ;;  %v4955_v45 = vld [vmem:[%s7127_s2 + $0x8] sm:$0xf]  ;;  %v6574_v4 = vld [vmem:[%s7127_s2 + $0x220] sm:$0xf0]  ;;  %v5315_v11 = vld [vmem:[%s7127_s2 + $0x2d8] sm:$0xf] }
  0x67   : > { %1639 = vmatpush.bf16.msrb.mxu2 %v5180_v46  ;;  %v6508_v46 = vld [vmem:[%s7127_s2 + $0x10] sm:$0xf0]  ;;  %v5220_v12 = vor.u32 %v6574_v4, %v5219_v3  ;;  %v5207_v15 = vld [vmem:[%s7127_s2 + $0x200] sm:$0xf]  ;;  %v6571_v18 = vld [vmem:[%s7127_s2 + $0x208] sm:$0xf0] }
  0x68   : > { %1653 = vmatpush.bf16.msrb.mxu3 %v5276_v50  ;;  %v4956_v48 = vor.u32 %v6508_v46, %v4955_v45  ;;  %v5123_v19 = vld [vmem:[%s7127_s2 + $0x158] sm:$0xf]  ;;  %v6595_v24 = vld [vmem:[%s7127_s2 + $0x2c8] sm:$0xf0]  ;;  %v5208_v31 = vor.u32 %v6571_v18, %v5207_v15  ;;  %v6568_v36 = vld [vmem:[%s7127_s2 + $0x1f0] sm:$0xf0] }
  0x69   : > { %1612 = vmatpush.bf16.msrb.mxu0 %v4976_v56  ;;  %v6547_v30 = vld [vmem:[%s7127_s2 + $0x148] sm:$0xf0]  ;;  %v6592_v39 = vld [vmem:[%s7127_s2 + $0x2b0] sm:$0xf0]  ;;  %v5099_v42 = vld [vmem:[%s7127_s2 + $0x128] sm:$0xf] }
  0x6a   : > { %1626 = vmatpush.bf16.msrb.mxu1 %v5072_v57  ;;  %v6544_v43 = vld [vmem:[%s7127_s2 + $0x130] sm:$0xf0]  ;;  %v5075_v15 = vld [vmem:[%s7127_s2 + $0xf8] sm:$0xf]  ;;  %s9043_s6 = sld [smem:[#allocation19_spill]] (!%p5981_p5) }
  0x6b   : > { %1640 = vmatpush.bf16.msrb.mxu2 %v5168_v58  ;;  %v1033_v58 = vperm.slane %v7366_v54, 0  ;;  %s9045_s20 = sld [smem:[#allocation20_spill]] (!%p5981_p5) }
  0x6c   : > { %1654 = vmatpush.bf16.msrb.mxu3 %v5264_v62  ;;  %v5327_v62 = vld [vmem:[%s7127_s2 + $0x2f0] sm:$0xf] }
  0x6d   : > { %1613 = vmatpush.bf16.msrb.mxu0 %v4964_v7  ;;  %v5328_v7 = vor.u32 %v6601_v2, %v5327_v62  ;;  %v5087_v62 = vld [vmem:[%s7127_s2 + $0x110] sm:$0xf] }
  0x6e   : > { %1627 = vmatpush.bf16.msrb.mxu1 %v5060_v9  ;;  %v5135_v9 = vld [vmem:[%s7127_s2 + $0x170] sm:$0xf] }
  0x6f   : > { %1641 = vmatpush.bf16.msrb.mxu2 %v5156_v10  ;;  %v6553_v10 = vld [vmem:[%s7127_s2 + $0x178] sm:$0xf0] }
  0x70   : > { %1655 = vmatpush.bf16.msrb.mxu3 %v5252_v14  ;;  %v5136_v13 = vor.u32 %v6553_v10, %v5135_v9  ;;  %v6598_v14 = vld [vmem:[%s7127_s2 + $0x2e0] sm:$0xf0]  ;;  %v5171_v9 = vld [vmem:[%s7127_s2 + $0x1b8] sm:$0xf] }
  0x71   : > { %1614 = vmatpush.bf16.msrb.mxu0 %v4952_v20  ;;  %v5316_v17 = vor.u32 %v6598_v14, %v5315_v11  ;;  %v6550_v20 = vld [vmem:[%s7127_s2 + $0x160] sm:$0xf0] }
  0x72   : > { %1628 = vmatpush.bf16.msrb.mxu1 %v5048_v21  ;;  %v6562_v10 = vld [vmem:[%s7127_s2 + $0x1c0] sm:$0xf0] }
  0x73   : > { %1642 = vmatpush.bf16.msrb.mxu2 %v5144_v22  ;;  %v5124_v22 = vor.u32 %v6550_v20, %v5123_v19  ;;  %v6586_v11 = vld [vmem:[%s7127_s2 + $0x280] sm:$0xf0] }
  0x74   : > { %1656 = vmatpush.bf16.msrb.mxu3 %v5240_v23  ;;  %1615 = vmatmul.bf16.vlgmr.msrb.gmra.mxu0 %v7282_v5  ;;  %v5303_v23 = vld [vmem:[%s7127_s2 + $0x2c0] sm:$0xf] }
  0x75   : > { %1629 = vmatmul.bf16.vlgmr.msrb.gmra.mxu1 %v7286_v8  ;;  %1663 = vmatpush.bf16.msra.mxu0 %v5040_v26  ;;  %v5304_v34 = vor.u32 %v6595_v24, %v5303_v23  ;;  %v6583_v23 = vld [vmem:[%s7127_s2 + $0x268] sm:$0xf0] }
  0x76   : > { %1643 = vmatmul.bf16.vlgmr.msrb.gmra.mxu2 %v7278_v63  ;;  %1677 = vmatpush.bf16.msra.mxu1 %v5136_v13 }
  0x77   : > { %1657 = vmatmul.bf16.vlgmr.msrb.gmra.mxu3 %v7284_v6  ;;  %1691 = vmatpush.bf16.msra.mxu2 %v5232_v1 }
  0x78   : > { %1705 = vmatpush.bf16.msra.mxu3 %v5328_v7 }
  0x79   : > { %1664 = vmatpush.bf16.msra.mxu0 %v5028_v29  ;;  %v5111_v29 = vld [vmem:[%s7127_s2 + $0x140] sm:$0xf] }
  0x7a   : > { %1678 = vmatpush.bf16.msra.mxu1 %v5124_v22  ;;  %v5112_v37 = vor.u32 %v6547_v30, %v5111_v29  ;;  %v6559_v22 = vld [vmem:[%s7127_s2 + $0x1a8] sm:$0xf0] }
  0x7b   : > { %1692 = vmatpush.bf16.msra.mxu2 %v5220_v12 }
  0x7c   : > { %1706 = vmatpush.bf16.msra.mxu3 %v5316_v17  ;;  %v5172_v17 = vor.u32 %v6562_v10, %v5171_v9 }
  0x7d   : > { %1665 = vmatpush.bf16.msra.mxu0 %v5016_v32 }
  0x7e   : > { %1679 = vmatpush.bf16.msra.mxu1 %v5112_v37 }
  0x7f   : > { %1693 = vmatpush.bf16.msra.mxu2 %v5208_v31 }
  0x80   : > { %1707 = vmatpush.bf16.msra.mxu3 %v5304_v34 }
  0x81   : > { %1666 = vmatpush.bf16.msra.mxu0 %v5004_v35  ;;  %v5195_v35 = vld [vmem:[%s7127_s2 + $0x1e8] sm:$0xf] }
  0x82   : > { %v5196_v45 = vor.u32 %v6568_v36, %v5195_v35  ;;  %v5243_v35 = vld [vmem:[%s7127_s2 + $0x248] sm:$0xf] }
  0x84   : > { %1694 = vmatpush.bf16.msra.mxu2 %v5196_v45 }
  0x85   : > { %1667 = vmatpush.bf16.msra.mxu0 %v4992_v38  ;;  %v5291_v38 = vld [vmem:[%s7127_s2 + $0x2a8] sm:$0xf] }
  0x89   : > { %1668 = vmatpush.bf16.msra.mxu0 %v4980_v41 }
  0x8d   : > { %1669 = vmatpush.bf16.msra.mxu0 %v4968_v44 }
  0x91   : > { %1670 = vmatpush.bf16.msra.mxu0 %v4956_v48  ;;  %v5292_v48 = vor.u32 %v6592_v39, %v5291_v38  ;;  %v6580_v38 = vld [vmem:[%s7127_s2 + $0x250] sm:$0xf0]  ;;  %v5051_v39 = vld [vmem:[%s7127_s2 + $0xc8] sm:$0xf] }
  0x93   : > { %1708 = vmatpush.bf16.msra.mxu3 %v5292_v48 }
  0x94   : > { %1671 = vmatmul.bf16.vlgmr.msra.gmra.mxu0 %v7282_v5 }
  0xd1   : > { %v1560_v47 = vpop.f32.mrf.mxu0 }
  0xd2   : > { %v1574_v49 = vpop.f32.mrf.mxu1  ;;  %v1561_v25 = vadd.f32 %v1560_v47, %v1033_v58 }
  0xd4   : > { %v1575_v40 = vadd.f32 %v1574_v49, %v1561_v25  ;;  %v5100_v49 = vor.u32 %v6544_v43, %v5099_v42  ;;  %v5244_v42 = vor.u32 %v6580_v38, %v5243_v35 }
  0xd6   : > { %1680 = vmatpush.bf16.msra.mxu1 %v5100_v49 }
  0xd9   : > { %v7361_v50 = vpop.f32.mrf.mxu2  ;;  %v1562_v52 = vpop.f32.mrf.mxu0 }
  0xda   : > { %v7363_v51 = vpop.f32.mrf.mxu3  ;;  %v1576_v53 = vpop.f32.mrf.mxu1  ;;  %v1563_v26 = vadd.f32 %v1562_v52, %v1033_v58  ;;  %v5183_v52 = vld [vmem:[%s7127_s2 + $0x1d0] sm:$0xf]  ;;  %v6589_v58 = vld [vmem:[%s7127_s2 + $0x298] sm:$0xf0] }
  0xdc   : > { %v1577_v41 = vadd.f32 %v1576_v53, %v1563_v26  ;;  %v5279_v53 = vld [vmem:[%s7127_s2 + $0x290] sm:$0xf] }
  0xdd   : > { %v5280_v7 = vor.u32 %v6589_v58, %v5279_v53 }
  0xdf   : > { %1709 = vmatpush.bf16.msra.mxu3 %v5280_v7 }
  0xe1   : > { %v7369_v56 = vpop.f32.mrf.mxu2 }
  0xe2   : > { %v7371_v57 = vpop.f32.mrf.mxu3  ;;  %v1591_v60 = vadd.f32 %v7369_v56, %v1577_v41  ;;  %v5267_v56 = vld [vmem:[%s7127_s2 + $0x278] sm:$0xf] }
  0xe3   : > { %v5268_v20 = vor.u32 %v6586_v11, %v5267_v56 }
  0xe4   : > { %v1605_v13 = vadd.f32 %v7371_v57, %v1591_v60  ;;  %v5255_v57 = vld [vmem:[%s7127_s2 + $0x260] sm:$0xf] }
  0xe5   : > { %1710 = vmatpush.bf16.msra.mxu3 %v5268_v20  ;;  %v5256_v31 = vor.u32 %v6583_v23, %v5255_v57 }
  0xe6   : > { %v1720_v25 = vpack.c.bf16 %v1605_v13, %v1605_v13 }
  0xe8   : > { %v1760_v37 = vunpack.c.l.b16 %v1720_v25 }
  0xe9   : > { %1711 = vmatpush.bf16.msra.mxu3 %v5256_v31 }
  0xed   : > { %1712 = vmatpush.bf16.msra.mxu3 %v5244_v42  ;;  %v5383_v42 = vld [vmem:[%s7122_s24 + $0xe0] sm:$0xf] }
  0xf0   : > { %1713 = vmatmul.bf16.vlgmr.msra.gmra.mxu3 %v7284_v6 }
  0xf1   : > { %v1616_v5 = vpop.f32.mrf.mxu0 }
  0xf2   : > { %v1617_v59 = vadd.f32 %v1616_v5, %v1034_v55  ;;  %v1630_v0 = vpop.f32.mrf.mxu1 }
  0xf4   : > { %v1631_v16 = vadd.f32 %v1630_v0, %v1617_v59  ;;  %v1589_v59 = vadd.f32 %v7361_v50, %v1575_v40  ;;  %v6541_v0 = vld [vmem:[%s7127_s2 + $0x118] sm:$0xf0]  ;;  %v6532_v40 = vld [vmem:[%s7127_s2 + $0xd0] sm:$0xf0] }
  0xf5   : > { %v5088_v50 = vor.u32 %v6541_v0, %v5087_v62  ;;  %v5052_v43 = vor.u32 %v6532_v40, %v5051_v39 }
  0xf6   : > { %v1603_v12 = vadd.f32 %v7363_v51, %v1589_v59  ;;  %v898_v59 = vld [vmem:[%s9033_s22 + $0x8] sm:$0xff] }
  0xf7   : > { %1681 = vmatpush.bf16.msra.mxu1 %v5088_v50 }
  0xf8   : > { %v1719_v24 = vpack.c.bf16 %v1603_v12, %v1603_v12 }
  0xf9   : > { %v1644_v21 = vpop.f32.mrf.mxu2  ;;  %v1618_v28 = vpop.f32.mrf.mxu0 }
  0xfa   : > { %v1658_v27 = vpop.f32.mrf.mxu3  ;;  %v1645_v32 = vadd.f32 %v1644_v21, %v1631_v16  ;;  %v1619_v33 = vadd.f32 %v1618_v28, %v1034_v55  ;;  %v1632_v44 = vpop.f32.mrf.mxu1  ;;  %v6565_v55 = vld [vmem:[%s7127_s2 + $0x1d8] sm:$0xf0]  ;;  %v6538_v16 = vld [vmem:[%s7127_s2 + $0x100] sm:$0xf0]  ;;  %v5159_v21 = vld [vmem:[%s7127_s2 + $0x1a0] sm:$0xf]  ;;  %v1759_v36 = vunpack.c.l.b16 %v1719_v24 }
  0xfb   : > { %v5184_v2 = vor.u32 %v6565_v55, %v5183_v52  ;;  %v5076_v51 = vor.u32 %v6538_v16, %v5075_v15  ;;  %v6535_v28 = vld [vmem:[%s7127_s2 + $0xe8] sm:$0xf0]  ;;  %v5160_v29 = vor.u32 %v6559_v22, %v5159_v21  ;;  %v1035_v55 = vperm.slane %v7366_v54, 2 }
  0xfc   : > { %v1659_v46 = vadd.f32 %v1658_v27, %v1645_v32  ;;  %v1633_v47 = vadd.f32 %v1632_v44, %v1619_v33  ;;  %v5063_v27 = vld [vmem:[%s7127_s2 + $0xe0] sm:$0xf]  ;;  %v5147_v32 = vld [vmem:[%s7127_s2 + $0x188] sm:$0xf]  ;;  %v6556_v33 = vld [vmem:[%s7127_s2 + $0x190] sm:$0xf0]  ;;  %v1761_v44 = vpack.c.b16 %v1760_v37, %v1759_v36 }
  0xfd   : > { %1695 = vmatpush.bf16.msra.mxu2 %v5184_v2  ;;  %1682 = vmatpush.bf16.msra.mxu1 %v5076_v51  ;;  %v5064_v34 = vor.u32 %v6535_v28, %v5063_v27  ;;  %v5148_v41 = vor.u32 %v6556_v33, %v5147_v32 }
  0xfe   : > { %v1721_v3 = vpack.c.bf16 %v1659_v46, %v1659_v46 }
 0x100   : > { %v1764_v18 = vunpack.c.l.b16 %v1721_v3 }
 0x101   : > { %v1646_v5 = vpop.f32.mrf.mxu2  ;;  %1696 = vmatpush.bf16.msra.mxu2 %v5172_v17  ;;  %1683 = vmatpush.bf16.msra.mxu1 %v5064_v34 }
 0x102   : > { %v1647_v61 = vadd.f32 %v1646_v5, %v1633_v47  ;;  %v1660_v1 = vpop.f32.mrf.mxu3  ;;  %v897_v5 = vld [vmem:[%s9033_s22] sm:$0xff] }
 0x104   : > { %v1661_v4 = vadd.f32 %v1660_v1, %v1647_v61 }
 0x105   : > { %1697 = vmatpush.bf16.msra.mxu2 %v5160_v29  ;;  %1684 = vmatpush.bf16.msra.mxu1 %v5052_v43  ;;  %v6632_v43 = vld [vmem:[%s7122_s24 + $0xec] sm:$0xf0] }
 0x106   : > { %v1722_v14 = vpack.c.bf16 %v1661_v4, %v1661_v4 }
 0x108   : > { %v1765_v19 = vunpack.c.l.b16 %v1722_v14  ;;  %1685 = vmatmul.bf16.vlgmr.msra.gmra.mxu1 %v7286_v8 }
 0x109   : > { %1698 = vmatpush.bf16.msra.mxu2 %v5148_v41 }
 0x10a   : > { %v1766_v26 = vpack.c.b16 %v1765_v19, %v1764_v18 }
 0x10c   : > { %1838 = vrot.lane.b32.xlu0 %v1766_v26, %s6988_s19  ;;  %v1772_v30 = vsel %vm1767_vm0, %v1766_v26, 0  ;;  %1699 = vmatmul.bf16.vlgmr.msra.gmra.mxu2 %v7278_v63 }
 0x10d   : > { %1781 = vmatpush.bf16.xpose.msrb.mxu0 %v1772_v30 }
 0x111   : > { %v1672_v45 = vpop.f32.mrf.mxu0 }
 0x112   : > { %v1673_v6 = vadd.f32 %v1672_v45, %v1035_v55  ;;  %v5384_v45 = vor.u32 %v6632_v43, %v5383_v42  ;;  %v5453_v43 = vld [vmem:[%s7122_s24 + $0x70] sm:$0xf0] }
 0x114   : > { %1836 = vrot.lane.b32.xlu0 %v1761_v44, %s6988_s19  ;;  %5329 = vmatmul.msk.bf16.vlgmr.msrb.gmra.mxu0 %vm1767_vm0, %v1761_v44  ;;  %v6630_v44 = vld [vmem:[%s7122_s24 + $0xe4] sm:$0xf] }
 0x115   : > { %1991 = vmatpush.bf16.msra.mxu0 %v5384_v45  ;;  %v6617_v45 = vld [vmem:[%s7122_s24 + $0x74] sm:$0xf0] }
 0x119   : > { %v1674_v52 = vpop.f32.mrf.mxu0 }
 0x11a   : > { %v1675_v54 = vadd.f32 %v1674_v52, %v1035_v55 }
 0x173   : > { %v1714_v1 = vpop.f32.mrf.mxu3 }
 0x17b   : > { %v1716_v56 = vpop.f32.mrf.mxu3 }
 0x17e   : > { %v1839_v46 = vpop.permute.xlu0 %1838 }
 0x17f   : > { %v1844_v47 = vsel %vm1767_vm0, %v1839_v46, 0  ;;  %v5385_v46 = vld [vmem:[%s7122_s24 + $0xf0] sm:$0xf0] }
 0x180   : > { %1853 = vmatpush.bf16.xpose.msrb.mxu2 %v1844_v47  ;;  %v5391_v47 = vld [vmem:[%s7122_s24 + $0xe8] sm:$0xf]  ;;  %v5388_v52 = vor.u32 %v6630_v44, %v5385_v46 }
 0x181   : > { %v5459_v44 = vld [vmem:[%s7122_s24 + $0x68] sm:$0xf] }
 0x185   : > { %v1686_v53 = vpop.f32.mrf.mxu1 }
 0x186   : > { %v1837_v48 = vpop.permute.xlu0 %1836  ;;  %v1687_v58 = vadd.f32 %v1686_v53, %v1673_v6 }
 0x187   : > { %5331 = vmatmul.msk.bf16.vlgmr.msrb.gmra.mxu2 %vm1767_vm0, %v1837_v48  ;;  %v6633_v48 = vld [vmem:[%s7122_s24 + $0xf4] sm:$0xf0] }
 0x188   : > { %v5392_v55 = vor.u32 %v6633_v48, %v5391_v47  ;;  %v5460_v47 = vor.u32 %v6617_v45, %v5459_v44  ;;  %v6615_v48 = vld [vmem:[%s7122_s24 + $0x6c] sm:$0xf] }
 0x18a   : > { %2019 = vmatpush.bf16.msra.mxu2 %v5392_v55  ;;  %v5435_v55 = vld [vmem:[%s7122_s24 + $0x40] sm:$0xf] }
 0x18d   : > { %v1688_v3 = vpop.f32.mrf.mxu1 }
 0x18e   : > { %v1689_v7 = vadd.f32 %v1688_v3, %v1675_v54 }
 0x18f   : > { %v1700_v61 = vpop.f32.mrf.mxu2 }
 0x190   : > { %v1701_v0 = vadd.f32 %v1700_v61, %v1687_v58 }
 0x191   : > { %v1783_v63 = vpop.f32.mrf.mxu0 }
 0x192   : > { %v1784_v49 = vadd.f32 %v1783_v63, %v897_v5  ;;  %v1715_v4 = vadd.f32 %v1714_v1, %v1701_v0  ;;  %v5393_v63 = vld [vmem:[%s7122_s24 + $0xf8] sm:$0xf0] }
 0x194   : > { %v1789_v8 = vsel %vm1788_vm1, %v1784_v49, -inf  ;;  %v1723_v10 = vpack.c.bf16 %v1715_v4, %v1715_v4  ;;  %v5367_v4 = vld [vmem:[%s7122_s24 + $0xc0] sm:$0xf] }
 0x195   : > { %1790 = vmax.xlane.f32.xlu2 %v1789_v8 }
 0x196   : > { %v1814_v12 = vunpack.c.l.b16 %v1723_v10 }
 0x197   : > { %v1702_v9 = vpop.f32.mrf.mxu2 }
 0x198   : > { %v1703_v50 = vadd.f32 %v1702_v9, %v1689_v7  ;;  %v6628_v7 = vld [vmem:[%s7122_s24 + $0xcc] sm:$0xf0]  ;;  %v6626_v9 = vld [vmem:[%s7122_s24 + $0xc4] sm:$0xf] }
 0x199   : > { %v1785_v60 = vpop.f32.mrf.mxu0  ;;  %v5368_v10 = vor.u32 %v6628_v7, %v5367_v4  ;;  %v5421_v4 = vld [vmem:[%s7122_s24 + $0x30] sm:$0xf0]  ;;  %v5427_v7 = vld [vmem:[%s7122_s24 + $0x28] sm:$0xf] }
 0x19a   : > { %v1786_v62 = vadd.f32 %v1785_v60, %v898_v59  ;;  %v1717_v11 = vadd.f32 %v1716_v56, %v1703_v50  ;;  %v5369_v50 = vld [vmem:[%s7122_s24 + $0xd0] sm:$0xf0]  ;;  %v5375_v56 = vld [vmem:[%s7122_s24 + $0xc8] sm:$0xf] }
 0x19b   : > { %1992 = vmatpush.bf16.msra.mxu0 %v5368_v10 }
 0x19c   : > { %v1792_v2 = vsel %vm1788_vm1, %v1786_v62, -inf  ;;  %v1724_v13 = vpack.c.bf16 %v1717_v11, %v1717_v11  ;;  %v6629_v11 = vld [vmem:[%s7122_s24 + $0xd4] sm:$0xf0] }
 0x19d   : > { %1793 = vmax.xlane.f32.xlu2 %v1792_v2 }
 0x19e   : > { %v1815_v14 = vunpack.c.l.b16 %v1724_v13  ;;  %v5376_v13 = vor.u32 %v6629_v11, %v5375_v56  ;;  %v6607_v56 = vld [vmem:[%s7122_s24 + $0x2c] sm:$0xf]  ;;  %v5429_v11 = vld [vmem:[%s7122_s24 + $0x38] sm:$0xf0] }
 0x1a0   : > { %v1816_v15 = vpack.c.b16 %v1815_v14, %v1814_v12  ;;  %v5372_v12 = vor.u32 %v6626_v9, %v5369_v50  ;;  %v6627_v14 = vld [vmem:[%s7122_s24 + $0xcc] sm:$0xf]  ;;  %2020 = vmatpush.bf16.msra.mxu2 %v5376_v13  ;;  %v6609_v9 = vld [vmem:[%s7122_s24 + $0x34] sm:$0xf0]  ;;  %v5432_v13 = vor.u32 %v6607_v56, %v5429_v11 }
 0x1a1   : > { %v5428_v50 = vor.u32 %v6609_v9, %v5427_v7 }
 0x1a2   : > { %1828 = vmatpush.bf16.msrb.mxu1 %v1816_v15 }
 0x1a6   : > { %2005 = vmatpush.bf16.msra.mxu1 %v5388_v52  ;;  %v5461_v52 = vld [vmem:[%s7122_s24 + $0x78] sm:$0xf0] }
 0x1aa   : > { %2006 = vmatpush.bf16.msra.mxu1 %v5372_v12  ;;  %v5403_v12 = vld [vmem:[%s7122_s24] sm:$0xf] }
 0x1b5   : > { %1883 = vrot.lane.b32.xlu2 %v1816_v15, %s6988_s19  ;;  %v5377_v15 = vld [vmem:[%s7122_s24 + $0xd8] sm:$0xf0] }
 0x208   : > { %v1791_v16 = vpop.xlane.xlu2 %1790 }
 0x209   : > { %v1795_v29 = vsub.f32 %v1784_v49, %v1791_v16  ;;  %v5351_v16 = vld [vmem:[%s7122_s24 + $0xa0] sm:$0xf] }
 0x20a   : > { %v1855_v17 = vpop.f32.mrf.mxu2 }
 0x20b   : > { %v1856_v18 = vadd.f32 %v1855_v17, %v897_v5  ;;  %v1797_v32 = vmul.f32 1.442695, %v1795_v29  ;;  %v6631_v5 = vld [vmem:[%s7122_s24 + $0xec] sm:$0xf]  ;;  %v5380_v17 = vor.u32 %v6627_v14, %v5377_v15  ;;  %v6618_v29 = vld [vmem:[%s7122_s24 + $0x84] sm:$0xf] }
 0x20c   : > { %v5396_v6 = vor.u32 %v6631_v5, %v5393_v63  ;;  %v5464_v5 = vor.u32 %v6615_v48, %v5461_v52  ;;  %v6612_v63 = vld [vmem:[%s7122_s24 + $0x4c] sm:$0xf0]  ;;  %v6602_v15 = vld [vmem:[%s7122_s24 + $0x4] sm:$0xf] }
 0x20d   : > { %v1860_v19 = vsel %vm1788_vm1, %v1856_v18, -inf  ;;  %v6604_v14 = vld [vmem:[%s7122_s24 + $0xc] sm:$0xf0] }
 0x20e   : > { %1861 = vmax.xlane.f32.xlu1 %v1860_v19  ;;  %v6622_v19 = vld [vmem:[%s7122_s24 + $0xa4] sm:$0xf] }
 0x210   : > { %v1794_v20 = vpop.xlane.xlu2 %1793 }
 0x211   : > { %v1796_v34 = vsub.f32 %v1786_v62, %v1794_v20  ;;  %v5353_v20 = vld [vmem:[%s7122_s24 + $0xb0] sm:$0xf0] }
 0x212   : > { %v1857_v21 = vpop.f32.mrf.mxu2 }
 0x213   : > { %v1858_v22 = vadd.f32 %v1857_v21, %v898_v59  ;;  %v1799_v36 = vmul.f32 1.442695, %v1796_v34 }
 0x215   : > { %v1863_v51 = vsel %vm1788_vm1, %v1858_v22, -inf }
 0x216   : > { %1864 = vmax.xlane.f32.xlu1 %v1863_v51  ;;  %v5359_v51 = vld [vmem:[%s7122_s24 + $0xa8] sm:$0xf] }
 0x218   : > { %v1884_v57 = vpop.permute.xlu2 %1883 }
 0x219   : > { %1896 = vmatpush.bf16.msrb.mxu3 %v1884_v57  ;;  %v6625_v57 = vld [vmem:[%s7122_s24 + $0xb4] sm:$0xf0] }
 0x21d   : > { %2033 = vmatpush.bf16.msra.mxu3 %v5396_v6  ;;  %v6610_v6 = vld [vmem:[%s7122_s24 + $0x44] sm:$0xf] }
 0x221   : > { %2034 = vmatpush.bf16.msra.mxu3 %v5380_v17  ;;  %v5404_v17 = vor.u32 %v6604_v14, %v5403_v12  ;;  %v6943_v12 = vld [vmem:[#allocation2 + $0x20] sm:$0xff] }
 0x281   : > { %v1862_v23 = vpop.xlane.xlu1 %1861 }
 0x282   : > { %v1866_v24 = vsub.f32 %v1856_v18, %v1862_v23  ;;  %v6624_v18 = vld [vmem:[%s7122_s24 + $0xac] sm:$0xf0]  ;;  %v6623_v23 = vld [vmem:[%s7122_s24 + $0xac] sm:$0xf] }
 0x283   : > { %v5352_v21 = vor.u32 %v6624_v18, %v5351_v16  ;;  %v5405_v16 = vld [vmem:[%s7122_s24 + $0x10] sm:$0xf0] }
 0x284   : > { %v1868_v25 = vmul.f32 1.442695, %v1866_v24  ;;  %v5360_v24 = vor.u32 %v6625_v57, %v5359_v51  ;;  %v5408_v18 = vor.u32 %v6602_v15, %v5405_v16  ;;  %v5413_v51 = vld [vmem:[%s7122_s24 + $0x18] sm:$0xf0] }
 0x285   : > { %1993 = vmatpush.bf16.msra.mxu0 %v5352_v21  ;;  %v6603_v21 = vld [vmem:[%s7122_s24 + $0xc] sm:$0xf] }
 0x286   : > { %6912 = vpow2.f32 %v1868_v25  ;;  %v5361_v25 = vld [vmem:[%s7122_s24 + $0xb8] sm:$0xf0]  ;;  %2021 = vmatpush.bf16.msra.mxu2 %v5360_v24  ;;  %v5416_v57 = vor.u32 %v6603_v21, %v5413_v51 }
 0x289   : > { %v1865_v26 = vpop.xlane.xlu1 %1864 }
 0x28a   : > { %v1867_v27 = vsub.f32 %v1858_v22, %v1865_v26  ;;  %v5356_v22 = vor.u32 %v6622_v19, %v5353_v20  ;;  %v5364_v26 = vor.u32 %v6623_v23, %v5361_v25  ;;  %v5411_v19 = vld [vmem:[%s7122_s24 + $0x8] sm:$0xf]  ;;  %v6605_v20 = vld [vmem:[%s7122_s24 + $0x14] sm:$0xf0] }
 0x28c   : > { %v6913_v28 = vpop.eup %6912  ;;  %v1870_v30 = vmul.f32 1.442695, %v1867_v27  ;;  %2007 = vmatpush.bf16.msra.mxu1 %v5356_v22  ;;  %v5335_v27 = vld [vmem:[%s7122_s24 + $0x80] sm:$0xf]  ;;  %2035 = vmatpush.bf16.msra.mxu3 %v5364_v26  ;;  %v5412_v22 = vor.u32 %v6605_v20, %v5411_v19  ;;  %v6944_v19 = vld [vmem:[#allocation2 + $0x28] sm:$0xff] }
 0x28d   : > { %v1872_v31 = vsel %vm1788_vm1, %v6913_v28, 0.0 }
 0x28e   : > { %6914 = vpow2.f32 %v1870_v30  ;;  %1873 = vadd.xlane.f32.xlu0 %v1872_v31  ;;  %v5337_v31 = vld [vmem:[%s7122_s24 + $0x90] sm:$0xf0] }
 0x28f   : > { %6916 = vpow2.f32 %v1797_v32  ;;  %v5343_v32 = vld [vmem:[%s7122_s24 + $0x88] sm:$0xf]  ;;  %v5340_v34 = vor.u32 %v6618_v29, %v5337_v31 }
 0x290   : > { %6918 = vpow2.f32 %v1799_v36  ;;  %v6619_v36 = vld [vmem:[%s7122_s24 + $0x8c] sm:$0xf] }
 0x291   : > { %2008 = vmatpush.bf16.msra.mxu1 %v5340_v34 }
 0x294   : > { %v6915_v33 = vpop.eup %6914 }
 0x295   : > { %v1875_v35 = vsel %vm1788_vm1, %v6915_v33, 0.0  ;;  %v6917_v37 = vpop.eup %6916 }
 0x296   : > { %1876 = vadd.xlane.f32.xlu1 %v1875_v35  ;;  %v1801_v38 = vsel %vm1788_vm1, %v6917_v37, 0.0  ;;  %v6919_v39 = vpop.eup %6918 }
 0x297   : > { %v1804_v40 = vsel %vm1788_vm1, %v6919_v39, 0.0 }
 0x29e   : > { %1802 = vadd.xlane.f32.xlu1 %v1801_v38 }
 0x2a6   : > { %1805 = vadd.xlane.f32.xlu1 %v1804_v40  ;;  %v6616_v40 = vld [vmem:[%s7122_s24 + $0x6c] sm:$0xf0] }
 0x301   : > { %v1874_v41 = vpop.xlane.xlu0 %1873 }
 0x302   : > { %6920 = vrcp.f32 %v1874_v41  ;;  %v6614_v41 = vld [vmem:[%s7122_s24 + $0x64] sm:$0xf] }
 0x303   : > { %v5456_v46 = vor.u32 %v6614_v41, %v5453_v43 }
 0x308   : > { %v6921_v8 = vpop.eup %6920 }
 0x309   : > { %v1877_v49 = vpop.xlane.xlu1 %1876  ;;  %v1880_v58 = vmul.f32 %v6921_v8, %v6913_v28  ;;  %v6620_v28 = vld [vmem:[%s7122_s24 + $0x8c] sm:$0xf0]  ;;  %v5436_v8 = vor.u32 %v6612_v63, %v5435_v55  ;;  %v6939_v63 = vld [vmem:[#allocation2] sm:$0xff] }
 0x30a   : > { %6922 = vrcp.f32 %v1877_v49  ;;  %v5336_v30 = vor.u32 %v6620_v28, %v5335_v27  ;;  %v5437_v49 = vld [vmem:[%s7122_s24 + $0x50] sm:$0xf0] }
 0x30b   : > { %v6938_v55 = vld [vmem:[#allocation2 + $0x30] sm:$0xff] }
 0x30c   : > { %1994 = vmatpush.bf16.msra.mxu0 %v5336_v30 }
 0x310   : > { %v6923_v53 = vpop.eup %6922 }
 0x311   : > { %v1881_v59 = vmul.f32 %v6923_v53, %v6915_v33  ;;  %v1803_v60 = vpop.xlane.xlu1 %1802  ;;  %v6621_v33 = vld [vmem:[%s7122_s24 + $0x94] sm:$0xf0]  ;;  %v5440_v53 = vor.u32 %v6610_v6, %v5437_v49 }
 0x312   : > { %6924 = vrcp.f32 %v1803_v60  ;;  %v5344_v35 = vor.u32 %v6621_v33, %v5343_v32  ;;  %v6611_v60 = vld [vmem:[%s7122_s24 + $0x4c] sm:$0xf] }
 0x313   : > { %v1882_v61 = vpack.c.bf16 %v1881_v59, %v1880_v58  ;;  %v5443_v58 = vld [vmem:[%s7122_s24 + $0x48] sm:$0xf]  ;;  %v6613_v59 = vld [vmem:[%s7122_s24 + $0x54] sm:$0xf0] }
 0x314   : > { %2022 = vmatpush.bf16.msra.mxu2 %v5344_v35  ;;  %v2182_v35 = vld [vmem:[%s9034_s18] sm:$0xf] }
 0x315   : > { %5332 = vmatmul.msk.bf16.vlgmr.msrb.gmra.mxu3 %vm1788_vm1, %v1882_v61  ;;  %v5444_v61 = vor.u32 %v6613_v59, %v5443_v58  ;;  %v2185_v41 = vperm.slane %v2182_v35, 1 }
 0x318   : > { %v6925_v62 = vpop.eup %6924  ;;  %2158 = vmatpush.bf16.msrb.mxu2 %v5460_v47  ;;  %v2187_v47 = vperm.slane %v2182_v35, 3 }
 0x319   : > { %v1806_v54 = vpop.xlane.xlu1 %1805  ;;  %v1809_v1 = vmul.f32 %v6925_v62, %v6917_v37  ;;  %v5345_v37 = vld [vmem:[%s7122_s24 + $0x98] sm:$0xf0] }
 0x31a   : > { %6926 = vrcp.f32 %v1806_v54  ;;  %v5348_v38 = vor.u32 %v6619_v36, %v5345_v37  ;;  %v5445_v54 = vld [vmem:[%s7122_s24 + $0x58] sm:$0xf0] }
 0x31b   : > { %v5448_v62 = vor.u32 %v6611_v60, %v5445_v54 }
 0x31c   : > { %2036 = vmatpush.bf16.msra.mxu3 %v5348_v38  ;;  %2159 = vmatpush.bf16.msrb.mxu2 %v5444_v61 }
 0x320   : > { %v6927_v0 = vpop.eup %6926  ;;  %2172 = vmatpush.bf16.msrb.mxu3 %v5464_v5  ;;  %2160 = vmatpush.bf16.msrb.mxu2 %v5428_v50 }
 0x321   : > { %v1810_v2 = vmul.f32 %v6927_v0, %v6919_v39  ;;  %v5451_v39 = vld [vmem:[%s7122_s24 + $0x60] sm:$0xf] }
 0x322   : > { %v5452_v42 = vor.u32 %v6616_v40, %v5451_v39  ;;  %v5419_v0 = vld [vmem:[%s7122_s24 + $0x20] sm:$0xf]  ;;  %v2184_v39 = vperm.slane %v2182_v35, 0 }
 0x323   : > { %v1811_v3 = vpack.c.bf16 %v1810_v2, %v1809_v1  ;;  %v6608_v1 = vld [vmem:[%s7122_s24 + $0x2c] sm:$0xf0]  ;;  %v6606_v2 = vld [vmem:[%s7122_s24 + $0x24] sm:$0xf] }
 0x324   : > { %2130 = vmatpush.bf16.msrb.mxu0 %v5452_v42  ;;  %2173 = vmatpush.bf16.msrb.mxu3 %v5448_v62  ;;  %v5424_v10 = vor.u32 %v6606_v2, %v5421_v4  ;;  %v6941_v4 = vld [vmem:[#allocation2 + $0x10] sm:$0xff] }
 0x325   : > { %5330 = vmatmul.msk.bf16.vlgmr.msrb.gmra.mxu1 %vm1788_vm1, %v1811_v3  ;;  %v5420_v3 = vor.u32 %v6608_v1, %v5419_v0  ;;  %2161 = vmatpush.bf16.msrb.mxu2 %v5412_v22  ;;  %v6940_v0 = vld [vmem:[#allocation2 + $0x18] sm:$0xff] }
 0x326   : > { %2144 = vmatpush.bf16.msrb.mxu1 %v5456_v46  ;;  %v2186_v46 = vperm.slane %v2182_v35, 2  ;;  %v6945_v22 = vld [vmem:[#allocation2 + $0x38] sm:$0xff] }
 0x328   : > { %2131 = vmatpush.bf16.msrb.mxu0 %v5436_v8  ;;  %2174 = vmatpush.bf16.msrb.mxu3 %v5432_v13 }
 0x32a   : > { %2145 = vmatpush.bf16.msrb.mxu1 %v5440_v53 }
 0x32c   : > { %2132 = vmatpush.bf16.msrb.mxu0 %v5420_v3  ;;  %2175 = vmatpush.bf16.msrb.mxu3 %v5416_v57 }
 0x32e   : > { %2146 = vmatpush.bf16.msrb.mxu1 %v5424_v10  ;;  %v6942_v10 = vld [vmem:[#allocation2 + $0x8] sm:$0xff] }
 0x330   : > { %2133 = vmatpush.bf16.msrb.mxu0 %v5404_v17 }
 0x332   : > { %2147 = vmatpush.bf16.msrb.mxu1 %v5408_v18 }
 0x398   : > { %v1898_v23 = vpop.f32.mrf.mxu3 }
 0x3a0   : > { %v1900_v24 = vpop.f32.mrf.mxu3 }
 0x3a1   : > { %v1903_v25 = vpack.c.bf16 %v1900_v24, %v1898_v23  ;;  %v6989_v24 = vmov 512.0  }
 0x3a2   : > { %v1830_v26 = vpop.f32.mrf.mxu1  ;;  %6928 = vrcp.f32 %v6989_v24  ;;  %v6661_v24 = vld [vmem:[%s7151_s16 + $0xd4] sm:$0xf0] }
 0x3a3   : > { %5397 = vmatmul.msk.bf16.vlgmr.msra.gmra.mxu0 %vm1767_vm0, %v1903_v25  ;;  %5398 = vmatmul.msk.bf16.vlgmr.msra.gmra.mxu1 %vm1767_vm0, %v1903_v25 }
 0x3a4   : > { %5399 = vmatmul.msk.bf16.vlgmr.msra.gmra.mxu2 %vm1767_vm0, %v1903_v25  ;;  %5400 = vmatmul.msk.bf16.vlgmr.msra.gmra.mxu3 %vm1767_vm0, %v1903_v25 }
 0x3a8   : > { %v6929_v25 = vpop.eup %6928 }
 0x3a9   : > { %vm2225_vm2 = vweird.f32 %v6929_v25 }
 0x3aa   : > { %v1832_v27 = vpop.f32.mrf.mxu1 }
 0x3ab   : > { %v1835_v28 = vpack.c.bf16 %v1832_v27, %v1830_v26  ;;  %v2221_v26 = vmul.f32 512.0, %v6929_v25 }
 0x3ad   : > { %v2222_v27 = vsub.f32 1.0, %v2221_v26  ;;  %v6677_v26 = vld [vmem:[%s7151_s16 + $0x154] sm:$0xf0] }
 0x3b3   : > { %5465 = vmatmul.msk.bf16.vlgmr.msrb.gmra.mxu0 %vm1767_vm0, %v1835_v28  ;;  %5466 = vmatmul.msk.bf16.vlgmr.msrb.gmra.mxu1 %vm1767_vm0, %v1835_v28 }
 0x3b4   : > { %5467 = vmatmul.msk.bf16.vlgmr.msrb.gmra.mxu2 %vm1767_vm0, %v1835_v28  ;;  %5468 = vmatmul.msk.bf16.vlgmr.msrb.gmra.mxu3 %vm1767_vm0, %v1835_v28  ;;  %v895_v28 = vld [vmem:[%s9035_s3] sm:$0xff] }
 0x420   : > { %v1996_v29 = vpop.f32.mrf.mxu0  ;;  %v2010_v30 = vpop.f32.mrf.mxu1 }
 0x427   : > { %v2024_v31 = vpop.f32.mrf.mxu2  ;;  %v2038_v32 = vpop.f32.mrf.mxu3 }
 0x428   : > { %v1998_v33 = vpop.f32.mrf.mxu0  ;;  %v2012_v34 = vpop.f32.mrf.mxu1 }
 0x42f   : > { %v2026_v36 = vpop.f32.mrf.mxu2  ;;  %v2040_v37 = vpop.f32.mrf.mxu3 }
 0x430   : > { %v2135_v38 = vpop.f32.mrf.mxu0  ;;  %v2149_v40 = vpop.f32.mrf.mxu1 }
 0x431   : > { %v2136_v42 = vadd.f32 %v2135_v38, %v1996_v29  ;;  %v2150_v43 = vadd.f32 %v2149_v40, %v2010_v30  ;;  %v2223_v29 = vmul.f32 %v6929_v25, %v2222_v27  ;;  %v6990_v30 = vmov 0  }
 0x432   : > { %6910 = vset.pattern.permute.xlu0 %v6990_v30  ;;  %6911 = vset.pattern.permute.xlu1 %v6990_v30  ;;  %v6693_v30 = vld [vmem:[%s7151_s16 + $0x1d4] sm:$0xf0] }
 0x433   : > { %v2192_v44 = vadd.f32 %v2184_v39, %v2136_v42  ;;  %v2193_v45 = vadd.f32 %v2185_v41, %v2150_v43  ;;  %2323 = vperm.xlu0 %6910, %v895_v28  }
 0x435   : > { %v2200_v5 = vadd.f32 %v6938_v55, %v2192_v44  ;;  %v2201_v6 = vadd.f32 %v6939_v63, %v2193_v45 }
 0x437   : > { %v2163_v48 = vpop.f32.mrf.mxu2  ;;  %v2177_v52 = vpop.f32.mrf.mxu3  ;;  %v2210_v3 = vadd.f32 %v2201_v6, %v2200_v5 }
 0x438   : > { %v2164_v49 = vadd.f32 %v2163_v48, %v2024_v31  ;;  %v2178_v8 = vadd.f32 %v2177_v52, %v2038_v32  ;;  %v2137_v53 = vpop.f32.mrf.mxu0  ;;  %v2151_v58 = vpop.f32.mrf.mxu1  ;;  %v2224_v31 = vadd.f32 %v6929_v25, %v2223_v29  ;;  %v5703_v29 = vld [vmem:[%s7151_s16 + $0x1d0] sm:$0xf] }
 0x439   : > { %v2138_v59 = vadd.f32 %v2137_v53, %v1998_v33  ;;  %v2152_v60 = vadd.f32 %v2151_v58, %v2012_v34  ;;  %v5591_v53 = vld [vmem:[%s7151_s16 + $0xf0] sm:$0xf] }
 0x43a   : > { %v2194_v61 = vadd.f32 %v2186_v46, %v2164_v49  ;;  %v2195_v54 = vadd.f32 %v2187_v47, %v2178_v8  ;;  %v7533_v32 = vsel %vm2225_vm2, %v6929_v25, %v2224_v31  ;;  %v5527_v49 = vld [vmem:[%s7151_s16 + $0x70] sm:$0xf]  ;;  %v6649_v8 = vld [vmem:[%s7151_s16 + $0x74] sm:$0xf0]  ;;  %v5704_v31 = vor.u32 %v6693_v30, %v5703_v29  ;;  %v6651_v29 = vld [vmem:[%s7151_s16 + $0x84] sm:$0xf0] }
 0x43b   : > { %v2196_v62 = vadd.f32 %v2184_v39, %v2138_v59  ;;  %v2197_v2 = vadd.f32 %v2185_v41, %v2152_v60  ;;  %v5528_v60 = vor.u32 %v6649_v8, %v5527_v49  ;;  %v5639_v25 = vld [vmem:[%s7151_s16 + $0x150] sm:$0xf]  ;;  %v6641_v49 = vld [vmem:[%s7151_s16 + $0x34] sm:$0xf0]  ;;  %v5599_v30 = vld [vmem:[%s7151_s16 + $0x100] sm:$0xf] }
 0x43c   : > { %v2202_v1 = vadd.f32 %v6940_v0, %v2194_v61  ;;  %v2203_v7 = vadd.f32 %v6941_v4, %v2195_v54  ;;  %v6665_v61 = vld [vmem:[%s7151_s16 + $0xf4] sm:$0xf0]  ;;  %v5655_v54 = vld [vmem:[%s7151_s16 + $0x170] sm:$0xf]  ;;  %v5640_v28 = vor.u32 %v6677_v26, %v5639_v25  ;;  %v5471_v25 = vld [vmem:[%s7151_s16] sm:$0xf] }
 0x43d   : > { %v2204_v50 = vadd.f32 %v6942_v10, %v2196_v62  ;;  %v2205_v13 = vadd.f32 %v6943_v12, %v2197_v2  ;;  %v6681_v62 = vld [vmem:[%s7151_s16 + $0x174] sm:$0xf0]  ;;  %v5592_v0 = vor.u32 %v6665_v61, %v5591_v53  ;;  %v5719_v2 = vld [vmem:[%s7151_s16 + $0x1f0] sm:$0xf]  ;;  %2733 = vmatpush.bf16.msra.mxu0 %v5528_v60  ;;  %v5583_v12 = vld [vmem:[%s7151_s16 + $0xe0] sm:$0xf] }
 0x43e   : > { %v2211_v9 = vadd.f32 %v2210_v3, %v2202_v1  ;;  %v6697_v3 = vld [vmem:[%s7151_s16 + $0x1f4] sm:$0xf0]  ;;  %v5559_v8 = vld [vmem:[%s7151_s16 + $0xb0] sm:$0xf]  ;;  %v6635_v26 = vld [vmem:[%s7151_s16 + $0x4] sm:$0xf0] }
 0x43f   : > { %v2165_v56 = vpop.f32.mrf.mxu2  ;;  %v2179_v11 = vpop.f32.mrf.mxu3  ;;  %v2215_v21 = vadd.f32 %v2205_v13, %v2204_v50  ;;  %2747 = vmatpush.bf16.msra.mxu1 %v5592_v0  ;;  %v6673_v60 = vld [vmem:[%s7151_s16 + $0x134] sm:$0xf0] }
 0x440   : > { %v2166_v14 = vadd.f32 %v2165_v56, %v2026_v36  ;;  %v2180_v15 = vadd.f32 %v2179_v11, %v2040_v37  ;;  %v2212_v16 = vadd.f32 %v2211_v9, %v2203_v7  ;;  %v5720_v9 = vor.u32 %v6697_v3, %v5719_v2  ;;  %v5519_v56 = vld [vmem:[%s7151_s16 + $0x60] sm:$0xf]  ;;  %v6647_v11 = vld [vmem:[%s7151_s16 + $0x64] sm:$0xf0]  ;;  %v6689_v0 = vld [vmem:[%s7151_s16 + $0x1b4] sm:$0xf0] }
 0x441   : > { %v5487_v2 = vld [vmem:[%s7151_s16 + $0x20] sm:$0xf]  ;;  %v6639_v3 = vld [vmem:[%s7151_s16 + $0x24] sm:$0xf0] }
 0x442   : > { %v2198_v17 = vadd.f32 %v2186_v46, %v2166_v14  ;;  %v2199_v18 = vadd.f32 %v2187_v47, %v2180_v15  ;;  %2213 = vadd.xlane.f32.xlu1 %v2212_v16  ;;  %2775 = vmatpush.bf16.msra.mxu3 %v5720_v9  ;;  %v6663_v14 = vld [vmem:[%s7151_s16 + $0xe4] sm:$0xf0]  ;;  %v5647_v15 = vld [vmem:[%s7151_s16 + $0x160] sm:$0xf] }
 0x443   : > { %v6679_v16 = vld [vmem:[%s7151_s16 + $0x164] sm:$0xf0] }
 0x444   : > { %v2206_v20 = vadd.f32 %v6944_v19, %v2198_v17  ;;  %v2207_v51 = vadd.f32 %v6945_v22, %v2199_v18  ;;  %v5584_v17 = vor.u32 %v6663_v14, %v5583_v12  ;;  %v5648_v18 = vor.u32 %v6679_v16, %v5647_v15  ;;  %v5711_v19 = vld [vmem:[%s7151_s16 + $0x1e0] sm:$0xf]  ;;  %v5511_v22 = vld [vmem:[%s7151_s16 + $0x50] sm:$0xf]  ;;  %v6655_v9 = vld [vmem:[%s7151_s16 + $0xa4] sm:$0xf0] }
 0x445   : > { %v5679_v12 = vld [vmem:[%s7151_s16 + $0x1a0] sm:$0xf]  ;;  %v5479_v15 = vld [vmem:[%s7151_s16 + $0x10] sm:$0xf]  ;;  %v6637_v16 = vld [vmem:[%s7151_s16 + $0x14] sm:$0xf0] }
 0x446   : > { %v2216_v57 = vadd.f32 %v2215_v21, %v2206_v20  ;;  %2748 = vmatpush.bf16.msra.mxu1 %v5584_v17  ;;  %v5543_v17 = vld [vmem:[%s7151_s16 + $0x90] sm:$0xf] }
 0x448   : > { %v2217_v23 = vadd.f32 %v2216_v57, %v2207_v51  ;;  %v5575_v57 = vld [vmem:[%s7151_s16 + $0xd0] sm:$0xf] }
 0x449   : > { %v5576_v27 = vor.u32 %v6661_v24, %v5575_v57  ;;  %v5671_v57 = vld [vmem:[%s7151_s16 + $0x190] sm:$0xf] }
 0x44a   : > { %2218 = vadd.xlane.f32.xlu2 %v2217_v23 }
 0x44b   : > { %2749 = vmatpush.bf16.msra.mxu1 %v5576_v27  ;;  %v5535_v27 = vld [vmem:[%s7151_s16 + $0x80] sm:$0xf] }
 0x4b5   : > { %v2214_v33 = vpop.xlane.xlu1 %2213 }
 0x4b6   : > { %v2227_v34 = vmul.f32 %v7533_v32, %v2214_v33  ;;  %v5503_v33 = vld [vmem:[%s7151_s16 + $0x40] sm:$0xf] }
 0x4b8   : > { %v7536_v35 = vsub.f32 %v2200_v5, %v2227_v34  ;;  %v7538_v36 = vsub.f32 %v2201_v6, %v2227_v34  ;;  %v7540_v37 = vsub.f32 %v2202_v1, %v2227_v34  ;;  %v7542_v38 = vsub.f32 %v2203_v7, %v2227_v34  ;;  %v6643_v34 = vld [vmem:[%s7151_s16 + $0x44] sm:$0xf0] }
 0x4b9   : > { %v5656_v1 = vor.u32 %v6681_v62, %v5655_v54  ;;  %v5687_v62 = vld [vmem:[%s7151_s16 + $0x1b0] sm:$0xf] }
 0x4ba   : > { %v2237_v39 = vmul.f32 %v7536_v35, %v7536_v35  ;;  %v2238_v40 = vmul.f32 %v7538_v36, %v7538_v36  ;;  %v2239_v41 = vmul.f32 %v7540_v37, %v7540_v37  ;;  %v2240_v45 = vmul.f32 %v7542_v38, %v7542_v38 }
 0x4bb   : > { %2761 = vmatpush.bf16.msra.mxu2 %v5656_v1  ;;  %v5688_v1 = vor.u32 %v6689_v0, %v5687_v62  ;;  %v5585_v62 = vld [vmem:[%s7151_s16 + $0xe8] sm:$0xf0]  ;;  %v6678_v0 = vld [vmem:[%s7151_s16 + $0x164] sm:$0xf] }
 0x4bc   : > { %v2245_v42 = vadd.f32 %v2238_v40, %v2237_v39  ;;  %v5567_v39 = vld [vmem:[%s7151_s16 + $0xc0] sm:$0xf]  ;;  %v5504_v40 = vor.u32 %v6643_v34, %v5503_v33  ;;  %v5536_v33 = vor.u32 %v6651_v29, %v5535_v27  ;;  %v6690_v27 = vld [vmem:[%s7151_s16 + $0x1c4] sm:$0xf] }
 0x4bd   : > { %v2219_v43 = vpop.xlane.xlu2 %2218 }
 0x4be   : > { %v2228_v44 = vmul.f32 %v7533_v32, %v2219_v43  ;;  %v2246_v46 = vadd.f32 %v2245_v42, %v2239_v41  ;;  %v6659_v41 = vld [vmem:[%s7151_s16 + $0xc4] sm:$0xf0]  ;;  %v5631_v42 = vld [vmem:[%s7151_s16 + $0x140] sm:$0xf] }
 0x4bf   : > { %2762 = vmatpush.bf16.msra.mxu2 %v5648_v18  ;;  %v6675_v43 = vld [vmem:[%s7151_s16 + $0x144] sm:$0xf0]  ;;  %v5480_v18 = vor.u32 %v6637_v16, %v5479_v15 }
 0x4c0   : > { %v7553_v47 = vsub.f32 %v2204_v50, %v2228_v44  ;;  %v7555_v48 = vsub.f32 %v2205_v13, %v2228_v44  ;;  %v2247_v52 = vadd.f32 %v2246_v46, %v2240_v45  ;;  %v7557_v55 = vsub.f32 %v2206_v20, %v2228_v44  ;;  %v896_v50 = vld [vmem:[%s9036_s0 + $0x8] sm:$0xff]  ;;  %v5695_v46 = vld [vmem:[%s7151_s16 + $0x1c0] sm:$0xf] }
 0x4c1   : > { %v7559_v5 = vsub.f32 %v2207_v51, %v2228_v44  ;;  %v5520_v13 = vor.u32 %v6647_v11, %v5519_v56  ;;  %v6695_v20 = vld [vmem:[%s7151_s16 + $0x1e4] sm:$0xf0]  ;;  %v6645_v51 = vld [vmem:[%s7151_s16 + $0x54] sm:$0xf0]  ;;  %v5568_v44 = vor.u32 %v6659_v41, %v5567_v39  ;;  %v5632_v45 = vor.u32 %v6675_v43, %v5631_v42  ;;  %v5663_v39 = vld [vmem:[%s7151_s16 + $0x180] sm:$0xf] }
 0x4c2   : > { %2248 = vadd.xlane.f32.xlu1 %v2247_v52  ;;  %v2241_v63 = vmul.f32 %v7553_v47, %v7553_v47  ;;  %v2242_v6 = vmul.f32 %v7555_v48, %v7555_v48  ;;  %v2243_v58 = vmul.f32 %v7557_v55, %v7557_v55  ;;  %v5712_v21 = vor.u32 %v6695_v20, %v5711_v19  ;;  %v6691_v52 = vld [vmem:[%s7151_s16 + $0x1c4] sm:$0xf0]  ;;  %v6653_v19 = vld [vmem:[%s7151_s16 + $0x94] sm:$0xf0]  ;;  %v5607_v20 = vld [vmem:[%s7151_s16 + $0x110] sm:$0xf] }
 0x4c3   : > { %v2244_v4 = vmul.f32 %v7559_v5, %v7559_v5  ;;  %2734 = vmatpush.bf16.msra.mxu0 %v5520_v13  ;;  %v5512_v23 = vor.u32 %v6645_v51, %v5511_v22  ;;  %2763 = vmatpush.bf16.msra.mxu2 %v5640_v28  ;;  %v6687_v13 = vld [vmem:[%s7151_s16 + $0x1a4] sm:$0xf0]  ;;  %v5544_v22 = vor.u32 %v6653_v19, %v5543_v17  ;;  %v6648_v41 = vld [vmem:[%s7151_s16 + $0x74] sm:$0xf]  ;;  %v5529_v43 = vld [vmem:[%s7151_s16 + $0x78] sm:$0xf0] }
 0x4c4   : > { %v2250_v59 = vadd.f32 %v2242_v6, %v2241_v63  ;;  %2776 = vmatpush.bf16.msra.mxu3 %v5712_v21  ;;  %v5696_v63 = vor.u32 %v6691_v52, %v5695_v46  ;;  %2750 = vmatpush.bf16.msra.mxu1 %v5568_v44  ;;  %v5495_v6 = vld [vmem:[%s7151_s16 + $0x30] sm:$0xf]  ;;  %v5680_v14 = vor.u32 %v6687_v13, %v5679_v12  ;;  %v6669_v21 = vld [vmem:[%s7151_s16 + $0x114] sm:$0xf0]  ;;  %v6664_v44 = vld [vmem:[%s7151_s16 + $0xf4] sm:$0xf] }
 0x4c5   : > { %v5496_v53 = vor.u32 %v6641_v49, %v5495_v6  ;;  %v5608_v51 = vor.u32 %v6669_v21, %v5607_v20  ;;  %v5472_v28 = vor.u32 %v6635_v26, %v5471_v25  ;;  %v5532_v46 = vor.u32 %v6648_v41, %v5529_v43  ;;  %v5657_v6 = vld [vmem:[%s7151_s16 + $0x178] sm:$0xf0]  ;;  %v6696_v49 = vld [vmem:[%s7151_s16 + $0x1f4] sm:$0xf]  ;;  %v6642_v20 = vld [vmem:[%s7151_s16 + $0x44] sm:$0xf] }
 0x4c6   : > { %v2251_v7 = vadd.f32 %v2250_v59, %v2243_v58  ;;  %v6657_v58 = vld [vmem:[%s7151_s16 + $0xb4] sm:$0xf0]  ;;  %v5623_v59 = vld [vmem:[%s7151_s16 + $0x130] sm:$0xf]  ;;  %v5577_v12 = vld [vmem:[%s7151_s16 + $0xd8] sm:$0xf0] }
 0x4c7   : > { %2735 = vmatpush.bf16.msra.mxu0 %v5512_v23  ;;  %2764 = vmatpush.bf16.msra.mxu2 %v5632_v45  ;;  %v5560_v61 = vor.u32 %v6657_v58, %v5559_v8  ;;  %v5624_v54 = vor.u32 %v6673_v60, %v5623_v59  ;;  %v6685_v23 = vld [vmem:[%s7151_s16 + $0x194] sm:$0xf0]  ;;  %v5593_v45 = vld [vmem:[%s7151_s16 + $0xf8] sm:$0xf0]  ;;  %v6646_v58 = vld [vmem:[%s7151_s16 + $0x64] sm:$0xf] }
 0x4c8   : > { %v2252_v10 = vadd.f32 %v2251_v7, %v2244_v4  ;;  %2777 = vmatpush.bf16.msra.mxu3 %v5704_v31  ;;  %v5551_v4 = vld [vmem:[%s7151_s16 + $0xa0] sm:$0xf]  ;;  %v5488_v7 = vor.u32 %v6639_v3, %v5487_v2  ;;  %v5672_v24 = vor.u32 %v6685_v23, %v5671_v57  ;;  %v6667_v31 = vld [vmem:[%s7151_s16 + $0x104] sm:$0xf0]  ;;  %v5596_v52 = vor.u32 %v6664_v44, %v5593_v45  ;;  %v5521_v59 = vld [vmem:[%s7151_s16 + $0x68] sm:$0xf0] }
 0x4c9   : > { %2751 = vmatpush.bf16.msra.mxu1 %v5560_v61  ;;  %v5552_v56 = vor.u32 %v6655_v9, %v5551_v4  ;;  %v5600_v34 = vor.u32 %v6667_v31, %v5599_v30  ;;  %v5524_v61 = vor.u32 %v6646_v58, %v5521_v59  ;;  %v5649_v2 = vld [vmem:[%s7151_s16 + $0x168] sm:$0xf0]  ;;  %v6694_v3 = vld [vmem:[%s7151_s16 + $0x1e4] sm:$0xf]  ;;  %v6676_v13 = vld [vmem:[%s7151_s16 + $0x154] sm:$0xf] }
 0x4ca   : > { %2253 = vadd.xlane.f32.xlu1 %v2252_v10  ;;  %v5615_v10 = vld [vmem:[%s7151_s16 + $0x120] sm:$0xf]  ;;  %v5713_v4 = vld [vmem:[%s7151_s16 + $0x1e8] sm:$0xf0]  ;;  %v5705_v19 = vld [vmem:[%s7151_s16 + $0x1d8] sm:$0xf0] }
 0x4cb   : > { %2736 = vmatpush.bf16.msra.mxu0 %v5504_v40  ;;  %2765 = vmatpush.bf16.msra.mxu2 %v5624_v54  ;;  %v6683_v40 = vld [vmem:[%s7151_s16 + $0x184] sm:$0xf0]  ;;  %v6662_v54 = vld [vmem:[%s7151_s16 + $0xe4] sm:$0xf]  ;;  %v5716_v9 = vor.u32 %v6694_v3, %v5713_v4  ;;  %v5569_v57 = vld [vmem:[%s7151_s16 + $0xc8] sm:$0xf0] }
 0x4cc   : > { %2778 = vmatpush.bf16.msra.mxu3 %v5696_v63  ;;  %v5664_v42 = vor.u32 %v6683_v40, %v5663_v39  ;;  %v6680_v63 = vld [vmem:[%s7151_s16 + $0x174] sm:$0xf]  ;;  %v6674_v25 = vld [vmem:[%s7151_s16 + $0x144] sm:$0xf]  ;;  %v5633_v26 = vld [vmem:[%s7151_s16 + $0x148] sm:$0xf0] }
 0x4cd   : > { %2752 = vmatpush.bf16.msra.mxu1 %v5552_v56  ;;  %v5660_v8 = vor.u32 %v6680_v63, %v5657_v6  ;;  %v6660_v56 = vld [vmem:[%s7151_s16 + $0xd4] sm:$0xf]  ;;  %v5636_v31 = vor.u32 %v6674_v25, %v5633_v26  ;;  %v5497_v40 = vld [vmem:[%s7151_s16 + $0x38] sm:$0xf0]  ;;  %v6686_v4 = vld [vmem:[%s7151_s16 + $0x1a4] sm:$0xf] }
 0x4ce   : > { %v5580_v17 = vor.u32 %v6660_v56, %v5577_v12  ;;  %v6640_v39 = vld [vmem:[%s7151_s16 + $0x34] sm:$0xf]  ;;  %v5561_v44 = vld [vmem:[%s7151_s16 + $0xb8] sm:$0xf0]  ;;  %v6650_v25 = vld [vmem:[%s7151_s16 + $0x84] sm:$0xf] }
 0x4cf   : > { %2737 = vmatpush.bf16.msra.mxu0 %v5496_v53  ;;  %v5721_v53 = vld [vmem:[%s7151_s16 + $0x1f8] sm:$0xf0]  ;;  %v6656_v41 = vld [vmem:[%s7151_s16 + $0xb4] sm:$0xf]  ;;  %v5500_v43 = vor.u32 %v6640_v39, %v5497_v40  ;;  %v5665_v39 = vld [vmem:[%s7151_s16 + $0x188] sm:$0xf0] }
 0x4d0   : > { %2779 = vmatpush.bf16.msra.mxu3 %v5688_v1  ;;  %v5724_v60 = vor.u32 %v6696_v49, %v5721_v53  ;;  %v5588_v1 = vor.u32 %v6662_v54, %v5585_v62  ;;  %v6672_v45 = vld [vmem:[%s7151_s16 + $0x134] sm:$0xf]  ;;  %v5689_v49 = vld [vmem:[%s7151_s16 + $0x1b8] sm:$0xf0]  ;;  %v5553_v62 = vld [vmem:[%s7151_s16 + $0xa8] sm:$0xf0] }
 0x4d1   : > { %2753 = vmatpush.bf16.msra.mxu1 %v5544_v22  ;;  %v5505_v22 = vld [vmem:[%s7151_s16 + $0x48] sm:$0xf0]  ;;  %v6688_v6 = vld [vmem:[%s7151_s16 + $0x1b4] sm:$0xf]  ;;  %v5481_v56 = vld [vmem:[%s7151_s16 + $0x18] sm:$0xf0] }
 0x4d2   : > { %v5508_v29 = vor.u32 %v6642_v20, %v5505_v22  ;;  %v5692_v59 = vor.u32 %v6688_v6, %v5689_v49  ;;  %v6634_v22 = vld [vmem:[%s7151_s16 + $0x4] sm:$0xf] }
 0x4d3   : > { %2738 = vmatpush.bf16.msra.mxu0 %v5488_v7  ;;  %v5652_v7 = vor.u32 %v6678_v0, %v5649_v2  ;;  %v6670_v0 = vld [vmem:[%s7151_s16 + $0x124] sm:$0xf] }
 0x4d4   : > { %2780 = vmatpush.bf16.msra.mxu3 %v5680_v14  ;;  %v5641_v14 = vld [vmem:[%s7151_s16 + $0x158] sm:$0xf0] }
 0x4d5   : > { %2754 = vmatpush.bf16.msra.mxu1 %v5536_v33  ;;  %v5644_v21 = vor.u32 %v6676_v13, %v5641_v14  ;;  %v5545_v13 = vld [vmem:[%s7151_s16 + $0x98] sm:$0xf0]  ;;  %v6668_v14 = vld [vmem:[%s7151_s16 + $0x114] sm:$0xf] }
 0x4d7   : > { %2739 = vmatpush.bf16.msra.mxu0 %v5480_v18  ;;  %v6692_v18 = vld [vmem:[%s7151_s16 + $0x1d4] sm:$0xf] }
 0x4d8   : > { %2781 = vmatpush.bf16.msra.mxu3 %v5672_v24  ;;  %v5708_v24 = vor.u32 %v6692_v18, %v5705_v19  ;;  %v5673_v18 = vld [vmem:[%s7151_s16 + $0x198] sm:$0xf0]  ;;  %v7706_v19 = vld [vmem:[%s9037_s25] sm:$0xf] }
 0x4d9   : > { %2803 = vmatpush.bf16.msrb.mxu1 %v5596_v52  ;;  %v5564_v52 = vor.u32 %v6656_v41, %v5561_v44  ;;  %v2288_v40 = vperm.slane %v7706_v19, 0  ;;  %v2289_v41 = vperm.slane %v7706_v19, 1  ;;  %v2291_v6 = vperm.slane %v7706_v19, 3 }
 0x4db   : > { %2740 = vmatpush.bf16.msra.mxu0 %v5472_v28  ;;  %v5697_v28 = vld [vmem:[%s7151_s16 + $0x1c8] sm:$0xf0] }
 0x4dc   : > { %2782 = vmatpush.bf16.msra.mxu3 %v5664_v42  ;;  %v5700_v33 = vor.u32 %v6690_v27, %v5697_v28  ;;  %v5537_v28 = vld [vmem:[%s7151_s16 + $0x88] sm:$0xf0] }
 0x4dd   : > { %2804 = vmatpush.bf16.msrb.mxu1 %v5588_v1  ;;  %v5617_v1 = vld [vmem:[%s7151_s16 + $0x128] sm:$0xf0] }
 0x4df   : > { %2789 = vmatpush.bf16.msrb.mxu0 %v5532_v46  ;;  %v5625_v46 = vld [vmem:[%s7151_s16 + $0x138] sm:$0xf0] }
 0x4e0   : > { %2831 = vmatpush.bf16.msrb.mxu3 %v5724_v60  ;;  %v5628_v63 = vor.u32 %v6672_v45, %v5625_v46  ;;  %v5489_v60 = vld [vmem:[%s7151_s16 + $0x28] sm:$0xf0]  ;;  %v5540_v45 = vor.u32 %v6650_v25, %v5537_v28  ;;  %v5967_v25 = vld [vmem:[%s7161_s5 + $0x1e0] sm:$0xf] }
 0x4e1   : > { %2805 = vmatpush.bf16.msrb.mxu1 %v5580_v17  ;;  %v6684_v17 = vld [vmem:[%s7151_s16 + $0x194] sm:$0xf] }
 0x4e2   : > { %v5676_v27 = vor.u32 %v6684_v17, %v5673_v18 }
 0x4e3   : > { %2328 = vperm.xlu1 %6911, %v896_v50   ;;  %v6671_v50 = vld [vmem:[%s7151_s16 + $0x124] sm:$0xf0]  ;;  %2790 = vmatpush.bf16.msrb.mxu0 %v5524_v61  ;;  %v6654_v61 = vld [vmem:[%s7151_s16 + $0xa4] sm:$0xf] }
 0x4e4   : > { %v5616_v11 = vor.u32 %v6671_v50, %v5615_v10  ;;  %v6644_v10 = vld [vmem:[%s7151_s16 + $0x54] sm:$0xf]  ;;  %v5513_v50 = vld [vmem:[%s7151_s16 + $0x58] sm:$0xf0]  ;;  %2832 = vmatpush.bf16.msrb.mxu3 %v5716_v9  ;;  %v5556_v3 = vor.u32 %v6654_v61, %v5553_v62 }
 0x4e5   : > { %v5516_v16 = vor.u32 %v6644_v10, %v5513_v50  ;;  %v5620_v10 = vor.u32 %v6670_v0, %v5617_v1  ;;  %v6636_v50 = vld [vmem:[%s7151_s16 + $0x14] sm:$0xf] }
 0x4e6   : > { %2766 = vmatpush.bf16.msra.mxu2 %v5616_v11  ;;  %v5484_v20 = vor.u32 %v6636_v50, %v5481_v56 }
 0x4e7   : > { %2791 = vmatpush.bf16.msrb.mxu0 %v5516_v16 }
 0x4e8   : > { %2833 = vmatpush.bf16.msrb.mxu3 %v5708_v24  ;;  %v5473_v24 = vld [vmem:[%s7151_s16 + $0x8] sm:$0xf0] }
 0x4ea   : > { %2767 = vmatpush.bf16.msra.mxu2 %v5608_v51  ;;  %v6658_v51 = vld [vmem:[%s7151_s16 + $0xc4] sm:$0xf] }
 0x4eb   : > { %v5572_v30 = vor.u32 %v6658_v51, %v5569_v57  ;;  %2792 = vmatpush.bf16.msrb.mxu0 %v5508_v29  ;;  %v6666_v29 = vld [vmem:[%s7151_s16 + $0x104] sm:$0xf] }
 0x4ec   : > { %2834 = vmatpush.bf16.msrb.mxu3 %v5700_v33 }
 0x4ed   : > { %2806 = vmatpush.bf16.msrb.mxu1 %v5572_v30  ;;  %v5601_v30 = vld [vmem:[%s7151_s16 + $0x108] sm:$0xf0] }
 0x4ee   : > { %2768 = vmatpush.bf16.msra.mxu2 %v5600_v34  ;;  %v5604_v46 = vor.u32 %v6666_v29, %v5601_v30  ;;  %v6760_v30 = vld [vmem:[%s7161_s5 + $0x1ec] sm:$0xf0] }
 0x4ef   : > { %2793 = vmatpush.bf16.msrb.mxu0 %v5500_v43 }
 0x4f0   : > { %2835 = vmatpush.bf16.msrb.mxu3 %v5692_v59 }
 0x4f1   : > { %2807 = vmatpush.bf16.msrb.mxu1 %v5564_v52 }
 0x4f2   : > { %2817 = vmatpush.bf16.msrb.mxu2 %v5660_v8  ;;  %v6638_v8 = vld [vmem:[%s7151_s16 + $0x24] sm:$0xf] }
 0x4f3   : > { %v5492_v2 = vor.u32 %v6638_v8, %v5489_v60 }
 0x4f5   : > { %2794 = vmatpush.bf16.msrb.mxu0 %v5492_v2  ;;  %2808 = vmatpush.bf16.msrb.mxu1 %v5556_v3 }
 0x4f6   : > { %2818 = vmatpush.bf16.msrb.mxu2 %v5652_v7  ;;  %v5681_v7 = vld [vmem:[%s7151_s16 + $0x1a8] sm:$0xf0] }
 0x4f7   : > { %v5684_v12 = vor.u32 %v6686_v4, %v5681_v7 }
 0x4f9   : > { %2836 = vmatpush.bf16.msrb.mxu3 %v5684_v12  ;;  %2795 = vmatpush.bf16.msrb.mxu0 %v5484_v20  ;;  %v7737_v12 = vpop.permute.xlu0 %2323  ;;  %v6726_v20 = vld [vmem:[%s7161_s5 + $0xe4] sm:$0xf] }
 0x4fa   : > { %2819 = vmatpush.bf16.msrb.mxu2 %v5644_v21 }
 0x4fd   : > { %2837 = vmatpush.bf16.msrb.mxu3 %v5676_v27 }
 0x4fe   : > { %2820 = vmatpush.bf16.msrb.mxu2 %v5636_v31 }
 0x502   : > { %2821 = vmatpush.bf16.msrb.mxu2 %v5628_v63  ;;  %v2290_v63 = vperm.slane %v7706_v19, 2  ;;  %v6728_v19 = vld [vmem:[%s7161_s5 + $0xec] sm:$0xf0] }
 0x506   : > { %2822 = vmatpush.bf16.msrb.mxu2 %v5620_v10 }
 0x535   : > { %v2249_v11 = vpop.xlane.xlu1 %2248 }
 0x536   : > { %v2255_v15 = vmul.f32 %v2249_v11, %v7533_v32  ;;  %v6652_v11 = vld [vmem:[%s7151_s16 + $0x94] sm:$0xf] }
 0x537   : > { %v5548_v21 = vor.u32 %v6652_v11, %v5545_v13 }
 0x538   : > { %v7665_v23 = vadd.f32 1e-05, %v2255_v15  ;;  %v5609_v15 = vld [vmem:[%s7151_s16 + $0x118] sm:$0xf0] }
 0x539   : > { %v5612_v57 = vor.u32 %v6668_v14, %v5609_v15  ;;  %2809 = vmatpush.bf16.msrb.mxu1 %v5548_v21  ;;  %v5841_v21 = vld [vmem:[%s7161_s5 + $0xf0] sm:$0xf0] }
 0x53a   : > { %6930 = vrsqrt.f32 %v7665_v23  ;;  %vm2265_vm4 = vweird.f32 %v7665_v23 }
 0x53b   : > { %2823 = vmatpush.bf16.msrb.mxu2 %v5612_v57 }
 0x53d   : > { %v2254_v34 = vpop.xlane.xlu1 %2253  ;;  %2810 = vmatpush.bf16.msrb.mxu1 %v5540_v45  ;;  %v6724_v45 = vld [vmem:[%s7161_s5 + $0xcc] sm:$0xf0] }
 0x53e   : > { %v2256_v42 = vmul.f32 %v2254_v34, %v7533_v32  ;;  %v6682_v34 = vld [vmem:[%s7151_s16 + $0x184] sm:$0xf]  ;;  %s9038_s16 = scalar_lea.vmem %s8991_s9, %s7129_s27 }
 0x53f   : > { %v2209_v52 = vld [vmem:[%s9038_s16] sm:$0xf]  ;;  %v5668_v49 = vor.u32 %v6682_v34, %v5665_v39  ;;  %2824 = vmatpush.bf16.msrb.mxu2 %v5604_v46  ;;  %v5844_v39 = vor.u32 %v6726_v20, %v5841_v21  ;;  %v6722_v46 = vld [vmem:[%s7161_s5 + $0xc4] sm:$0xf]  ;;  %v6752_v21 = vld [vmem:[%s7161_s5 + $0x1ac] sm:$0xf0] }
 0x540   : > { %v6931_v53 = vpop.eup %6930  ;;  %v7682_v58 = vadd.f32 1e-05, %v2256_v42  ;;  %v5476_v42 = vor.u32 %v6634_v22, %v5473_v24  ;;  %v2305_v61 = vperm.slane %v2209_v52, 0  ;;  %v2307_v0 = vperm.slane %v2209_v52, 2 }
 0x541   : > { %v2260_v54 = vmul.f32 %v6931_v53, %v7665_v23  ;;  %vm2266_vm3 = vweird.f32 %v6931_v53  ;;  %v2308_v1 = vperm.slane %v2209_v52, 3  ;;  %2838 = vmatpush.bf16.msrb.mxu3 %v5668_v49  ;;  %v6756_v49 = vld [vmem:[%s7161_s5 + $0x1cc] sm:$0xf0] }
 0x542   : > { %6932 = vrsqrt.f32 %v7682_v58  ;;  %vm2267_vm5 = vmor %vm2265_vm4, %vm2266_vm3  ;;  %2796 = vmatpush.bf16.msrb.mxu0 %v5476_v42  ;;  %vm2275_vm7 = vweird.f32 %v7682_v58 }
 0x543   : > { %v2261_v9 = vmul.f32 %v6931_v53, %v2260_v54  ;;  %v2306_v54 = vperm.slane %v2209_v52, 1  ;;  %v5968_v52 = vor.u32 %v6760_v30, %v5967_v25  ;;  %v6702_v25 = vld [vmem:[%s7161_s5 + $0x24] sm:$0xf]  ;;  %v5745_v30 = vld [vmem:[%s7161_s5 + $0x30] sm:$0xf0] }
 0x545   : > { %v2262_v16 = vmul.f32 0.5, %v2261_v9 }
 0x547   : > { %v2263_v51 = vsub.f32 1.5, %v2262_v16 }
 0x548   : > { %v6933_v26 = vpop.eup %6932 }
 0x549   : > { %v2264_v31 = vmul.f32 %v6931_v53, %v2263_v51  ;;  %v2270_v33 = vmul.f32 %v6933_v26, %v7682_v58  ;;  %vm2276_vm6 = vweird.f32 %v6933_v26 }
 0x54a   : > { %vm2277_vm8 = vmor %vm2275_vm7, %vm2276_vm6 }
 0x54b   : > { %v2268_v43 = vsel %vm2267_vm5, %v6931_v53, %v2264_v31  ;;  %v2271_v44 = vmul.f32 %v6933_v26, %v2270_v33  ;;  %v6758_v31 = vld [vmem:[%s7161_s5 + $0x1e4] sm:$0xf]  ;;  %v5969_v33 = vld [vmem:[%s7161_s5 + $0x1f0] sm:$0xf0] }
 0x54c   : > { %v2279_v23 = vmul.f32 %v2268_v43, %v7536_v35  ;;  %v2280_v8 = vmul.f32 %v2268_v43, %v7538_v36  ;;  %v2281_v53 = vmul.f32 %v2268_v43, %v7540_v37  ;;  %v2282_v59 = vmul.f32 %v2268_v43, %v7542_v38 }
 0x54d   : > { %v2272_v60 = vmul.f32 0.5, %v2271_v44  ;;  %v5823_v44 = vld [vmem:[%s7161_s5 + $0xc0] sm:$0xf] }
 0x54e   : > { %v2296_v62 = vmul.f32 %v2288_v40, %v2279_v23  ;;  %v2297_v36 = vmul.f32 %v2289_v41, %v2280_v8  ;;  %v2298_v3 = vmul.f32 %v2290_v63, %v2281_v53  ;;  %v2299_v37 = vmul.f32 %v2291_v6, %v2282_v59  ;;  %v5825_v23 = vld [vmem:[%s7161_s5 + $0xd0] sm:$0xf0]  ;;  %v6754_v8 = vld [vmem:[%s7161_s5 + $0x1c4] sm:$0xf] }
 0x54f   : > { %v2273_v35 = vsub.f32 1.5, %v2272_v60  ;;  %v5953_v53 = vld [vmem:[%s7161_s5 + $0x1d0] sm:$0xf0]  ;;  %v5824_v59 = vor.u32 %v6724_v45, %v5823_v44  ;;  %v5828_v60 = vor.u32 %v6722_v46, %v5825_v23  ;;  %v6748_v45 = vld [vmem:[%s7161_s5 + $0x18c] sm:$0xf0] }
 0x550   : > { %v2313_v58 = vadd.f32 %v2305_v61, %v2296_v62  ;;  %v2314_v50 = vadd.f32 %v2306_v54, %v2297_v36  ;;  %v2315_v56 = vadd.f32 %v2307_v0, %v2298_v3  ;;  %v2316_v11 = vadd.f32 %v2308_v1, %v2299_v37  ;;  %v5809_v62 = vld [vmem:[%s7161_s5 + $0xb0] sm:$0xf0]  ;;  %v5791_v3 = vld [vmem:[%s7161_s5 + $0x80] sm:$0xf]  ;;  %v6716_v37 = vld [vmem:[%s7161_s5 + $0x8c] sm:$0xf0] }
 0x551   : > { %v2274_v2 = vmul.f32 %v6933_v26, %v2273_v35  ;;  %v5807_v35 = vld [vmem:[%s7161_s5 + $0xa0] sm:$0xf]  ;;  %v6698_v46 = vld [vmem:[%s7161_s5 + $0x4] sm:$0xf]  ;;  %v5729_v23 = vld [vmem:[%s7161_s5 + $0x10] sm:$0xf0] }
 0x552   : > { %v7746_v22 = vmul.f32 %v7737_v12, %v2313_v58  ;;  %v7749_v51 = vmul.f32 %v7737_v12, %v2314_v50  ;;  %v7752_v57 = vmul.f32 %v7737_v12, %v2315_v56  ;;  %v7755_v24 = vmul.f32 %v7737_v12, %v2316_v11  ;;  %v6712_v58 = vld [vmem:[%s7161_s5 + $0x6c] sm:$0xf0]  ;;  %v6710_v50 = vld [vmem:[%s7161_s5 + $0x64] sm:$0xf]  ;;  %v5777_v56 = vld [vmem:[%s7161_s5 + $0x70] sm:$0xf0] }
 0x553   : > { %v2278_v38 = vsel %vm2277_vm8, %v6933_v26, %v2274_v2 }
 0x554   : > { %v2283_v4 = vmul.f32 %v2278_v38, %v7553_v47  ;;  %v2284_v7 = vmul.f32 %v2278_v38, %v7555_v48  ;;  %v2285_v9 = vmul.f32 %v2278_v38, %v7557_v55  ;;  %v2286_v10 = vmul.f32 %v2278_v38, %v7559_v5  ;;  %v5839_v48 = vld [vmem:[%s7161_s5 + $0xe0] sm:$0xf]  ;;  %v6714_v38 = vld [vmem:[%s7161_s5 + $0x84] sm:$0xf] }
 0x555   : > { %v7739_v16 = vpop.permute.xlu1 %2328  ;;  %v5840_v34 = vor.u32 %v6728_v19, %v5839_v48  ;;  %v5761_v48 = vld [vmem:[%s7161_s5 + $0x50] sm:$0xf0]  ;;  %v5935_v19 = vld [vmem:[%s7161_s5 + $0x1a0] sm:$0xf] }
 0x556   : > { %v2300_v13 = vmul.f32 %v2288_v40, %v2283_v4  ;;  %v2301_v14 = vmul.f32 %v2289_v41, %v2284_v7  ;;  %v2302_v15 = vmul.f32 %v2290_v63, %v2285_v9  ;;  %v2303_v47 = vmul.f32 %v2291_v6, %v2286_v10  ;;  %v5951_v6 = vld [vmem:[%s7161_s5 + $0x1c0] sm:$0xf]  ;;  %v5793_v4 = vld [vmem:[%s7161_s5 + $0x90] sm:$0xf0] }
 0x557   : > { %v5972_v63 = vor.u32 %v6758_v31, %v5969_v33  ;;  %v5792_v7 = vor.u32 %v6716_v37, %v5791_v3  ;;  %v5796_v9 = vor.u32 %v6714_v38, %v5793_v4  ;;  %v5775_v10 = vld [vmem:[%s7161_s5 + $0x60] sm:$0xf]  ;;  %v5936_v31 = vor.u32 %v6752_v21, %v5935_v19  ;;  %v5831_v3 = vld [vmem:[%s7161_s5 + $0xc8] sm:$0xf]  ;;  %v6725_v37 = vld [vmem:[%s7161_s5 + $0xd4] sm:$0xf0] }
 0x558   : > { %v2317_v55 = vadd.f32 %v2305_v61, %v2300_v13  ;;  %v2318_v5 = vadd.f32 %v2306_v54, %v2301_v14  ;;  %v2319_v17 = vadd.f32 %v2307_v0, %v2302_v15  ;;  %v2320_v18 = vadd.f32 %v2308_v1, %v2303_v47  ;;  %v6720_v61 = vld [vmem:[%s7161_s5 + $0xac] sm:$0xf0]  ;;  %v6718_v54 = vld [vmem:[%s7161_s5 + $0xa4] sm:$0xf]  ;;  %v5759_v14 = vld [vmem:[%s7161_s5 + $0x40] sm:$0xf] }
 0x559   : > { %v5952_v0 = vor.u32 %v6756_v49, %v5951_v6  ;;  %v5956_v1 = vor.u32 %v6754_v8, %v5953_v53  ;;  %v5808_v2 = vor.u32 %v6720_v61, %v5807_v35  ;;  %v5812_v36 = vor.u32 %v6718_v54, %v5809_v62  ;;  %v6708_v15 = vld [vmem:[%s7161_s5 + $0x4c] sm:$0xf0]  ;;  %v6706_v47 = vld [vmem:[%s7161_s5 + $0x44] sm:$0xf]  ;;  %v5921_v49 = vld [vmem:[%s7161_s5 + $0x190] sm:$0xf0] }
 0x55a   : > { %v7759_v26 = vmul.f32 %v7739_v16, %v2317_v55  ;;  %v7762_v27 = vmul.f32 %v7739_v16, %v2318_v5  ;;  %v7765_v28 = vmul.f32 %v7739_v16, %v2319_v17  ;;  %v7768_v29 = vmul.f32 %v7739_v16, %v2320_v18  ;;  %v5743_v17 = vld [vmem:[%s7161_s5 + $0x20] sm:$0xf]  ;;  %v6704_v18 = vld [vmem:[%s7161_s5 + $0x2c] sm:$0xf0]  ;;  %v6746_v6 = vld [vmem:[%s7161_s5 + $0x184] sm:$0xf] }
 0x55b   : > { %v5776_v11 = vor.u32 %v6712_v58, %v5775_v10  ;;  %v5780_v13 = vor.u32 %v6710_v50, %v5777_v56  ;;  %v5760_v55 = vor.u32 %v6708_v15, %v5759_v14  ;;  %v5764_v5 = vor.u32 %v6706_v47, %v5761_v48  ;;  %v5847_v8 = vld [vmem:[%s7161_s5 + $0xe8] sm:$0xf]  ;;  %v5849_v35 = vld [vmem:[%s7161_s5 + $0xf8] sm:$0xf0]  ;;  %v5903_v62 = vld [vmem:[%s7161_s5 + $0x160] sm:$0xf] }
 0x55c   : > { %v2339_v40 = vpack.c.bf16 %v7759_v26, %v7746_v22  ;;  %v2340_v41 = vpack.c.bf16 %v7762_v27, %v7749_v51  ;;  %v2341_v42 = vpack.c.bf16 %v7765_v28, %v7752_v57  ;;  %v2342_v43 = vpack.c.bf16 %v7768_v29, %v7755_v24  ;;  %v5887_v58 = vld [vmem:[%s7161_s5 + $0x140] sm:$0xf]  ;;  %v6740_v50 = vld [vmem:[%s7161_s5 + $0x14c] sm:$0xf0]  ;;  %v6738_v56 = vld [vmem:[%s7161_s5 + $0x144] sm:$0xf] }
 0x55d   : > { %v5744_v20 = vor.u32 %v6704_v18, %v5743_v17  ;;  %v5748_v33 = vor.u32 %v6702_v25, %v5745_v30  ;;  %v5924_v53 = vor.u32 %v6746_v6, %v5921_v49  ;;  %v5832_v4 = vor.u32 %v6725_v37, %v5831_v3  ;;  %v5815_v14 = vld [vmem:[%s7161_s5 + $0xa8] sm:$0xf]  ;;  %v6721_v15 = vld [vmem:[%s7161_s5 + $0xb4] sm:$0xf0]  ;;  %v5871_v18 = vld [vmem:[%s7161_s5 + $0x120] sm:$0xf] }
 0x55e   : > { %2741 = vmatmul.bf16.vlgmr.msra.gmra.mxu0 %v2339_v40  ;;  %2755 = vmatmul.bf16.vlgmr.msra.gmra.mxu1 %v2340_v41  ;;  %v5816_v48 = vor.u32 %v6721_v15, %v5815_v14  ;;  %v6736_v19 = vld [vmem:[%s7161_s5 + $0x12c] sm:$0xf0]  ;;  %v5873_v25 = vld [vmem:[%s7161_s5 + $0x130] sm:$0xf0]  ;;  %v5799_v30 = vld [vmem:[%s7161_s5 + $0x88] sm:$0xf] }
 0x55f   : > { %2769 = vmatmul.bf16.vlgmr.msra.gmra.mxu2 %v2341_v42  ;;  %2783 = vmatmul.bf16.vlgmr.msra.gmra.mxu3 %v2342_v43  ;;  %v5872_v21 = vor.u32 %v6736_v19, %v5871_v18  ;;  %v5975_v49 = vld [vmem:[%s7161_s5 + $0x1e8] sm:$0xf]  ;;  %v6757_v3 = vld [vmem:[%s7161_s5 + $0x1d4] sm:$0xf0]  ;;  %v6707_v37 = vld [vmem:[%s7161_s5 + $0x4c] sm:$0xf] }
 0x560   : > { %3245 = vmatpush.bf16.msra.mxu0 %v5840_v34  ;;  %3273 = vmatpush.bf16.msra.mxu2 %v5844_v39  ;;  %v6750_v34 = vld [vmem:[%s7161_s5 + $0x1a4] sm:$0xf]  ;;  %v5937_v39 = vld [vmem:[%s7161_s5 + $0x1b0] sm:$0xf0]  ;;  %v6753_v15 = vld [vmem:[%s7161_s5 + $0x1b4] sm:$0xf0] }
 0x561   : > { %3259 = vmatpush.bf16.msra.mxu1 %v5968_v52  ;;  %3287 = vmatpush.bf16.msra.mxu3 %v5972_v63  ;;  %v5732_v63 = vor.u32 %v6698_v46, %v5729_v23  ;;  %v5857_v46 = vld [vmem:[%s7161_s5 + $0x110] sm:$0xf0]  ;;  %v5783_v23 = vld [vmem:[%s7161_s5 + $0x68] sm:$0xf]  ;;  %v6751_v19 = vld [vmem:[%s7161_s5 + $0x1ac] sm:$0xf] }
 0x564   : > { %3246 = vmatpush.bf16.msra.mxu0 %v5824_v59  ;;  %3274 = vmatpush.bf16.msra.mxu2 %v5828_v60  ;;  %v6729_v59 = vld [vmem:[%s7161_s5 + $0xf4] sm:$0xf0]  ;;  %v6727_v60 = vld [vmem:[%s7161_s5 + $0xec] sm:$0xf] }
 0x565   : > { %3260 = vmatpush.bf16.msra.mxu1 %v5952_v0  ;;  %3288 = vmatpush.bf16.msra.mxu3 %v5956_v1  ;;  %v5848_v61 = vor.u32 %v6729_v59, %v5847_v8  ;;  %v5852_v54 = vor.u32 %v6727_v60, %v5849_v35  ;;  %v6744_v0 = vld [vmem:[%s7161_s5 + $0x16c] sm:$0xf0]  ;;  %v6742_v1 = vld [vmem:[%s7161_s5 + $0x164] sm:$0xf]  ;;  %v6761_v8 = vld [vmem:[%s7161_s5 + $0x1f4] sm:$0xf0] }
 0x566   : > { %v5976_v59 = vor.u32 %v6761_v8, %v5975_v49  ;;  %v5785_v60 = vld [vmem:[%s7161_s5 + $0x78] sm:$0xf0]  ;;  %v6759_v35 = vld [vmem:[%s7161_s5 + $0x1ec] sm:$0xf]  ;;  %v6745_v49 = vld [vmem:[%s7161_s5 + $0x174] sm:$0xf0] }
 0x567   : > { %v6743_v8 = vld [vmem:[%s7161_s5 + $0x16c] sm:$0xf] }
 0x568   : > { %3247 = vmatpush.bf16.msra.mxu0 %v5808_v2  ;;  %3275 = vmatpush.bf16.msra.mxu2 %v5812_v36  ;;  %v5904_v2 = vor.u32 %v6744_v0, %v5903_v62  ;;  %v5905_v36 = vld [vmem:[%s7161_s5 + $0x170] sm:$0xf0]  ;;  %v5767_v0 = vld [vmem:[%s7161_s5 + $0x48] sm:$0xf] }
 0x569   : > { %3261 = vmatpush.bf16.msra.mxu1 %v5936_v31  ;;  %v5908_v38 = vor.u32 %v6742_v1, %v5905_v36  ;;  %v6717_v31 = vld [vmem:[%s7161_s5 + $0x94] sm:$0xf0] }
 0x56a   : > { %v6709_v1 = vld [vmem:[%s7161_s5 + $0x54] sm:$0xf0] }
 0x56b   : > { %v5768_v36 = vor.u32 %v6709_v1, %v5767_v0  ;;  %v6739_v0 = vld [vmem:[%s7161_s5 + $0x14c] sm:$0xf] }
 0x56c   : > { %3248 = vmatpush.bf16.msra.mxu0 %v5792_v7  ;;  %3276 = vmatpush.bf16.msra.mxu2 %v5796_v9  ;;  %v6723_v7 = vld [vmem:[%s7161_s5 + $0xcc] sm:$0xf]  ;;  %v5833_v9 = vld [vmem:[%s7161_s5 + $0xd8] sm:$0xf0] }
 0x56d   : > { %v5836_v10 = vor.u32 %v6723_v7, %v5833_v9  ;;  %v6755_v9 = vld [vmem:[%s7161_s5 + $0x1cc] sm:$0xf] }
 0x56e   : > { %2797 = vmatmul.bf16.vlgmr.msrb.gmra.mxu0 %v2339_v40  ;;  %2811 = vmatmul.bf16.vlgmr.msrb.gmra.mxu1 %v2340_v41  ;;  %v5940_v40 = vor.u32 %v6750_v34, %v5937_v39  ;;  %v5727_v41 = vld [vmem:[%s7161_s5] sm:$0xf]  ;;  %v5800_v34 = vor.u32 %v6717_v31, %v5799_v30  ;;  %v6715_v39 = vld [vmem:[%s7161_s5 + $0x8c] sm:$0xf]  ;;  %v5735_v30 = vld [vmem:[%s7161_s5 + $0x8] sm:$0xf] }
 0x56f   : > { %2825 = vmatmul.bf16.vlgmr.msrb.gmra.mxu2 %v2341_v42  ;;  %2839 = vmatmul.bf16.vlgmr.msrb.gmra.mxu3 %v2342_v43  ;;  %v6700_v42 = vld [vmem:[%s7161_s5 + $0xc] sm:$0xf0]  ;;  %v5919_v43 = vld [vmem:[%s7161_s5 + $0x180] sm:$0xf]  ;;  %v6701_v31 = vld [vmem:[%s7161_s5 + $0x14] sm:$0xf0] }
 0x570   : > { %3249 = vmatpush.bf16.msra.mxu0 %v5776_v11  ;;  %3277 = vmatpush.bf16.msra.mxu2 %v5780_v13  ;;  %v5728_v44 = vor.u32 %v6700_v42, %v5727_v41  ;;  %v5920_v52 = vor.u32 %v6748_v45, %v5919_v43  ;;  %v5888_v11 = vor.u32 %v6740_v50, %v5887_v58  ;;  %v5889_v13 = vld [vmem:[%s7161_s5 + $0x150] sm:$0xf0]  ;;  %v5855_v42 = vld [vmem:[%s7161_s5 + $0x100] sm:$0xf]  ;;  %v6732_v43 = vld [vmem:[%s7161_s5 + $0x10c] sm:$0xf0] }
 0x571   : > { %3289 = vmatpush.bf16.msra.mxu3 %v5940_v40  ;;  %v5892_v47 = vor.u32 %v6738_v56, %v5889_v13  ;;  %v5801_v40 = vld [vmem:[%s7161_s5 + $0x98] sm:$0xf0]  ;;  %v5856_v45 = vor.u32 %v6732_v43, %v5855_v42  ;;  %v7870_v58 = vld [vmem:[%s7156_s4] sm:$0x3]  ;;  %v5751_v56 = vld [vmem:[%s7161_s5 + $0x28] sm:$0xf] }
 0x572   : > { %3262 = vmatpush.bf16.msra.mxu1 %v5920_v52  ;;  %v5804_v41 = vor.u32 %v6715_v39, %v5801_v40  ;;  %v6713_v52 = vld [vmem:[%s7161_s5 + $0x74] sm:$0xf0]  ;;  %v5943_v13 = vld [vmem:[%s7161_s5 + $0x1a8] sm:$0xf]  ;;  %v6699_v40 = vld [vmem:[%s7161_s5 + $0xc] sm:$0xf] }
 0x573   : > { %v5784_v6 = vor.u32 %v6713_v52, %v5783_v23  ;;  %v6749_v39 = vld [vmem:[%s7161_s5 + $0x194] sm:$0xf0] }
 0x574   : > { %3250 = vmatpush.bf16.msra.mxu0 %v5760_v55  ;;  %3278 = vmatpush.bf16.msra.mxu2 %v5764_v5  ;;  %v6719_v55 = vld [vmem:[%s7161_s5 + $0xac] sm:$0xf]  ;;  %v5817_v5 = vld [vmem:[%s7161_s5 + $0xb8] sm:$0xf0] }
 0x575   : > { %3290 = vmatpush.bf16.msra.mxu3 %v5924_v53  ;;  %v5820_v17 = vor.u32 %v6719_v55, %v5817_v5  ;;  %v6711_v53 = vld [vmem:[%s7161_s5 + $0x6c] sm:$0xf] }
 0x576   : > { %3263 = vmatpush.bf16.msra.mxu1 %v5904_v2  ;;  %v5959_v2 = vld [vmem:[%s7161_s5 + $0x1c8] sm:$0xf] }
 0x578   : > { %3251 = vmatpush.bf16.msra.mxu0 %v5744_v20  ;;  %3279 = vmatpush.bf16.msra.mxu2 %v5748_v33  ;;  %v6734_v20 = vld [vmem:[%s7161_s5 + $0x124] sm:$0xf] }
 0x579   : > { %3291 = vmatpush.bf16.msra.mxu3 %v5908_v38  ;;  %v5876_v33 = vor.u32 %v6734_v20, %v5873_v25  ;;  %v5769_v38 = vld [vmem:[%s7161_s5 + $0x58] sm:$0xf0] }
 0x57a   : > { %3264 = vmatpush.bf16.msra.mxu1 %v5888_v11  ;;  %v5772_v7 = vor.u32 %v6707_v37, %v5769_v38  ;;  %v6705_v11 = vld [vmem:[%s7161_s5 + $0x34] sm:$0xf0]  ;;  %v5945_v20 = vld [vmem:[%s7161_s5 + $0x1b8] sm:$0xf0]  ;;  %v5879_v37 = vld [vmem:[%s7161_s5 + $0x128] sm:$0xf] }
 0x57b   : > { %v5752_v14 = vor.u32 %v6705_v11, %v5751_v56  ;;  %v5948_v25 = vor.u32 %v6751_v19, %v5945_v20  ;;  %v6737_v38 = vld [vmem:[%s7161_s5 + $0x134] sm:$0xf0]  ;;  %v6731_v20 = vld [vmem:[%s7161_s5 + $0x10c] sm:$0xf] }
 0x57c   : > { %3252 = vmatpush.bf16.msra.mxu0 %v5728_v44  ;;  %3280 = vmatpush.bf16.msra.mxu2 %v5732_v63  ;;  %v6730_v44 = vld [vmem:[%s7161_s5 + $0x104] sm:$0xf]  ;;  %v5880_v56 = vor.u32 %v6737_v38, %v5879_v37 }
 0x57d   : > { %3292 = vmatpush.bf16.msra.mxu3 %v5892_v47  ;;  %v5860_v63 = vor.u32 %v6730_v44, %v5857_v46  ;;  %v6703_v47 = vld [vmem:[%s7161_s5 + $0x2c] sm:$0xf] }
 0x57e   : > { %3265 = vmatpush.bf16.msra.mxu1 %v5872_v21  ;;  %v2409_v21 = vperm.slane %v7870_v58, 0  ;;  %v6747_v44 = vld [vmem:[%s7161_s5 + $0x18c] sm:$0xf] }
 0x580   : > { %3301 = vmatpush.bf16.msrb.mxu0 %v5848_v61  ;;  %3329 = vmatpush.bf16.msrb.mxu2 %v5852_v54  ;;  %v5977_v61 = vld [vmem:[%s7161_s5 + $0x1f8] sm:$0xf0]  ;;  %v5788_v54 = vor.u32 %v6711_v53, %v5785_v60 }
 0x581   : > { %3293 = vmatpush.bf16.msra.mxu3 %v5876_v33  ;;  %v5980_v62 = vor.u32 %v6759_v35, %v5977_v61  ;;  %v5927_v33 = vld [vmem:[%s7161_s5 + $0x188] sm:$0xf]  ;;  %v5913_v60 = vld [vmem:[%s7161_s5 + $0x178] sm:$0xf0] }
 0x582   : > { %3266 = vmatpush.bf16.msra.mxu1 %v5856_v45  ;;  %v5928_v42 = vor.u32 %v6749_v39, %v5927_v33  ;;  %v5929_v45 = vld [vmem:[%s7161_s5 + $0x198] sm:$0xf0]  ;;  %v5916_v61 = vor.u32 %v6743_v8, %v5913_v60 }
 0x583   : > { %v5932_v46 = vor.u32 %v6747_v44, %v5929_v45 }
 0x584   : > { %3302 = vmatpush.bf16.msrb.mxu0 %v5832_v4  ;;  %3330 = vmatpush.bf16.msrb.mxu2 %v5836_v10  ;;  %v5960_v4 = vor.u32 %v6757_v3, %v5959_v2  ;;  %v5961_v10 = vld [vmem:[%s7161_s5 + $0x1d8] sm:$0xf0] }
 0x585   : > { %3294 = vmatpush.bf16.msra.mxu3 %v5860_v63  ;;  %v5964_v50 = vor.u32 %v6755_v9, %v5961_v10  ;;  %v5897_v3 = vld [vmem:[%s7161_s5 + $0x158] sm:$0xf0]  ;;  %v6735_v9 = vld [vmem:[%s7161_s5 + $0x12c] sm:$0xf] }
 0x586   : > { %3315 = vmatpush.bf16.msrb.mxu1 %v5976_v59  ;;  %v5881_v10 = vld [vmem:[%s7161_s5 + $0x138] sm:$0xf0] }
 0x588   : > { %3303 = vmatpush.bf16.msrb.mxu0 %v5816_v48  ;;  %3331 = vmatpush.bf16.msrb.mxu2 %v5820_v17  ;;  %v5753_v48 = vld [vmem:[%s7161_s5 + $0x38] sm:$0xf0]  ;;  %v5944_v17 = vor.u32 %v6753_v15, %v5943_v13  ;;  %v6733_v15 = vld [vmem:[%s7161_s5 + $0x114] sm:$0xf0] }
 0x589   : > { %3343 = vmatpush.bf16.msrb.mxu3 %v5980_v62  ;;  %v5756_v18 = vor.u32 %v6703_v47, %v5753_v48  ;;  %v6741_v62 = vld [vmem:[%s7161_s5 + $0x154] sm:$0xf0] }
 0x58a   : > { %3316 = vmatpush.bf16.msrb.mxu1 %v5960_v4 }
 0x58c   : > { %3304 = vmatpush.bf16.msrb.mxu0 %v5800_v34  ;;  %3332 = vmatpush.bf16.msrb.mxu2 %v5804_v41  ;;  %v5736_v34 = vor.u32 %v6701_v31, %v5735_v30  ;;  %v5737_v41 = vld [vmem:[%s7161_s5 + $0x18] sm:$0xf0] }
 0x58d   : > { %3344 = vmatpush.bf16.msrb.mxu3 %v5964_v50  ;;  %v5740_v43 = vor.u32 %v6699_v40, %v5737_v41 }
 0x58e   : > { %3317 = vmatpush.bf16.msrb.mxu1 %v5944_v17 }
 0x590   : > { %3305 = vmatpush.bf16.msrb.mxu0 %v5784_v6  ;;  %3333 = vmatpush.bf16.msrb.mxu2 %v5788_v54  ;;  %v5911_v6 = vld [vmem:[%s7161_s5 + $0x168] sm:$0xf] }
 0x591   : > { %3345 = vmatpush.bf16.msrb.mxu3 %v5948_v25  ;;  %v5912_v59 = vor.u32 %v6745_v49, %v5911_v6  ;;  %v5895_v54 = vld [vmem:[%s7161_s5 + $0x148] sm:$0xf] }
 0x592   : > { %3318 = vmatpush.bf16.msrb.mxu1 %v5928_v42 }
 0x594   : > { %3306 = vmatpush.bf16.msrb.mxu0 %v5768_v36  ;;  %3334 = vmatpush.bf16.msrb.mxu2 %v5772_v7  ;;  %v5896_v36 = vor.u32 %v6741_v62, %v5895_v54  ;;  %v5900_v7 = vor.u32 %v6739_v0, %v5897_v3 }
 0x595   : > { %3346 = vmatpush.bf16.msrb.mxu3 %v5932_v46 }
 0x596   : > { %3319 = vmatpush.bf16.msrb.mxu1 %v5912_v59 }
 0x598   : > { %3307 = vmatpush.bf16.msrb.mxu0 %v5752_v14  ;;  %3335 = vmatpush.bf16.msrb.mxu2 %v5756_v18  ;;  %v5863_v14 = vld [vmem:[%s7161_s5 + $0x108] sm:$0xf]  ;;  %v2410_v18 = vperm.slane %v7870_v58, 1 }
 0x599   : > { %3347 = vmatpush.bf16.msrb.mxu3 %v5916_v61  ;;  %v5864_v19 = vor.u32 %v6733_v15, %v5863_v14 }
 0x59a   : > { %3320 = vmatpush.bf16.msrb.mxu1 %v5896_v36 }
 0x59c   : > { %3308 = vmatpush.bf16.msrb.mxu0 %v5736_v34  ;;  %3336 = vmatpush.bf16.msrb.mxu2 %v5740_v43 }
 0x59d   : > { %3348 = vmatpush.bf16.msrb.mxu3 %v5900_v7 }
 0x59e   : > { %3321 = vmatpush.bf16.msrb.mxu1 %v5880_v56 }
 0x5a2   : > { %3322 = vmatpush.bf16.msrb.mxu1 %v5864_v19 }
 0x5db   : > { %v2742_v55 = vpop.f32.mrf.mxu0  ;;  %v2756_v5 = vpop.f32.mrf.mxu1 }
 0x5dc   : > { %v2743_v23 = vadd.f32 %v2742_v55, %v2409_v21 }
 0x5de   : > { %v2757_v1 = vadd.f32 %v2756_v5, %v2743_v23  ;;  %v5884_v5 = vor.u32 %v6735_v9, %v5881_v10 }
 0x5e0   : > { %3349 = vmatpush.bf16.msrb.mxu3 %v5884_v5 }
 0x5e2   : > { %v2770_v52 = vpop.f32.mrf.mxu2  ;;  %v2784_v63 = vpop.f32.mrf.mxu3 }
 0x5e3   : > { %v2744_v53 = vpop.f32.mrf.mxu0  ;;  %v2758_v35 = vpop.f32.mrf.mxu1  ;;  %v2771_v4 = vadd.f32 %v2770_v52, %v2757_v1  ;;  %v2915_v1 = vld [vmem:[%s857_s26] sm:$0xf]  ;;  %s9042_s26 = sld [smem:[#allocation16_spill]] (!%p5981_p5) }
 0x5e4   : > { %v2745_v2 = vadd.f32 %v2744_v53, %v2409_v21  ;;  %v5865_v21 = vld [vmem:[%s7161_s5 + $0x118] sm:$0xf0]  ;;  %v2918_v36 = vperm.slane %v2915_v1, 1  ;;  %v2917_v37 = vperm.slane %v2915_v1, 0  ;;  %v2919_v38 = vperm.slane %v2915_v1, 2 }
 0x5e5   : > { %v2785_v47 = vadd.f32 %v2784_v63, %v2771_v4  ;;  %v5868_v33 = vor.u32 %v6731_v20, %v5865_v21  ;;  %v2920_v14 = vperm.slane %v2915_v1, 3 }
 0x5e6   : > { %v2759_v50 = vadd.f32 %v2758_v35, %v2745_v2 }
 0x5e7   : > { %v2845_v30 = vmax.f32 %v2785_v47, 0.0  ;;  %3350 = vmatpush.bf16.msrb.mxu3 %v5868_v33 }
 0x5ea   : > { %v2772_v11 = vpop.f32.mrf.mxu2  ;;  %v2786_v13 = vpop.f32.mrf.mxu3 }
 0x5eb   : > { %v2773_v48 = vadd.f32 %v2772_v11, %v2759_v50  ;;  %v2798_v55 = vpop.f32.mrf.mxu0  ;;  %v2812_v25 = vpop.f32.mrf.mxu1 }
 0x5ec   : > { %v2799_v39 = vadd.f32 %v2798_v55, %v2410_v18 }
 0x5ed   : > { %v2787_v17 = vadd.f32 %v2786_v13, %v2773_v48 }
 0x5ee   : > { %v2813_v43 = vadd.f32 %v2812_v25, %v2799_v39 }
 0x5ef   : > { %v2847_v31 = vmax.f32 %v2787_v17, 0.0 }
 0x5f1   : > { %v2849_v34 = vpack.c.bf16 %v2847_v31, %v2845_v30 }
 0x5f2   : > { %v2826_v40 = vpop.f32.mrf.mxu2  ;;  %v2840_v41 = vpop.f32.mrf.mxu3 }
 0x5f3   : > { %3253 = vmatmul.bf16.vlgmr.msra.gmra.mxu0 %v2849_v34  ;;  %3281 = vmatmul.bf16.vlgmr.msra.gmra.mxu2 %v2849_v34  ;;  %v2800_v42 = vpop.f32.mrf.mxu0  ;;  %v2827_v44 = vadd.f32 %v2826_v40, %v2813_v43  ;;  %v2814_v45 = vpop.f32.mrf.mxu1 }
 0x5f4   : > { %v2801_v58 = vadd.f32 %v2800_v42, %v2410_v18 }
 0x5f5   : > { %v2841_v52 = vadd.f32 %v2840_v41, %v2827_v44 }
 0x5f6   : > { %v2815_v46 = vadd.f32 %v2814_v45, %v2801_v58 }
 0x5f7   : > { %v2846_v8 = vmax.f32 %v2841_v52, 0.0 }
 0x5fa   : > { %v2828_v23 = vpop.f32.mrf.mxu2  ;;  %v2842_v6 = vpop.f32.mrf.mxu3 }
 0x5fb   : > { %v2829_v63 = vadd.f32 %v2828_v23, %v2815_v46 }
 0x5fd   : > { %v2843_v49 = vadd.f32 %v2842_v6, %v2829_v63 }
 0x5ff   : > { %v2848_v53 = vmax.f32 %v2843_v49, 0.0 }
 0x601   : > { %v2850_v59 = vpack.c.bf16 %v2848_v53, %v2846_v8 }
 0x603   : > { %3267 = vmatmul.bf16.vlgmr.msra.gmra.mxu1 %v2850_v59  ;;  %3295 = vmatmul.bf16.vlgmr.msra.gmra.mxu3 %v2850_v59 }
 0x604   : > { %3309 = vmatmul.bf16.vlgmr.msrb.gmra.mxu0 %v2849_v34  ;;  %3337 = vmatmul.bf16.vlgmr.msrb.gmra.mxu2 %v2849_v34 }
 0x613   : > { %3323 = vmatmul.bf16.vlgmr.msrb.gmra.mxu1 %v2850_v59  ;;  %3351 = vmatmul.bf16.vlgmr.msrb.gmra.mxu3 %v2850_v59 }
 0x670   : > { %v3254_v60 = vpop.f32.mrf.mxu0 }
 0x671   : > { %v3255_v9 = vadd.f32 %v3254_v60, %v2917_v37 }
 0x676   : > { %v3282_v35 = vpop.f32.mrf.mxu2 }
 0x677   : > { %v3283_v4 = vadd.f32 %v3282_v35, %v2918_v36 }
 0x678   : > { %v3256_v61 = vpop.f32.mrf.mxu0 }
 0x679   : > { %v3257_v19 = vadd.f32 %v3256_v61, %v2917_v37 }
 0x67e   : > { %v3284_v62 = vpop.f32.mrf.mxu2 }
 0x67f   : > { %v3285_v55 = vadd.f32 %v3284_v62, %v2918_v36 }
 0x680   : > { %v3268_v54 = vpop.f32.mrf.mxu1 }
 0x681   : > { %v3310_v3 = vpop.f32.mrf.mxu0  ;;  %v3269_v13 = vadd.f32 %v3268_v54, %v3255_v9 }
 0x682   : > { %v3311_v10 = vadd.f32 %v3310_v3, %v2919_v38 }
 0x683   : > { %v3357_v5 = vadd.f32 %v3269_v13, %v7746_v22 }
 0x686   : > { %v3296_v0 = vpop.f32.mrf.mxu3 }
 0x687   : > { %v3297_v50 = vadd.f32 %v3296_v0, %v3283_v4  ;;  %v3338_v56 = vpop.f32.mrf.mxu2 }
 0x688   : > { %v3270_v2 = vpop.f32.mrf.mxu1  ;;  %v3339_v17 = vadd.f32 %v3338_v56, %v2920_v14 }
 0x689   : > { %v3358_v47 = vadd.f32 %v3297_v50, %v7749_v51  ;;  %v3312_v48 = vpop.f32.mrf.mxu0  ;;  %v3271_v34 = vadd.f32 %v3270_v2, %v3257_v19 }
 0x68a   : > { %v3313_v25 = vadd.f32 %v3312_v48, %v2919_v38 }
 0x68b   : > { %v3367_v21 = vadd.f32 %v3358_v47, %v3357_v5  ;;  %v3361_v22 = vadd.f32 %v3271_v34, %v7759_v26 }
 0x68e   : > { %v3298_v7 = vpop.f32.mrf.mxu3 }
 0x68f   : > { %v3299_v30 = vadd.f32 %v3298_v7, %v3285_v55  ;;  %v3340_v51 = vpop.f32.mrf.mxu2 }
 0x690   : > { %v3324_v11 = vpop.f32.mrf.mxu1  ;;  %v3341_v58 = vadd.f32 %v3340_v51, %v2920_v14 }
 0x691   : > { %v3325_v15 = vadd.f32 %v3324_v11, %v3311_v10  ;;  %v3362_v42 = vadd.f32 %v3299_v30, %v7762_v27 }
 0x693   : > { %v3359_v18 = vadd.f32 %v3325_v15, %v7752_v57  ;;  %v3372_v45 = vadd.f32 %v3362_v42, %v3361_v22 }
 0x695   : > { %v3368_v41 = vadd.f32 %v3367_v21, %v3359_v18 }
 0x696   : > { %v3352_v20 = vpop.f32.mrf.mxu3 }
 0x697   : > { %v3353_v31 = vadd.f32 %v3352_v20, %v3339_v17 }
 0x698   : > { %v3326_v33 = vpop.f32.mrf.mxu1 }
 0x699   : > { %v3360_v39 = vadd.f32 %v3353_v31, %v7755_v24  ;;  %v3327_v40 = vadd.f32 %v3326_v33, %v3313_v25 }
 0x69b   : > { %v3369_v43 = vadd.f32 %v3368_v41, %v3360_v39  ;;  %v3363_v57 = vadd.f32 %v3327_v40, %v7765_v28 }
 0x69d   : > { %3370 = vadd.xlane.f32.xlu2 %v3369_v43  ;;  %v3373_v52 = vadd.f32 %v3372_v45, %v3363_v57 }
 0x69e   : > { %v3354_v44 = vpop.f32.mrf.mxu3 }
 0x69f   : > { %v3355_v46 = vadd.f32 %v3354_v44, %v3341_v58 }
 0x6a1   : > { %v3364_v23 = vadd.f32 %v3355_v46, %v7768_v29 }
 0x6a3   : > { %v3374_v63 = vadd.f32 %v3373_v52, %v3364_v23 }
 0x6a5   : > { %3375 = vadd.xlane.f32.xlu1 %v3374_v63 }
 0x710   : > { %v3371_v24 = vpop.xlane.xlu2 %3370 }
 0x711   : > { %v3377_v6 = vmul.f32 %v3371_v24, %v7533_v32 }
 0x713   : > { %v3379_v49 = vsub.f32 %v3357_v5, %v3377_v6  ;;  %v3380_v27 = vsub.f32 %v3358_v47, %v3377_v6  ;;  %v3381_v8 = vsub.f32 %v3359_v18, %v3377_v6  ;;  %v3382_v53 = vsub.f32 %v3360_v39, %v3377_v6  ;;  %v3365_v5 = vld [vmem:[%s861_s17] sm:$0xf]  ;;  %s9039_s17 = sld [smem:[#allocation8_spill]] (!%p5981_p5) }
 0x714   : > { %v3366_v18 = vld [vmem:[%s865_s10] sm:$0xf]  ;;  %v3439_v21 = vperm.slane %v3365_v5, 1  ;;  %v3440_v31 = vperm.slane %v3365_v5, 2  ;;  %v3441_v33 = vperm.slane %v3365_v5, 3 }
 0x715   : > { %v3387_v26 = vmul.f32 %v3379_v49, %v3379_v49  ;;  %v3388_v59 = vmul.f32 %v3380_v27, %v3380_v27  ;;  %v3389_v60 = vmul.f32 %v3381_v8, %v3381_v8  ;;  %v3390_v54 = vmul.f32 %v3382_v53, %v3382_v53 }
 0x716   : > { %v3455_v34 = vperm.slane %v3366_v18, 0  ;;  %v3456_v39 = vperm.slane %v3366_v18, 1  ;;  %v3457_v40 = vperm.slane %v3366_v18, 2  ;;  %v3458_v41 = vperm.slane %v3366_v18, 3 }
 0x717   : > { %v3395_v28 = vadd.f32 %v3388_v59, %v3387_v26 }
 0x718   : > { %v3376_v35 = vpop.xlane.xlu1 %3375 }
 0x719   : > { %v3378_v61 = vmul.f32 %v3376_v35, %v7533_v32  ;;  %v3396_v62 = vadd.f32 %v3395_v28, %v3389_v60 }
 0x71b   : > { %v7921_v29 = vsub.f32 %v3361_v22, %v3378_v61  ;;  %v7923_v0 = vsub.f32 %v3362_v42, %v3378_v61  ;;  %v3397_v1 = vadd.f32 %v3396_v62, %v3390_v54  ;;  %v7925_v2 = vsub.f32 %v3363_v57, %v3378_v61 }
 0x71c   : > { %v7927_v36 = vsub.f32 %v3364_v23, %v3378_v61 }
 0x71d   : > { %3398 = vadd.xlane.f32.xlu2 %v3397_v1  ;;  %v3391_v3 = vmul.f32 %v7921_v29, %v7921_v29  ;;  %v3392_v37 = vmul.f32 %v7923_v0, %v7923_v0  ;;  %v3393_v38 = vmul.f32 %v7925_v2, %v7925_v2 }
 0x71e   : > { %v3394_v7 = vmul.f32 %v7927_v36, %v7927_v36 }
 0x71f   : > { %v3400_v4 = vadd.f32 %v3392_v37, %v3391_v3 }
 0x721   : > { %v3401_v9 = vadd.f32 %v3400_v4, %v3393_v38 }
 0x723   : > { %v3402_v10 = vadd.f32 %v3401_v9, %v3394_v7 }
 0x725   : > { %3403 = vadd.xlane.f32.xlu2 %v3402_v10 }
 0x790   : > { %v3399_v50 = vpop.xlane.xlu2 %3398 }
 0x791   : > { %v3405_v56 = vmul.f32 %v3399_v50, %v7533_v32 }
 0x793   : > { %v3407_v11 = vadd.f32 1e-05, %v3405_v56 }
 0x795   : > { %6934 = vrsqrt.f32 %v3407_v11  ;;  %vm3415_vm10 = vweird.f32 %v3407_v11 }
 0x798   : > { %v3404_v13 = vpop.xlane.xlu2 %3403 }
 0x799   : > { %v3406_v14 = vmul.f32 %v3404_v13, %v7533_v32  ;;  %v3438_v32 = vperm.slane %v3365_v5, 0 }
 0x79b   : > { %v6935_v15 = vpop.eup %6934  ;;  %v3408_v47 = vadd.f32 1e-05, %v3406_v14 }
 0x79c   : > { %v3410_v48 = vmul.f32 %v6935_v15, %v3407_v11  ;;  %vm3416_vm9 = vweird.f32 %v6935_v15 }
 0x79d   : > { %6936 = vrsqrt.f32 %v3408_v47  ;;  %vm3417_vm11 = vmor %vm3415_vm10, %vm3416_vm9  ;;  %vm3425_vm13 = vweird.f32 %v3408_v47 }
 0x79e   : > { %v3411_v55 = vmul.f32 %v6935_v15, %v3410_v48 }
 0x7a0   : > { %v3412_v17 = vmul.f32 0.5, %v3411_v55 }
 0x7a2   : > { %v3413_v19 = vsub.f32 1.5, %v3412_v17 }
 0x7a3   : > { %v6937_v20 = vpop.eup %6936 }
 0x7a4   : > { %v3414_v25 = vmul.f32 %v6935_v15, %v3413_v19  ;;  %v3420_v30 = vmul.f32 %v6937_v20, %v3408_v47  ;;  %vm3426_vm12 = vweird.f32 %v6937_v20 }
 0x7a5   : > { %vm3427_vm14 = vmor %vm3425_vm13, %vm3426_vm12 }
 0x7a6   : > { %v3418_v51 = vsel %vm3417_vm11, %v6935_v15, %v3414_v25  ;;  %v3421_v42 = vmul.f32 %v6937_v20, %v3420_v30 }
 0x7a7   : > { %v3429_v43 = vmul.f32 %v3418_v51, %v3379_v49  ;;  %v3430_v22 = vmul.f32 %v3418_v51, %v3380_v27  ;;  %v3431_v58 = vmul.f32 %v3418_v51, %v3381_v8  ;;  %v3432_v57 = vmul.f32 %v3418_v51, %v3382_v53 }
 0x7a8   : > { %v3422_v44 = vmul.f32 0.5, %v3421_v42 }
 0x7a9   : > { %v3446_v45 = vmul.f32 %v3438_v32, %v3429_v43  ;;  %v3447_v46 = vmul.f32 %v3439_v21, %v3430_v22  ;;  %v3448_v23 = vmul.f32 %v3440_v31, %v3431_v58  ;;  %v3449_v52 = vmul.f32 %v3441_v33, %v3432_v57 }
 0x7aa   : > { %v3423_v63 = vsub.f32 1.5, %v3422_v44 }
 0x7ab   : > { %v3463_v24 = vadd.f32 %v3455_v34, %v3446_v45  ;;  %v3464_v6 = vadd.f32 %v3456_v39, %v3447_v46  ;;  %v3465_v26 = vadd.f32 %v3457_v40, %v3448_v23  ;;  %v3466_v59 = vadd.f32 %v3458_v41, %v3449_v52 }
 0x7ac   : > { %v3424_v60 = vmul.f32 %v6937_v20, %v3423_v63 }
 0x7ad   : > { %v3471_v28 = vmul.f32 %v3463_v24, %v7737_v12  ;;  %v3472_v49 = vmul.f32 %v3464_v6, %v7737_v12  ;;  %v3473_v27 = vmul.f32 %v3465_v26, %v7737_v12  ;;  %v3474_v8 = vmul.f32 %v3466_v59, %v7737_v12 }
 0x7ae   : > { %v3428_v53 = vsel %vm3427_vm14, %v6937_v20, %v3424_v60 }
 0x7af   : > { %3479 = vst [vmem:[#allocation2 + $0x30] sm:$0xff] %v3471_v28  ;;  %v3433_v35 = vmul.f32 %v3428_v53, %v7921_v29  ;;  %v3434_v61 = vmul.f32 %v3428_v53, %v7923_v0  ;;  %v3435_v54 = vmul.f32 %v3428_v53, %v7925_v2  ;;  %v3436_v62 = vmul.f32 %v3428_v53, %v7927_v36 }
 0x7b0   : > { %3480 = vst [vmem:[#allocation2] sm:$0xff] %v3472_v49 }
 0x7b1   : > { %3481 = vst [vmem:[#allocation2 + $0x18] sm:$0xff] %v3473_v27  ;;  %v3450_v1 = vmul.f32 %v3438_v32, %v3433_v35  ;;  %v3451_v3 = vmul.f32 %v3439_v21, %v3434_v61  ;;  %v3452_v37 = vmul.f32 %v3440_v31, %v3435_v54  ;;  %v3453_v38 = vmul.f32 %v3441_v33, %v3436_v62 }
 0x7b2   : > { %3482 = vst [vmem:[#allocation2 + $0x10] sm:$0xff] %v3474_v8 }
 0x7b3   : > { %v3467_v4 = vadd.f32 %v3455_v34, %v3450_v1  ;;  %v3468_v7 = vadd.f32 %v3456_v39, %v3451_v3  ;;  %v3469_v12 = vadd.f32 %v3457_v40, %v3452_v37  ;;  %v3470_v9 = vadd.f32 %v3458_v41, %v3453_v38 }
 0x7b5   : > { %v3475_v10 = vmul.f32 %v3467_v4, %v7739_v16  ;;  %v3476_v29 = vmul.f32 %v3468_v7, %v7739_v16  ;;  %v3477_v0 = vmul.f32 %v3469_v12, %v7739_v16  ;;  %v3478_v2 = vmul.f32 %v3470_v9, %v7739_v16 }
 0x7b6   : > { %3490 = sbr.rel (%p5981_p5) target bundleno = 2583 (0xa17), region = 116 }
 0x7b7   : > { %3483 = vst [vmem:[#allocation2 + $0x8] sm:$0xff] %v3475_v10 }
 0x7b8   : > { %3484 = vst [vmem:[#allocation2 + $0x20] sm:$0xff] %v3476_v29 }
 0x7b9   : > { %3485 = vst [vmem:[#allocation2 + $0x28] sm:$0xff] %v3477_v0 }
 0x7ba   : > { %3486 = vst [vmem:[#allocation2 + $0x38] sm:$0xff] %v3478_v2 }
 0x7bb   : > { %3509 = vmatpush.msra.mxu0 %v3475_v10  ;;  %3529 = vmatpush.msra.mxu1 %v3476_v29  ;;  %v3491_v36 = vld [vmem:[%s9039_s17] sm:$0x3]  ;;  %v6792_v16 = vld [vmem:[%s9040_s23 + $0xec] sm:$0xf0]  ;;  %vm4744_vm15 = vcmask 9216  }
 0x7bc   : > { %v6100_v50 = vld [vmem:[%s9040_s23 + $0xe0] sm:$0xf]  ;;  %3549 = vmatpush.msra.mxu2 %v3477_v0  ;;  %3569 = vmatpush.msra.mxu3 %v3478_v2  ;;  %v6824_v11 = vld [vmem:[%s9040_s23 + $0x1ec] sm:$0xf0] }
 0x7bd   : > { %v6228_v56 = vld [vmem:[%s9040_s23 + $0x1e0] sm:$0xf]  ;;  %3510 = vmatpush.msra.mxu0 %v3471_v28  ;;  %3530 = vmatpush.msra.mxu1 %v3472_v49  ;;  %v6101_v14 = vor.u32 %v6792_v16, %v6100_v50  ;;  %v6788_v47 = vld [vmem:[%s9040_s23 + $0xcc] sm:$0xf0] }
 0x7be   : > { %v6084_v13 = vld [vmem:[%s9040_s23 + $0xc0] sm:$0xf]  ;;  %v6229_v15 = vor.u32 %v6824_v11, %v6228_v56  ;;  %v6820_v55 = vld [vmem:[%s9040_s23 + $0x1cc] sm:$0xf0]  ;;  %3550 = vmatpush.msra.mxu2 %v3473_v27  ;;  %3570 = vmatpush.msra.mxu3 %v3474_v8 }
 0x7bf   : > { %v6212_v48 = vld [vmem:[%s9040_s23 + $0x1c0] sm:$0xf]  ;;  %v6856_v17 = vld [vmem:[%s9040_s23 + $0x2ec] sm:$0xf0]  ;;  %5982 = vmatmul.msk.f32.vlgmr.msra.gmra.mxu0 %vm1788_vm1, %v3491_v36  ;;  %5983 = vmatmul.msk.f32.vlgmr.msra.gmra.mxu1 %vm1788_vm1, %v3491_v36  ;;  %v6085_v30 = vor.u32 %v6788_v47, %v6084_v13 }
 0x7c0   : > { %v6356_v5 = vld [vmem:[%s9040_s23 + $0x2e0] sm:$0xf]  ;;  %v6888_v20 = vld [vmem:[%s9040_s23 + $0x3ec] sm:$0xf0]  ;;  %5984 = vmatmul.msk.f32.vlgmr.msra.gmra.mxu2 %vm1788_vm1, %v3491_v36  ;;  %5985 = vmatmul.msk.f32.vlgmr.msra.gmra.mxu3 %vm1788_vm1, %v3491_v36  ;;  %v6213_v31 = vor.u32 %v6820_v55, %v6212_v48 }
 0x7c1   : > { %v6484_v18 = vld [vmem:[%s9040_s23 + $0x3e0] sm:$0xf]  ;;  %v6357_v19 = vor.u32 %v6856_v17, %v6356_v5  ;;  %4358 = vmatpush.bf16.msrb.mxu0 %v6101_v14  ;;  %4371 = vmatpush.bf16.msrb.mxu1 %v6229_v15  ;;  %v6852_v33 = vld [vmem:[%s9040_s23 + $0x2cc] sm:$0xf0] }
 0x7c2   : > { %v6485_v32 = vor.u32 %v6888_v20, %v6484_v18  ;;  %v6068_v21 = vld [vmem:[%s9040_s23 + $0xa0] sm:$0xf]  ;;  %v6884_v39 = vld [vmem:[%s9040_s23 + $0x3cc] sm:$0xf0] }
 0x7c3   : > { %v6340_v25 = vld [vmem:[%s9040_s23 + $0x2c0] sm:$0xf]  ;;  %4384 = vmatpush.bf16.msrb.mxu2 %v6357_v19  ;;  %v6784_v40 = vld [vmem:[%s9040_s23 + $0xac] sm:$0xf0] }
 0x7c4   : > { %v6468_v34 = vld [vmem:[%s9040_s23 + $0x3c0] sm:$0xf]  ;;  %4397 = vmatpush.bf16.msrb.mxu3 %v6485_v32  ;;  %v6816_v51 = vld [vmem:[%s9040_s23 + $0x1ac] sm:$0xf0]  ;;  %v6341_v42 = vor.u32 %v6852_v33, %v6340_v25  ;;  %v6069_v45 = vor.u32 %v6784_v40, %v6068_v21  ;;  %v6102_v40 = vld [vmem:[%s9040_s23 + $0xf0] sm:$0xf0] }
 0x7c5   : > { %v6196_v41 = vld [vmem:[%s9040_s23 + $0x1a0] sm:$0xf]  ;;  %v6469_v43 = vor.u32 %v6884_v39, %v6468_v34  ;;  %v6848_v58 = vld [vmem:[%s9040_s23 + $0x2ac] sm:$0xf0]  ;;  %4359 = vmatpush.bf16.msrb.mxu0 %v6085_v30  ;;  %4372 = vmatpush.bf16.msrb.mxu1 %v6213_v31  ;;  %v6790_v39 = vld [vmem:[%s9040_s23 + $0xe4] sm:$0xf] }
 0x7c6   : > { %v6324_v22 = vld [vmem:[%s9040_s23 + $0x2a0] sm:$0xf]  ;;  %v6880_v44 = vld [vmem:[%s9040_s23 + $0x3ac] sm:$0xf0]  ;;  %v6197_v46 = vor.u32 %v6816_v51, %v6196_v41  ;;  %v6822_v41 = vld [vmem:[%s9040_s23 + $0x1e4] sm:$0xf] }
 0x7c7   : > { %v6452_v57 = vld [vmem:[%s9040_s23 + $0x3a0] sm:$0xf]  ;;  %v6780_v52 = vld [vmem:[%s9040_s23 + $0x8c] sm:$0xf0]  ;;  %4385 = vmatpush.bf16.msrb.mxu2 %v6341_v42  ;;  %v6325_v6 = vor.u32 %v6848_v58, %v6324_v22 }
 0x7c8   : > { %v6052_v23 = vld [vmem:[%s9040_s23 + $0x80] sm:$0xf]  ;;  %4398 = vmatpush.bf16.msrb.mxu3 %v6469_v43  ;;  %v6812_v24 = vld [vmem:[%s9040_s23 + $0x18c] sm:$0xf0]  ;;  %v6453_v26 = vor.u32 %v6880_v44, %v6452_v57  ;;  %v6230_v43 = vld [vmem:[%s9040_s23 + $0x1f0] sm:$0xf0] }
 0x7c9   : > { %v6180_v63 = vld [vmem:[%s9040_s23 + $0x180] sm:$0xf]  ;;  %v6844_v60 = vld [vmem:[%s9040_s23 + $0x28c] sm:$0xf0]  ;;  %4360 = vmatpush.bf16.msrb.mxu0 %v6069_v45  ;;  %4373 = vmatpush.bf16.msrb.mxu1 %v6197_v46  ;;  %v6053_v27 = vor.u32 %v6780_v52, %v6052_v23  ;;  %v6854_v45 = vld [vmem:[%s9040_s23 + $0x2e4] sm:$0xf] }
 0x7ca   : > { %v6308_v59 = vld [vmem:[%s9040_s23 + $0x280] sm:$0xf]  ;;  %v6876_v49 = vld [vmem:[%s9040_s23 + $0x38c] sm:$0xf0]  ;;  %v6181_v8 = vor.u32 %v6812_v24, %v6180_v63  ;;  %v6358_v52 = vld [vmem:[%s9040_s23 + $0x2f0] sm:$0xf0] }
 0x7cb   : > { %v6436_v28 = vld [vmem:[%s9040_s23 + $0x380] sm:$0xf]  ;;  %v6776_v35 = vld [vmem:[%s9040_s23 + $0x6c] sm:$0xf0]  ;;  %4386 = vmatpush.bf16.msrb.mxu2 %v6325_v6  ;;  %v6309_v62 = vor.u32 %v6844_v60, %v6308_v59  ;;  %v6886_v63 = vld [vmem:[%s9040_s23 + $0x3e4] sm:$0xf]  ;;  %v6105_v6 = vor.u32 %v6790_v39, %v6102_v40 }
 0x7cc   : > { %v6036_v53 = vld [vmem:[%s9040_s23 + $0x60] sm:$0xf]  ;;  %4399 = vmatpush.bf16.msrb.mxu3 %v6453_v26  ;;  %v6808_v54 = vld [vmem:[%s9040_s23 + $0x16c] sm:$0xf0]  ;;  %v6437_v1 = vor.u32 %v6876_v49, %v6436_v28  ;;  %v6486_v24 = vld [vmem:[%s9040_s23 + $0x3f0] sm:$0xf0]  ;;  %v6233_v26 = vor.u32 %v6822_v41, %v6230_v43 }
 0x7cd   : > { %v6164_v61 = vld [vmem:[%s9040_s23 + $0x160] sm:$0xf]  ;;  %v6840_v37 = vld [vmem:[%s9040_s23 + $0x26c] sm:$0xf0]  ;;  %4361 = vmatpush.bf16.msrb.mxu0 %v6053_v27  ;;  %4374 = vmatpush.bf16.msrb.mxu1 %v6181_v8  ;;  %v6037_v7 = vor.u32 %v6776_v35, %v6036_v53  ;;  %v6786_v59 = vld [vmem:[%s9040_s23 + $0xc4] sm:$0xf]  ;;  %v6361_v53 = vor.u32 %v6854_v45, %v6358_v52  ;;  %v6489_v35 = vor.u32 %v6886_v63, %v6486_v24 }
 0x7ce   : > { %v6292_v3 = vld [vmem:[%s9040_s23 + $0x260] sm:$0xf]  ;;  %v6872_v4 = vld [vmem:[%s9040_s23 + $0x36c] sm:$0xf0]  ;;  %v6165_v12 = vor.u32 %v6808_v54, %v6164_v61  ;;  %v6086_v60 = vld [vmem:[%s9040_s23 + $0xd0] sm:$0xf0] }
 0x7cf   : > { %v6420_v38 = vld [vmem:[%s9040_s23 + $0x360] sm:$0xf]  ;;  %v6772_v10 = vld [vmem:[%s9040_s23 + $0x4c] sm:$0xf0]  ;;  %4387 = vmatpush.bf16.msrb.mxu2 %v6309_v62  ;;  %v6293_v2 = vor.u32 %v6840_v37, %v6292_v3  ;;  %v6818_v28 = vld [vmem:[%s9040_s23 + $0x1c4] sm:$0xf]  ;;  %v6089_v3 = vor.u32 %v6786_v59, %v6086_v60 }
 0x7d0   : > { %v6020_v9 = vld [vmem:[%s9040_s23 + $0x40] sm:$0xf]  ;;  %4400 = vmatpush.bf16.msrb.mxu3 %v6437_v1  ;;  %v6804_v0 = vld [vmem:[%s9040_s23 + $0x14c] sm:$0xf0]  ;;  %v6421_v36 = vor.u32 %v6872_v4, %v6420_v38  ;;  %v6214_v49 = vld [vmem:[%s9040_s23 + $0x1d0] sm:$0xf0] }
 0x7d1   : > { %v6148_v29 = vld [vmem:[%s9040_s23 + $0x140] sm:$0xf]  ;;  %v6836_v16 = vld [vmem:[%s9040_s23 + $0x24c] sm:$0xf0]  ;;  %4362 = vmatpush.bf16.msrb.mxu0 %v6037_v7  ;;  %4375 = vmatpush.bf16.msrb.mxu1 %v6165_v12  ;;  %v6021_v13 = vor.u32 %v6772_v10, %v6020_v9  ;;  %v6850_v61 = vld [vmem:[%s9040_s23 + $0x2c4] sm:$0xf]  ;;  %v6217_v37 = vor.u32 %v6818_v28, %v6214_v49 }
 0x7d2   : > { %v6276_v50 = vld [vmem:[%s9040_s23 + $0x240] sm:$0xf]  ;;  %v6868_v11 = vld [vmem:[%s9040_s23 + $0x34c] sm:$0xf0]  ;;  %v6149_v14 = vor.u32 %v6804_v0, %v6148_v29  ;;  %v6342_v54 = vld [vmem:[%s9040_s23 + $0x2d0] sm:$0xf0] }
 0x7d3   : > { %v6404_v56 = vld [vmem:[%s9040_s23 + $0x340] sm:$0xf]  ;;  %v6768_v47 = vld [vmem:[%s9040_s23 + $0x2c] sm:$0xf0]  ;;  %4388 = vmatpush.bf16.msrb.mxu2 %v6293_v2  ;;  %v6277_v5 = vor.u32 %v6836_v16, %v6276_v50  ;;  %v6882_v62 = vld [vmem:[%s9040_s23 + $0x3c4] sm:$0xf]  ;;  %v6345_v9 = vor.u32 %v6850_v61, %v6342_v54 }
 0x7d4   : > { %v6004_v15 = vld [vmem:[%s9040_s23 + $0x20] sm:$0xf]  ;;  %4401 = vmatpush.bf16.msrb.mxu3 %v6421_v36  ;;  %v6800_v55 = vld [vmem:[%s9040_s23 + $0x12c] sm:$0xf0]  ;;  %v6405_v17 = vor.u32 %v6868_v11, %v6404_v56  ;;  %v6470_v1 = vld [vmem:[%s9040_s23 + $0x3d0] sm:$0xf0] }
 0x7d5   : > { %v6132_v48 = vld [vmem:[%s9040_s23 + $0x120] sm:$0xf]  ;;  %v6832_v19 = vld [vmem:[%s9040_s23 + $0x22c] sm:$0xf0]  ;;  %4363 = vmatpush.bf16.msrb.mxu0 %v6021_v13  ;;  %4376 = vmatpush.bf16.msrb.mxu1 %v6149_v14  ;;  %v6005_v25 = vor.u32 %v6768_v47, %v6004_v15  ;;  %v6782_v38 = vld [vmem:[%s9040_s23 + $0xa4] sm:$0xf]  ;;  %v6473_v10 = vor.u32 %v6882_v62, %v6470_v1 }
 0x7d6   : > { %v6260_v18 = vld [vmem:[%s9040_s23 + $0x220] sm:$0xf]  ;;  %v6864_v32 = vld [vmem:[%s9040_s23 + $0x32c] sm:$0xf0]  ;;  %v6133_v30 = vor.u32 %v6800_v55, %v6132_v48  ;;  %v6070_v4 = vld [vmem:[%s9040_s23 + $0xb0] sm:$0xf0] }
 0x7d7   : > { %v6388_v20 = vld [vmem:[%s9040_s23 + $0x320] sm:$0xf]  ;;  %v6764_v31 = vld [vmem:[%s9040_s23 + $0xc] sm:$0xf0]  ;;  %4389 = vmatpush.bf16.msrb.mxu2 %v6277_v5  ;;  %v6261_v51 = vor.u32 %v6832_v19, %v6260_v18  ;;  %v6814_v7 = vld [vmem:[%s9040_s23 + $0x1a4] sm:$0xf]  ;;  %v6073_v50 = vor.u32 %v6782_v38, %v6070_v4 }
 0x7d8   : > { %v5988_v21 = vld [vmem:[%s9040_s23] sm:$0xf]  ;;  %v6796_v34 = vld [vmem:[%s9040_s23 + $0x10c] sm:$0xf0]  ;;  %4402 = vmatpush.bf16.msrb.mxu3 %v6405_v17  ;;  %v6389_v42 = vor.u32 %v6864_v32, %v6388_v20  ;;  %v6198_v12 = vld [vmem:[%s9040_s23 + $0x1b0] sm:$0xf0] }
 0x7d9   : > { %v6116_v33 = vld [vmem:[%s9040_s23 + $0x100] sm:$0xf]  ;;  %v6828_v58 = vld [vmem:[%s9040_s23 + $0x20c] sm:$0xf0]  ;;  %4364 = vmatpush.bf16.msrb.mxu0 %v6005_v25  ;;  %4377 = vmatpush.bf16.msrb.mxu1 %v6133_v30  ;;  %v5989_v46 = vor.u32 %v6764_v31, %v5988_v21  ;;  %v6846_v29 = vld [vmem:[%s9040_s23 + $0x2a4] sm:$0xf]  ;;  %v6201_v16 = vor.u32 %v6814_v7, %v6198_v12 }
 0x7da   : > { %v6244_v22 = vld [vmem:[%s9040_s23 + $0x200] sm:$0xf]  ;;  %v6860_v44 = vld [vmem:[%s9040_s23 + $0x30c] sm:$0xf0]  ;;  %v6117_v23 = vor.u32 %v6796_v34, %v6116_v33  ;;  %v6326_v0 = vld [vmem:[%s9040_s23 + $0x2b0] sm:$0xf0] }
 0x7db   : > { %v6372_v57 = vld [vmem:[%s9040_s23 + $0x300] sm:$0xf]  ;;  %4390 = vmatpush.bf16.msrb.mxu2 %v6261_v51  ;;  %v6245_v27 = vor.u32 %v6828_v58, %v6244_v22  ;;  %v6878_v2 = vld [vmem:[%s9040_s23 + $0x3a4] sm:$0xf]  ;;  %v6454_v36 = vld [vmem:[%s9040_s23 + $0x3b0] sm:$0xf0]  ;;  %v6329_v15 = vor.u32 %v6846_v29, %v6326_v0 }
 0x7dc   : > { %4403 = vmatpush.bf16.msrb.mxu3 %v6389_v42  ;;  %v6373_v8 = vor.u32 %v6860_v44, %v6372_v57  ;;  %v6778_v56 = vld [vmem:[%s9040_s23 + $0x84] sm:$0xf]  ;;  %v6054_v11 = vld [vmem:[%s9040_s23 + $0x90] sm:$0xf0]  ;;  %v6457_v47 = vor.u32 %v6878_v2, %v6454_v36 }
 0x7dd   : > { %4365 = vmatpush.bf16.msrb.mxu0 %v5989_v46  ;;  %4378 = vmatpush.bf16.msrb.mxu1 %v6117_v23  ;;  %v6810_v13 = vld [vmem:[%s9040_s23 + $0x184] sm:$0xf]  ;;  %v6182_v14 = vld [vmem:[%s9040_s23 + $0x190] sm:$0xf0]  ;;  %v6057_v18 = vor.u32 %v6778_v56, %v6054_v11  ;;  %v6236_v56 = vld [vmem:[%s9040_s23 + $0x1e8] sm:$0xf] }
 0x7de   : > { %v6842_v48 = vld [vmem:[%s9040_s23 + $0x284] sm:$0xf]  ;;  %v6310_v55 = vld [vmem:[%s9040_s23 + $0x290] sm:$0xf0]  ;;  %v6185_v19 = vor.u32 %v6810_v13, %v6182_v14  ;;  %v6825_v11 = vld [vmem:[%s9040_s23 + $0x1f4] sm:$0xf0] }
 0x7df   : > { %4391 = vmatpush.bf16.msrb.mxu2 %v6245_v27  ;;  %v6874_v5 = vld [vmem:[%s9040_s23 + $0x384] sm:$0xf]  ;;  %v6438_v17 = vld [vmem:[%s9040_s23 + $0x390] sm:$0xf0]  ;;  %v6313_v30 = vor.u32 %v6842_v48, %v6310_v55  ;;  %v6092_v48 = vld [vmem:[%s9040_s23 + $0xc8] sm:$0xf] }
 0x7e0   : > { %4404 = vmatpush.bf16.msrb.mxu3 %v6373_v8  ;;  %v6774_v20 = vld [vmem:[%s9040_s23 + $0x64] sm:$0xf]  ;;  %v6038_v32 = vld [vmem:[%s9040_s23 + $0x70] sm:$0xf0]  ;;  %v6441_v31 = vor.u32 %v6874_v5, %v6438_v17  ;;  %v6789_v17 = vld [vmem:[%s9040_s23 + $0xd4] sm:$0xf0] }
 0x7e1   : > { %4410 = vmatpush.bf16.msra.mxu0 %v6105_v6  ;;  %4423 = vmatpush.bf16.msra.mxu1 %v6233_v26  ;;  %v6806_v21 = vld [vmem:[%s9040_s23 + $0x164] sm:$0xf]  ;;  %v6166_v25 = vld [vmem:[%s9040_s23 + $0x170] sm:$0xf0]  ;;  %v6041_v41 = vor.u32 %v6774_v20, %v6038_v32  ;;  %v6364_v20 = vld [vmem:[%s9040_s23 + $0x2e8] sm:$0xf] }
 0x7e2   : > { %v6838_v33 = vld [vmem:[%s9040_s23 + $0x264] sm:$0xf]  ;;  %v6294_v34 = vld [vmem:[%s9040_s23 + $0x270] sm:$0xf0]  ;;  %v6169_v51 = vor.u32 %v6806_v21, %v6166_v25  ;;  %v6857_v32 = vld [vmem:[%s9040_s23 + $0x2f4] sm:$0xf0]  ;;  %v6093_v25 = vor.u32 %v6789_v17, %v6092_v48 }
 0x7e3   : > { %4436 = vmatpush.bf16.msra.mxu2 %v6361_v53  ;;  %v6870_v39 = vld [vmem:[%s9040_s23 + $0x364] sm:$0xf]  ;;  %v6422_v40 = vld [vmem:[%s9040_s23 + $0x370] sm:$0xf0]  ;;  %v6297_v57 = vor.u32 %v6838_v33, %v6294_v34  ;;  %v6492_v21 = vld [vmem:[%s9040_s23 + $0x3e8] sm:$0xf] }
 0x7e4   : > { %4449 = vmatpush.bf16.msra.mxu3 %v6489_v35  ;;  %v6770_v42 = vld [vmem:[%s9040_s23 + $0x44] sm:$0xf]  ;;  %v6022_v43 = vld [vmem:[%s9040_s23 + $0x50] sm:$0xf0]  ;;  %v6425_v44 = vor.u32 %v6870_v39, %v6422_v40  ;;  %v6076_v33 = vld [vmem:[%s9040_s23 + $0xa8] sm:$0xf] }
 0x7e5   : > { %4411 = vmatpush.bf16.msra.mxu0 %v6089_v3  ;;  %4424 = vmatpush.bf16.msra.mxu1 %v6217_v37  ;;  %v6802_v22 = vld [vmem:[%s9040_s23 + $0x144] sm:$0xf]  ;;  %v6150_v58 = vld [vmem:[%s9040_s23 + $0x150] sm:$0xf0]  ;;  %v6025_v45 = vor.u32 %v6770_v42, %v6022_v43  ;;  %v6785_v34 = vld [vmem:[%s9040_s23 + $0xb4] sm:$0xf0]  ;;  %v6365_v42 = vor.u32 %v6857_v32, %v6364_v20 }
 0x7e6   : > { %v6153_v46 = vor.u32 %v6802_v22, %v6150_v58  ;;  %v6766_v23 = vld [vmem:[%s9040_s23 + $0x24] sm:$0xf]  ;;  %v6006_v52 = vld [vmem:[%s9040_s23 + $0x30] sm:$0xf0]  ;;  %v6204_v39 = vld [vmem:[%s9040_s23 + $0x1a8] sm:$0xf]  ;;  %v6077_v22 = vor.u32 %v6785_v34, %v6076_v33 }
 0x7e7   : > { %4437 = vmatpush.bf16.msra.mxu2 %v6345_v9  ;;  %v6798_v63 = vld [vmem:[%s9040_s23 + $0x124] sm:$0xf]  ;;  %v6134_v24 = vld [vmem:[%s9040_s23 + $0x130] sm:$0xf0]  ;;  %v6009_v6 = vor.u32 %v6766_v23, %v6006_v52  ;;  %v6817_v40 = vld [vmem:[%s9040_s23 + $0x1b4] sm:$0xf0] }
 0x7e8   : > { %4450 = vmatpush.bf16.msra.mxu3 %v6473_v10  ;;  %v6137_v26 = vor.u32 %v6798_v63, %v6134_v24  ;;  %v6834_v59 = vld [vmem:[%s9040_s23 + $0x244] sm:$0xf]  ;;  %v6278_v60 = vld [vmem:[%s9040_s23 + $0x250] sm:$0xf0]  ;;  %v6348_v58 = vld [vmem:[%s9040_s23 + $0x2c8] sm:$0xf] }
 0x7e9   : > { %4412 = vmatpush.bf16.msra.mxu0 %v6073_v50  ;;  %4425 = vmatpush.bf16.msra.mxu1 %v6201_v16  ;;  %v6866_v28 = vld [vmem:[%s9040_s23 + $0x344] sm:$0xf]  ;;  %v6281_v49 = vor.u32 %v6834_v59, %v6278_v60  ;;  %v6406_v27 = vld [vmem:[%s9040_s23 + $0x350] sm:$0xf0]  ;;  %v6108_v50 = vld [vmem:[%s9040_s23 + $0xe8] sm:$0xf] }
 0x7ea   : > { %v6409_v8 = vor.u32 %v6866_v28, %v6406_v27  ;;  %v6762_v53 = vld [vmem:[%s9040_s23 + $0x4] sm:$0xf]  ;;  %v5990_v35 = vld [vmem:[%s9040_s23 + $0x10] sm:$0xf0]  ;;  %v6793_v16 = vld [vmem:[%s9040_s23 + $0xf4] sm:$0xf0] }
 0x7eb   : > { %4438 = vmatpush.bf16.msra.mxu2 %v6329_v15  ;;  %v6794_v61 = vld [vmem:[%s9040_s23 + $0x104] sm:$0xf]  ;;  %v5993_v54 = vor.u32 %v6762_v53, %v5990_v35  ;;  %v6118_v62 = vld [vmem:[%s9040_s23 + $0x110] sm:$0xf0]  ;;  %v6109_v15 = vor.u32 %v6793_v16, %v6108_v50  ;;  %v6476_v23 = vld [vmem:[%s9040_s23 + $0x3c8] sm:$0xf] }
 0x7ec   : > { %4451 = vmatpush.bf16.msra.mxu3 %v6457_v47  ;;  %v6121_v1 = vor.u32 %v6794_v61, %v6118_v62  ;;  %v6830_v3 = vld [vmem:[%s9040_s23 + $0x224] sm:$0xf]  ;;  %v6262_v37 = vld [vmem:[%s9040_s23 + $0x230] sm:$0xf0]  ;;  %v6237_v47 = vor.u32 %v6825_v11, %v6236_v56  ;;  %v6885_v52 = vld [vmem:[%s9040_s23 + $0x3d4] sm:$0xf0] }
 0x7ed   : > { %4413 = vmatpush.bf16.msra.mxu0 %v6057_v18  ;;  %4426 = vmatpush.bf16.msra.mxu1 %v6185_v19  ;;  %v6862_v38 = vld [vmem:[%s9040_s23 + $0x324] sm:$0xf]  ;;  %v6390_v4 = vld [vmem:[%s9040_s23 + $0x330] sm:$0xf0]  ;;  %v6265_v7 = vor.u32 %v6830_v3, %v6262_v37  ;;  %v6220_v18 = vld [vmem:[%s9040_s23 + $0x1c8] sm:$0xf]  ;;  %v6477_v60 = vor.u32 %v6885_v52, %v6476_v23 }
 0x7ee   : > { %v6393_v12 = vor.u32 %v6862_v38, %v6390_v4  ;;  %v6826_v9 = vld [vmem:[%s9040_s23 + $0x204] sm:$0xf]  ;;  %v6246_v10 = vld [vmem:[%s9040_s23 + $0x210] sm:$0xf0]  ;;  %v6821_v19 = vld [vmem:[%s9040_s23 + $0x1d4] sm:$0xf0] }
 0x7ef   : > { %4439 = vmatpush.bf16.msra.mxu2 %v6313_v30  ;;  %v6249_v29 = vor.u32 %v6826_v9, %v6246_v10  ;;  %v6858_v0 = vld [vmem:[%s9040_s23 + $0x304] sm:$0xf]  ;;  %v6374_v2 = vld [vmem:[%s9040_s23 + $0x310] sm:$0xf0]  ;;  %v6221_v30 = vor.u32 %v6821_v19, %v6220_v18  ;;  %v6060_v63 = vld [vmem:[%s9040_s23 + $0x88] sm:$0xf] }
 0x7f0   : > { %4452 = vmatpush.bf16.msra.mxu3 %v6441_v31  ;;  %v6377_v36 = vor.u32 %v6858_v0, %v6374_v2  ;;  %v6889_v31 = vld [vmem:[%s9040_s23 + $0x3f4] sm:$0xf0]  ;;  %v6332_v28 = vld [vmem:[%s9040_s23 + $0x2a8] sm:$0xf] }
 0x7f1   : > { %4414 = vmatpush.bf16.msra.mxu0 %v6041_v41  ;;  %4427 = vmatpush.bf16.msra.mxu1 %v6169_v51  ;;  %v6493_v43 = vor.u32 %v6889_v31, %v6492_v21  ;;  %v6781_v24 = vld [vmem:[%s9040_s23 + $0x94] sm:$0xf0]  ;;  %v6460_v53 = vld [vmem:[%s9040_s23 + $0x3a8] sm:$0xf] }
 0x7f2   : > { %v6881_v35 = vld [vmem:[%s9040_s23 + $0x3b4] sm:$0xf0]  ;;  %v6044_v61 = vld [vmem:[%s9040_s23 + $0x68] sm:$0xf] }
 0x7f3   : > { %4440 = vmatpush.bf16.msra.mxu2 %v6297_v57  ;;  %v6853_v57 = vld [vmem:[%s9040_s23 + $0x2d4] sm:$0xf0]  ;;  %v6172_v62 = vld [vmem:[%s9040_s23 + $0x168] sm:$0xf]  ;;  %v6461_v37 = vor.u32 %v6881_v35, %v6460_v53  ;;  %v6222_v35 = vld [vmem:[%s9040_s23 + $0x1d8] sm:$0xf0] }
 0x7f4   : > { %4453 = vmatpush.bf16.msra.mxu3 %v6425_v44  ;;  %v6349_v59 = vor.u32 %v6853_v57, %v6348_v58  ;;  %v6316_v38 = vld [vmem:[%s9040_s23 + $0x288] sm:$0xf]  ;;  %v6845_v4 = vld [vmem:[%s9040_s23 + $0x294] sm:$0xf0]  ;;  %v6823_v57 = vld [vmem:[%s9040_s23 + $0x1ec] sm:$0xf] }
 0x7f5   : > { %4415 = vmatpush.bf16.msra.mxu0 %v6025_v45  ;;  %4428 = vmatpush.bf16.msra.mxu1 %v6153_v46  ;;  %v6205_v46 = vor.u32 %v6817_v40, %v6204_v39  ;;  %v6773_v0 = vld [vmem:[%s9040_s23 + $0x54] sm:$0xf0]  ;;  %v6156_v2 = vld [vmem:[%s9040_s23 + $0x148] sm:$0xf]  ;;  %v6317_v50 = vor.u32 %v6845_v4, %v6316_v38  ;;  %v6887_v38 = vld [vmem:[%s9040_s23 + $0x3ec] sm:$0xf] }
 0x7f6   : > { %v6300_v56 = vld [vmem:[%s9040_s23 + $0x268] sm:$0xf]  ;;  %v6841_v11 = vld [vmem:[%s9040_s23 + $0x274] sm:$0xf0]  ;;  %v6494_v4 = vld [vmem:[%s9040_s23 + $0x3f8] sm:$0xf0] }
 0x7f7   : > { %4441 = vmatpush.bf16.msra.mxu2 %v6281_v49  ;;  %v6061_v49 = vor.u32 %v6781_v24, %v6060_v63  ;;  %v6012_v48 = vld [vmem:[%s9040_s23 + $0x28] sm:$0xf]  ;;  %v6769_v17 = vld [vmem:[%s9040_s23 + $0x34] sm:$0xf0]  ;;  %v6301_v20 = vor.u32 %v6841_v11, %v6300_v56  ;;  %v6851_v56 = vld [vmem:[%s9040_s23 + $0x2cc] sm:$0xf] }
 0x7f8   : > { %4454 = vmatpush.bf16.msra.mxu3 %v6409_v8  ;;  %v6849_v8 = vld [vmem:[%s9040_s23 + $0x2b4] sm:$0xf0]  ;;  %v6140_v18 = vld [vmem:[%s9040_s23 + $0x128] sm:$0xf]  ;;  %v6013_v33 = vor.u32 %v6769_v17, %v6012_v48  ;;  %v6350_v11 = vld [vmem:[%s9040_s23 + $0x2d8] sm:$0xf0] }
 0x7f9   : > { %4416 = vmatpush.bf16.msra.mxu0 %v6009_v6  ;;  %4429 = vmatpush.bf16.msra.mxu1 %v6137_v26  ;;  %v6188_v6 = vld [vmem:[%s9040_s23 + $0x188] sm:$0xf]  ;;  %v6813_v26 = vld [vmem:[%s9040_s23 + $0x194] sm:$0xf0]  ;;  %v6333_v3 = vor.u32 %v6849_v8, %v6332_v28  ;;  %v6787_v28 = vld [vmem:[%s9040_s23 + $0xcc] sm:$0xf] }
 0x7fa   : > { %v6189_v27 = vor.u32 %v6813_v26, %v6188_v6  ;;  %v6801_v19 = vld [vmem:[%s9040_s23 + $0x134] sm:$0xf0]  ;;  %v6284_v21 = vld [vmem:[%s9040_s23 + $0x248] sm:$0xf]  ;;  %v6779_v48 = vld [vmem:[%s9040_s23 + $0x8c] sm:$0xf] }
 0x7fb   : > { %4442 = vmatpush.bf16.msra.mxu2 %v6265_v7  ;;  %v6444_v7 = vld [vmem:[%s9040_s23 + $0x388] sm:$0xf]  ;;  %v6869_v31 = vld [vmem:[%s9040_s23 + $0x354] sm:$0xf0]  ;;  %v6141_v34 = vor.u32 %v6801_v19, %v6140_v18  ;;  %v6062_v17 = vld [vmem:[%s9040_s23 + $0x98] sm:$0xf0] }
 0x7fc   : > { %4455 = vmatpush.bf16.msra.mxu3 %v6393_v12  ;;  %v6877_v12 = vld [vmem:[%s9040_s23 + $0x394] sm:$0xf0]  ;;  %v5996_v39 = vld [vmem:[%s9040_s23 + $0x8] sm:$0xf]  ;;  %v6811_v18 = vld [vmem:[%s9040_s23 + $0x18c] sm:$0xf] }
 0x7fd   : > { %4417 = vmatpush.bf16.msra.mxu0 %v5993_v54  ;;  %4430 = vmatpush.bf16.msra.mxu1 %v6121_v1  ;;  %v6777_v54 = vld [vmem:[%s9040_s23 + $0x74] sm:$0xf0]  ;;  %v6445_v16 = vor.u32 %v6877_v12, %v6444_v7  ;;  %v6268_v23 = vld [vmem:[%s9040_s23 + $0x228] sm:$0xf]  ;;  %v6190_v19 = vld [vmem:[%s9040_s23 + $0x198] sm:$0xf0] }
 0x7fe   : > { %v6809_v1 = vld [vmem:[%s9040_s23 + $0x174] sm:$0xf0]  ;;  %v6045_v9 = vor.u32 %v6777_v54, %v6044_v61  ;;  %v6396_v63 = vld [vmem:[%s9040_s23 + $0x328] sm:$0xf] }
 0x7ff   : > { %4443 = vmatpush.bf16.msra.mxu2 %v6249_v29  ;;  %v6173_v10 = vor.u32 %v6809_v1, %v6172_v62  ;;  %v6028_v29 = vld [vmem:[%s9040_s23 + $0x48] sm:$0xf]  ;;  %v6765_v40 = vld [vmem:[%s9040_s23 + $0x14] sm:$0xf0] }
 0x800   : > { %4456 = vmatpush.bf16.msra.mxu3 %v6377_v36  ;;  %v6805_v36 = vld [vmem:[%s9040_s23 + $0x154] sm:$0xf0]  ;;  %v5997_v6 = vor.u32 %v6765_v40, %v5996_v39  ;;  %v6252_v61 = vld [vmem:[%s9040_s23 + $0x208] sm:$0xf]  ;;  %v6775_v39 = vld [vmem:[%s9040_s23 + $0x6c] sm:$0xf] }
 0x801   : > { %v6833_v52 = vld [vmem:[%s9040_s23 + $0x234] sm:$0xf0]  ;;  %v6380_v62 = vld [vmem:[%s9040_s23 + $0x308] sm:$0xf]  ;;  %v6046_v40 = vld [vmem:[%s9040_s23 + $0x78] sm:$0xf0] }
 0x802   : > { %v6865_v24 = vld [vmem:[%s9040_s23 + $0x334] sm:$0xf0]  ;;  %v6269_v8 = vor.u32 %v6833_v52, %v6268_v23  ;;  %v6049_v23 = vor.u32 %v6775_v39, %v6046_v40  ;;  %v4575_v39 = vld [vmem:[%s9041_s30 + $0x48] sm:$0xff] }
 0x803   : > { %v6397_v53 = vor.u32 %v6865_v24, %v6396_v63  ;;  %v6829_v54 = vld [vmem:[%s9040_s23 + $0x214] sm:$0xf0]  ;;  %v6771_v63 = vld [vmem:[%s9040_s23 + $0x4c] sm:$0xf]  ;;  %v6030_v24 = vld [vmem:[%s9040_s23 + $0x58] sm:$0xf0] }
 0x804   : > { %v6861_v1 = vld [vmem:[%s9040_s23 + $0x314] sm:$0xf0] }
 0x805   : > { %v4597_v40 = vld [vmem:[%s9041_s30 + $0xf8] sm:$0xff] }
 0x83c   : > { %v3512_v13 = vpop.f32.mrf.mxu0  ;;  %v3532_v14 = vpop.f32.mrf.mxu1 }
 0x83d   : > { %v8368_v55 = vpack.c.bf16 %v3512_v13, %v3512_v13  ;;  %v8370_v5 = vpack.c.bf16 %v3532_v14, %v3532_v14  ;;  %v6428_v13 = vld [vmem:[%s9040_s23 + $0x368] sm:$0xf]  ;;  %v6873_v14 = vld [vmem:[%s9040_s23 + $0x374] sm:$0xf0] }
 0x83e   : > { %v6429_v32 = vor.u32 %v6873_v14, %v6428_v13  ;;  %v6883_v13 = vld [vmem:[%s9040_s23 + $0x3cc] sm:$0xf]  ;;  %v6478_v14 = vld [vmem:[%s9040_s23 + $0x3d8] sm:$0xf0] }
 0x83f   : > { %4366 = vmatmul.bf16.vlgmr.msrb.gmra.mxu0 %v8368_v55  ;;  %4379 = vmatmul.bf16.vlgmr.msrb.gmra.mxu1 %v8370_v5 }
 0x840   : > { %4462 = vmatpush.bf16.msrb.mxu0 %v6109_v15  ;;  %4475 = vmatpush.bf16.msrb.mxu1 %v6237_v47  ;;  %v6029_v15 = vor.u32 %v6773_v0, %v6028_v29  ;;  %v6157_v47 = vor.u32 %v6805_v36, %v6156_v2  ;;  %v6381_v29 = vor.u32 %v6861_v1, %v6380_v62  ;;  %v6078_v0 = vld [vmem:[%s9040_s23 + $0xb8] sm:$0xf0]  ;;  %v6815_v2 = vld [vmem:[%s9040_s23 + $0x1ac] sm:$0xf] }
 0x841   : > { %v6206_v36 = vld [vmem:[%s9040_s23 + $0x1b8] sm:$0xf0]  ;;  %v6799_v62 = vld [vmem:[%s9040_s23 + $0x12c] sm:$0xf] }
 0x842   : > { %v6142_v1 = vld [vmem:[%s9040_s23 + $0x138] sm:$0xf0] }
 0x843   : > { %v3552_v41 = vpop.f32.mrf.mxu2  ;;  %v3572_v51 = vpop.f32.mrf.mxu3 }
 0x844   : > { %v8413_v44 = vpack.c.bf16 %v3552_v41, %v3552_v41  ;;  %v8415_v45 = vpack.c.bf16 %v3572_v51, %v3572_v51  ;;  %4463 = vmatpush.bf16.msrb.mxu0 %v6093_v25  ;;  %4476 = vmatpush.bf16.msrb.mxu1 %v6221_v30  ;;  %v6837_v25 = vld [vmem:[%s9040_s23 + $0x254] sm:$0xf0]  ;;  %v6412_v30 = vld [vmem:[%s9040_s23 + $0x348] sm:$0xf] }
 0x845   : > { %v6124_v41 = vld [vmem:[%s9040_s23 + $0x108] sm:$0xf]  ;;  %v6797_v51 = vld [vmem:[%s9040_s23 + $0x114] sm:$0xf0]  ;;  %v6413_v58 = vor.u32 %v6869_v31, %v6412_v30  ;;  %v6879_v30 = vld [vmem:[%s9040_s23 + $0x3ac] sm:$0xf] }
 0x846   : > { %4392 = vmatmul.bf16.vlgmr.msrb.gmra.mxu2 %v8413_v44  ;;  %4405 = vmatmul.bf16.vlgmr.msrb.gmra.mxu3 %v8415_v45  ;;  %v6125_v26 = vor.u32 %v6797_v51, %v6124_v41  ;;  %v6462_v31 = vld [vmem:[%s9040_s23 + $0x3b8] sm:$0xf0]  ;;  %v6807_v41 = vld [vmem:[%s9040_s23 + $0x16c] sm:$0xf] }
 0x847   : > { %4488 = vmatpush.bf16.msrb.mxu2 %v6365_v42  ;;  %4501 = vmatpush.bf16.msrb.mxu3 %v6493_v43  ;;  %v6791_v42 = vld [vmem:[%s9040_s23 + $0xec] sm:$0xf]  ;;  %v6110_v43 = vld [vmem:[%s9040_s23 + $0xf8] sm:$0xf0] }
 0x848   : > { %4464 = vmatpush.bf16.msrb.mxu0 %v6077_v22  ;;  %4477 = vmatpush.bf16.msrb.mxu1 %v6205_v46  ;;  %v6285_v22 = vor.u32 %v6837_v25, %v6284_v21  ;;  %v6238_v46 = vld [vmem:[%s9040_s23 + $0x1f8] sm:$0xf0]  ;;  %v6847_v21 = vld [vmem:[%s9040_s23 + $0x2ac] sm:$0xf] }
 0x849   : > { %v6334_v25 = vld [vmem:[%s9040_s23 + $0x2b8] sm:$0xf0] }
 0x84a   : > { %v6174_v51 = vld [vmem:[%s9040_s23 + $0x178] sm:$0xf0] }
 0x84b   : > { %4489 = vmatpush.bf16.msrb.mxu2 %v6349_v59  ;;  %4502 = vmatpush.bf16.msrb.mxu3 %v6477_v60  ;;  %v6113_v59 = vor.u32 %v6791_v42, %v6110_v43  ;;  %v6241_v60 = vor.u32 %v6823_v57, %v6238_v46  ;;  %v6337_v42 = vor.u32 %v6847_v21, %v6334_v25  ;;  %v6875_v57 = vld [vmem:[%s9040_s23 + $0x38c] sm:$0xf]  ;;  %v6446_v46 = vld [vmem:[%s9040_s23 + $0x398] sm:$0xf0]  ;;  %v4580_v25 = vld [vmem:[%s9041_s30 + $0x70] sm:$0xff] }
 0x84c   : > { %4465 = vmatpush.bf16.msrb.mxu0 %v6061_v49  ;;  %4478 = vmatpush.bf16.msrb.mxu1 %v6189_v27  ;;  %v6094_v49 = vld [vmem:[%s9040_s23 + $0xd8] sm:$0xf0]  ;;  %v6819_v27 = vld [vmem:[%s9040_s23 + $0x1cc] sm:$0xf]  ;;  %v6465_v43 = vor.u32 %v6879_v30, %v6462_v31  ;;  %v6177_v52 = vor.u32 %v6807_v41, %v6174_v51  ;;  %v4572_v41 = vld [vmem:[%s9041_s30 + $0x30] sm:$0xff] }
 0x84d   : > { %v6097_v7 = vor.u32 %v6787_v28, %v6094_v49  ;;  %v6225_v12 = vor.u32 %v6819_v27, %v6222_v35  ;;  %v6839_v28 = vld [vmem:[%s9040_s23 + $0x26c] sm:$0xf]  ;;  %v6302_v49 = vld [vmem:[%s9040_s23 + $0x278] sm:$0xf0]  ;;  %v4596_v51 = vld [vmem:[%s9041_s30 + $0xf0] sm:$0xff] }
 0x84e   : > { %v6871_v27 = vld [vmem:[%s9040_s23 + $0x36c] sm:$0xf]  ;;  %v6382_v21 = vld [vmem:[%s9040_s23 + $0x318] sm:$0xf0] }
 0x84f   : > { %4490 = vmatpush.bf16.msrb.mxu2 %v6333_v3  ;;  %4503 = vmatpush.bf16.msrb.mxu3 %v6461_v37  ;;  %v6855_v3 = vld [vmem:[%s9040_s23 + $0x2ec] sm:$0xf]  ;;  %v6366_v37 = vld [vmem:[%s9040_s23 + $0x2f8] sm:$0xf0] }
 0x850   : > { %4418 = vmatmul.bf16.vlgmr.msra.gmra.mxu0 %v8368_v55  ;;  %4431 = vmatmul.bf16.vlgmr.msra.gmra.mxu1 %v8370_v5 }
 0x851   : > { %4466 = vmatpush.bf16.msrb.mxu0 %v6045_v9  ;;  %4479 = vmatpush.bf16.msrb.mxu1 %v6173_v10  ;;  %v6783_v9 = vld [vmem:[%s9040_s23 + $0xac] sm:$0xf]  ;;  %v6253_v10 = vor.u32 %v6829_v54, %v6252_v61  ;;  %v6014_v54 = vld [vmem:[%s9040_s23 + $0x38] sm:$0xf0] }
 0x852   : > { %v6767_v61 = vld [vmem:[%s9040_s23 + $0x2c] sm:$0xf] }
 0x853   : > { %4491 = vmatpush.bf16.msrb.mxu2 %v6317_v50  ;;  %4504 = vmatpush.bf16.msrb.mxu3 %v6445_v16  ;;  %v6369_v50 = vor.u32 %v6855_v3, %v6366_v37  ;;  %v6497_v16 = vor.u32 %v6887_v38, %v6494_v4  ;;  %v6305_v3 = vor.u32 %v6839_v28, %v6302_v49  ;;  %v6835_v38 = vld [vmem:[%s9040_s23 + $0x24c] sm:$0xf]  ;;  %v6286_v4 = vld [vmem:[%s9040_s23 + $0x258] sm:$0xf0]  ;;  %v4588_v28 = vld [vmem:[%s9041_s30 + $0xb0] sm:$0xff] }
 0x854   : > { %v4612_v49 = vld [vmem:[%s9041_s30 + $0x170] sm:$0xff] }
 0x855   : > { %4467 = vmatpush.bf16.msrb.mxu0 %v6029_v15  ;;  %4480 = vmatpush.bf16.msrb.mxu1 %v6157_v47  ;;  %v6081_v15 = vor.u32 %v6783_v9, %v6078_v0  ;;  %v6209_v47 = vor.u32 %v6815_v2, %v6206_v36  ;;  %v6017_v9 = vor.u32 %v6767_v61, %v6014_v54  ;;  %v5998_v0 = vld [vmem:[%s9040_s23 + $0x18] sm:$0xf0]  ;;  %v6795_v2 = vld [vmem:[%s9040_s23 + $0x10c] sm:$0xf] }
 0x856   : > { %4444 = vmatmul.bf16.vlgmr.msra.gmra.mxu2 %v8413_v44  ;;  %4457 = vmatmul.bf16.vlgmr.msra.gmra.mxu3 %v8415_v45  ;;  %v6126_v36 = vld [vmem:[%s9040_s23 + $0x118] sm:$0xf0] }
 0x857   : > { %4492 = vmatpush.bf16.msrb.mxu2 %v6301_v20  ;;  %4505 = vmatpush.bf16.msrb.mxu3 %v6429_v32  ;;  %v6353_v20 = vor.u32 %v6851_v56, %v6350_v11  ;;  %v6481_v32 = vor.u32 %v6883_v13, %v6478_v14  ;;  %v6831_v56 = vld [vmem:[%s9040_s23 + $0x22c] sm:$0xf]  ;;  %v6270_v11 = vld [vmem:[%s9040_s23 + $0x238] sm:$0xf0] }
 0x858   : > { %v6863_v13 = vld [vmem:[%s9040_s23 + $0x32c] sm:$0xf]  ;;  %v6398_v14 = vld [vmem:[%s9040_s23 + $0x338] sm:$0xf0] }
 0x859   : > { %4468 = vmatpush.bf16.msrb.mxu0 %v6013_v33  ;;  %4481 = vmatpush.bf16.msrb.mxu1 %v6141_v34  ;;  %v6065_v33 = vor.u32 %v6779_v48, %v6062_v17  ;;  %v6193_v34 = vor.u32 %v6811_v18, %v6190_v19  ;;  %v6273_v48 = vor.u32 %v6831_v56, %v6270_v11  ;;  %v6827_v18 = vld [vmem:[%s9040_s23 + $0x20c] sm:$0xf]  ;;  %v4581_v19 = vld [vmem:[%s9041_s30 + $0x78] sm:$0xff]  ;;  %v4602_v11 = vld [vmem:[%s9041_s30 + $0x120] sm:$0xff] }
 0x85a   : > { %v6401_v17 = vor.u32 %v6863_v13, %v6398_v14  ;;  %v4585_v61 = vld [vmem:[%s9041_s30 + $0x98] sm:$0xff] }
 0x85b   : > { %4493 = vmatpush.bf16.msrb.mxu2 %v6285_v22  ;;  %4506 = vmatpush.bf16.msrb.mxu3 %v6413_v58  ;;  %v6843_v22 = vld [vmem:[%s9040_s23 + $0x28c] sm:$0xf]  ;;  %v6318_v58 = vld [vmem:[%s9040_s23 + $0x298] sm:$0xf0] }
 0x85c   : > { %v4609_v54 = vld [vmem:[%s9041_s30 + $0x158] sm:$0xff] }
 0x85d   : > { %4469 = vmatpush.bf16.msrb.mxu0 %v5997_v6  ;;  %4482 = vmatpush.bf16.msrb.mxu1 %v6125_v26  ;;  %v6803_v6 = vld [vmem:[%s9040_s23 + $0x14c] sm:$0xf]  ;;  %v6158_v26 = vld [vmem:[%s9040_s23 + $0x158] sm:$0xf0] }
 0x85e   : > { %v6161_v35 = vor.u32 %v6803_v6, %v6158_v26  ;;  %v4566_v6 = vld [vmem:[%s9041_s30] sm:$0xff]  ;;  %v4601_v13 = vld [vmem:[%s9041_s30 + $0x118] sm:$0xff] }
 0x85f   : > { %4494 = vmatpush.bf16.msrb.mxu2 %v6269_v8  ;;  %4507 = vmatpush.bf16.msrb.mxu3 %v6397_v53  ;;  %v6430_v8 = vld [vmem:[%s9040_s23 + $0x378] sm:$0xf0]  ;;  %v6033_v53 = vor.u32 %v6771_v63, %v6030_v24  ;;  %v4567_v63 = vld [vmem:[%s9041_s30 + $0x8] sm:$0xff]  ;;  %v4590_v26 = vld [vmem:[%s9041_s30 + $0xc0] sm:$0xff] }
 0x860   : > { %4470 = vmatmul.bf16.vlgmr.msrb.gmra.mxu0 %v8368_v55  ;;  %4483 = vmatmul.bf16.vlgmr.msrb.gmra.mxu1 %v8370_v5  ;;  %v6433_v37 = vor.u32 %v6871_v27, %v6430_v8  ;;  %v4591_v24 = vld [vmem:[%s9041_s30 + $0xc8] sm:$0xff] }
 0x861   : > { %4514 = vmatpush.bf16.msra.mxu0 %v6113_v59  ;;  %4527 = vmatpush.bf16.msra.mxu1 %v6241_v60  ;;  %v6321_v59 = vor.u32 %v6843_v22, %v6318_v58  ;;  %v6449_v60 = vor.u32 %v6875_v57, %v6446_v46  ;;  %v4570_v22 = vld [vmem:[%s9041_s30 + $0x20] sm:$0xff]  ;;  %v4569_v57 = vld [vmem:[%s9041_s30 + $0x18] sm:$0xff]  ;;  %v4587_v27 = vld [vmem:[%s9041_s30 + $0xa8] sm:$0xff] }
 0x862   : > { %v4594_v58 = vld [vmem:[%s9041_s30 + $0xe0] sm:$0xff]  ;;  %v4593_v46 = vld [vmem:[%s9041_s30 + $0xd8] sm:$0xff]  ;;  %v4611_v8 = vld [vmem:[%s9041_s30 + $0x168] sm:$0xff] }
 0x863   : > { %4495 = vmatpush.bf16.msrb.mxu2 %v6253_v10  ;;  %4508 = vmatpush.bf16.msrb.mxu3 %v6381_v29  ;;  %v6145_v10 = vor.u32 %v6799_v62, %v6142_v1  ;;  %v6763_v29 = vld [vmem:[%s9040_s23 + $0xc] sm:$0xf]  ;;  %v3707_v62 = vld [vmem:[%s9042_s26] sm:$0xf]  ;;  %v4584_v1 = vld [vmem:[%s9041_s30 + $0x90] sm:$0xff]  ;;  %s9044_s26 = sld [smem:[#allocation18_spill]] }
 0x865   : > { %4515 = vmatpush.bf16.msra.mxu0 %v6097_v7  ;;  %4528 = vmatpush.bf16.msra.mxu1 %v6225_v12  ;;  %v6867_v7 = vld [vmem:[%s9040_s23 + $0x34c] sm:$0xf]  ;;  %v6414_v12 = vld [vmem:[%s9040_s23 + $0x358] sm:$0xf0] }
 0x866   : > { %4496 = vmatmul.bf16.vlgmr.msrb.gmra.mxu2 %v8413_v44  ;;  %4509 = vmatmul.bf16.vlgmr.msrb.gmra.mxu3 %v8415_v45 }
 0x867   : > { %4540 = vmatpush.bf16.msra.mxu2 %v6369_v50  ;;  %4553 = vmatpush.bf16.msra.mxu3 %v6497_v16  ;;  %v6289_v50 = vor.u32 %v6835_v38, %v6286_v4  ;;  %v6417_v16 = vor.u32 %v6867_v7, %v6414_v12  ;;  %v4583_v38 = vld [vmem:[%s9041_s30 + $0x88] sm:$0xff] }
 0x868   : > { %v4607_v4 = vld [vmem:[%s9041_s30 + $0x148] sm:$0xff] }
 0x869   : > { %4516 = vmatpush.bf16.msra.mxu0 %v6081_v15  ;;  %4529 = vmatpush.bf16.msra.mxu1 %v6209_v47  ;;  %v6001_v15 = vor.u32 %v6763_v29, %v5998_v0  ;;  %v6129_v47 = vor.u32 %v6795_v2, %v6126_v36  ;;  %v4605_v0 = vld [vmem:[%s9041_s30 + $0x138] sm:$0xff]  ;;  %v4604_v2 = vld [vmem:[%s9041_s30 + $0x130] sm:$0xff]  ;;  %v4603_v36 = vld [vmem:[%s9041_s30 + $0x128] sm:$0xff] }
 0x86b   : > { %4541 = vmatpush.bf16.msra.mxu2 %v6353_v20  ;;  %4554 = vmatpush.bf16.msra.mxu3 %v6481_v32  ;;  %v6254_v20 = vld [vmem:[%s9040_s23 + $0x218] sm:$0xf0]  ;;  %v6859_v32 = vld [vmem:[%s9040_s23 + $0x30c] sm:$0xf] }
 0x86c   : > { %v6257_v30 = vor.u32 %v6827_v18, %v6254_v20  ;;  %v6385_v31 = vor.u32 %v6859_v32, %v6382_v21  ;;  %v4599_v18 = vld [vmem:[%s9041_s30 + $0x108] sm:$0xff] }
 0x86d   : > { %4517 = vmatpush.bf16.msra.mxu0 %v6065_v33  ;;  %4530 = vmatpush.bf16.msra.mxu1 %v6193_v34  ;;  %v4579_v33 = vld [vmem:[%s9041_s30 + $0x68] sm:$0xff]  ;;  %v4578_v34 = vld [vmem:[%s9041_s30 + $0x60] sm:$0xff] }
 0x86f   : > { %4542 = vmatpush.bf16.msra.mxu2 %v6337_v42  ;;  %4555 = vmatpush.bf16.msra.mxu3 %v6465_v43  ;;  %v4571_v42 = vld [vmem:[%s9041_s30 + $0x28] sm:$0xff] }
 0x870   : > { %v4595_v43 = vld [vmem:[%s9041_s30 + $0xe8] sm:$0xff] }
 0x871   : > { %4518 = vmatpush.bf16.msra.mxu0 %v6049_v23  ;;  %4531 = vmatpush.bf16.msra.mxu1 %v6177_v52  ;;  %v4568_v23 = vld [vmem:[%s9041_s30 + $0x10] sm:$0xff] }
 0x872   : > { %v4592_v52 = vld [vmem:[%s9041_s30 + $0xd0] sm:$0xff] }
 0x873   : > { %4543 = vmatpush.bf16.msra.mxu2 %v6321_v59  ;;  %4556 = vmatpush.bf16.msra.mxu3 %v6449_v60  ;;  %v4589_v59 = vld [vmem:[%s9041_s30 + $0xb8] sm:$0xff] }
 0x874   : > { %v4613_v60 = vld [vmem:[%s9041_s30 + $0x178] sm:$0xff] }
 0x875   : > { %4519 = vmatpush.bf16.msra.mxu0 %v6033_v53  ;;  %4532 = vmatpush.bf16.msra.mxu1 %v6161_v35  ;;  %v4586_v53 = vld [vmem:[%s9041_s30 + $0xa0] sm:$0xff] }
 0x876   : > { %v4610_v35 = vld [vmem:[%s9041_s30 + $0x160] sm:$0xff] }
 0x877   : > { %4544 = vmatpush.bf16.msra.mxu2 %v6305_v3  ;;  %4557 = vmatpush.bf16.msra.mxu3 %v6433_v37  ;;  %v4608_v3 = vld [vmem:[%s9041_s30 + $0x150] sm:$0xff]  ;;  %v8872_v37 = vmul.f32 8.0, %v3707_v62  ;;  %v4614_v62 = vld [vmem:[%s9041_s30 + $0x180] sm:$0xff] }
 0x879   : > { %4520 = vmatpush.bf16.msra.mxu0 %v6017_v9  ;;  %4533 = vmatpush.bf16.msra.mxu1 %v6145_v10  ;;  %v4582_v9 = vld [vmem:[%s9041_s30 + $0x80] sm:$0xff]  ;;  %v3710_v29 = vperm.slane %v8872_v37, 0 }
 0x87a   : > { %v4606_v10 = vld [vmem:[%s9041_s30 + $0x140] sm:$0xff] }
 0x87b   : > { %4545 = vmatpush.bf16.msra.mxu2 %v6289_v50  ;;  %4558 = vmatpush.bf16.msra.mxu3 %v6417_v16 }
 0x87d   : > { %4521 = vmatpush.bf16.msra.mxu0 %v6001_v15  ;;  %4534 = vmatpush.bf16.msra.mxu1 %v6129_v47 }
 0x87f   : > { %4546 = vmatpush.bf16.msra.mxu2 %v6273_v48  ;;  %4559 = vmatpush.bf16.msra.mxu3 %v6401_v17  ;;  %v4600_v48 = vld [vmem:[%s9041_s30 + $0x110] sm:$0xff] }
 0x880   : > { %4522 = vmatmul.bf16.vlgmr.msra.gmra.mxu0 %v8368_v55  ;;  %4535 = vmatmul.bf16.vlgmr.msra.gmra.mxu1 %v8370_v5  ;;  %v4577_v55 = vld [vmem:[%s9041_s30 + $0x58] sm:$0xff]  ;;  %v4576_v5 = vld [vmem:[%s9041_s30 + $0x50] sm:$0xff] }
 0x881   : > { %4634 = vmatpush.msrb.mxu0 %v4581_v19  ;;  %4654 = vmatpush.msrb.mxu1 %v4597_v40  ;;  %v4629_v19 = vld [vmem:[%s9041_s30 + $0x1f8] sm:$0xff] }
 0x883   : > { %4635 = vmatpush.msrb.mxu0 %v4580_v25  ;;  %4547 = vmatpush.bf16.msra.mxu2 %v6257_v30  ;;  %v4598_v25 = vld [vmem:[%s9041_s30 + $0x100] sm:$0xff]  ;;  %v4628_v30 = vld [vmem:[%s9041_s30 + $0x1f0] sm:$0xff] }
 0x884   : > { %4560 = vmatpush.bf16.msra.mxu3 %v6385_v31  ;;  %4655 = vmatpush.msrb.mxu1 %v4596_v51  ;;  %v4627_v31 = vld [vmem:[%s9041_s30 + $0x1e8] sm:$0xff] }
 0x885   : > { %4636 = vmatpush.msrb.mxu0 %v4579_v33  ;;  %v3711_v33 = vperm.slane %v8872_v37, 1  ;;  %v4623_v51 = vld [vmem:[%s9041_s30 + $0x1c8] sm:$0xff] }
 0x886   : > { %4548 = vmatmul.bf16.vlgmr.msra.gmra.mxu2 %v8413_v44  ;;  %v4574_v44 = vld [vmem:[%s9041_s30 + $0x40] sm:$0xff]  ;;  %4656 = vmatpush.msrb.mxu1 %v4595_v43 }
 0x887   : > { %4561 = vmatmul.bf16.vlgmr.msra.gmra.mxu3 %v8415_v45  ;;  %4637 = vmatpush.msrb.mxu0 %v4578_v34  ;;  %v4573_v45 = vld [vmem:[%s9041_s30 + $0x38] sm:$0xff] }
 0x888   : > { %4657 = vmatpush.msrb.mxu1 %v4594_v58  ;;  %4674 = vmatpush.msrb.mxu2 %v4613_v60  ;;  %v4622_v58 = vld [vmem:[%s9041_s30 + $0x1c0] sm:$0xff] }
 0x889   : > { %4638 = vmatpush.msrb.mxu0 %v4577_v55  ;;  %4694 = vmatpush.msrb.mxu3 %v4629_v19 }
 0x88a   : > { %4658 = vmatpush.msrb.mxu1 %v4593_v46  ;;  %4675 = vmatpush.msrb.mxu2 %v4612_v49  ;;  %v4621_v46 = vld [vmem:[%s9041_s30 + $0x1b8] sm:$0xff] }
 0x88b   : > { %4639 = vmatpush.msrb.mxu0 %v4576_v5  ;;  %4695 = vmatpush.msrb.mxu3 %v4628_v30  ;;  %v4626_v5 = vld [vmem:[%s9041_s30 + $0x1e0] sm:$0xff]  ;;  %v4617_v49 = vld [vmem:[%s9041_s30 + $0x198] sm:$0xff] }
 0x88c   : > { %4659 = vmatpush.msrb.mxu1 %v4592_v52  ;;  %4676 = vmatpush.msrb.mxu2 %v4611_v8 }
 0x88d   : > { %4640 = vmatpush.msrb.mxu0 %v4575_v39  ;;  %4696 = vmatpush.msrb.mxu3 %v4627_v31  ;;  %v4625_v39 = vld [vmem:[%s9041_s30 + $0x1d8] sm:$0xff] }
 0x88e   : > { %4660 = vmatpush.msrb.mxu1 %v4591_v24  ;;  %4677 = vmatpush.msrb.mxu2 %v4610_v35  ;;  %v4620_v24 = vld [vmem:[%s9041_s30 + $0x1b0] sm:$0xff] }
 0x88f   : > { %4641 = vmatpush.msrb.mxu0 %v4574_v44  ;;  %4697 = vmatpush.msrb.mxu3 %v4626_v5  ;;  %v4616_v35 = vld [vmem:[%s9041_s30 + $0x190] sm:$0xff] }
 0x890   : > { %4661 = vmatpush.msrb.mxu1 %v4590_v26  ;;  %4678 = vmatpush.msrb.mxu2 %v4609_v54  ;;  %v3712_v26 = vperm.slane %v8872_v37, 2 }
 0x891   : > { %4642 = vmatpush.msrb.mxu0 %v4573_v45  ;;  %v4624_v45 = vld [vmem:[%s9041_s30 + $0x1d0] sm:$0xff]  ;;  %4698 = vmatpush.msrb.mxu3 %v4625_v39 }
 0x892   : > { %4662 = vmatpush.msrb.mxu1 %v4589_v59  ;;  %4679 = vmatpush.msrb.mxu2 %v4608_v3 }
 0x893   : > { %4643 = vmatpush.msrb.mxu0 %v4572_v41  ;;  %4699 = vmatpush.msrb.mxu3 %v4624_v45 }
 0x894   : > { %4663 = vmatpush.msrb.mxu1 %v4588_v28  ;;  %4680 = vmatpush.msrb.mxu2 %v4607_v4  ;;  %v4618_v28 = vld [vmem:[%s9041_s30 + $0x1a0] sm:$0xff] }
 0x895   : > { %4644 = vmatpush.msrb.mxu0 %v4571_v42  ;;  %4700 = vmatpush.msrb.mxu3 %v4623_v51 }
 0x896   : > { %4664 = vmatpush.msrb.mxu1 %v4587_v27  ;;  %4681 = vmatpush.msrb.mxu2 %v4606_v10 }
 0x897   : > { %4645 = vmatpush.msrb.mxu0 %v4570_v22  ;;  %4701 = vmatpush.msrb.mxu3 %v4622_v58 }
 0x898   : > { %4665 = vmatpush.msrb.mxu1 %v4586_v53  ;;  %4682 = vmatpush.msrb.mxu2 %v4605_v0 }
 0x899   : > { %4646 = vmatpush.msrb.mxu0 %v4569_v57  ;;  %4702 = vmatpush.msrb.mxu3 %v4621_v46 }
 0x89a   : > { %4666 = vmatpush.msrb.mxu1 %v4585_v61  ;;  %4683 = vmatpush.msrb.mxu2 %v4604_v2  ;;  %v4615_v61 = vld [vmem:[%s9041_s30 + $0x188] sm:$0xff] }
 0x89b   : > { %4647 = vmatpush.msrb.mxu0 %v4568_v23  ;;  %4703 = vmatpush.msrb.mxu3 %v4620_v24 }
 0x89c   : > { %4667 = vmatpush.msrb.mxu1 %v4584_v1  ;;  %4684 = vmatpush.msrb.mxu2 %v4603_v36 }
 0x89d   : > { %4648 = vmatpush.msrb.mxu0 %v4567_v63 }
 0x89e   : > { %4668 = vmatpush.msrb.mxu1 %v4583_v38  ;;  %4685 = vmatpush.msrb.mxu2 %v4602_v11 }
 0x89f   : > { %4649 = vmatpush.msrb.mxu0 %v4566_v6  ;;  %v4619_v6 = vld [vmem:[%s9041_s30 + $0x1a8] sm:$0xff] }
 0x8a0   : > { %4669 = vmatpush.msrb.mxu1 %v4582_v9  ;;  %4686 = vmatpush.msrb.mxu2 %v4601_v13 }
 0x8a1   : > { %4704 = vmatpush.msrb.mxu3 %v4619_v6 }
 0x8a2   : > { %4687 = vmatpush.msrb.mxu2 %v4600_v48  ;;  %v6946_v48 = vld [vmem:[%s9044_s26] ss:$0 sm:$0xff] }
 0x8a3   : > { %4705 = vmatpush.msrb.mxu3 %v4618_v28 }
 0x8a4   : > { %4688 = vmatpush.msrb.mxu2 %v4599_v18 }
 0x8a5   : > { %4706 = vmatpush.msrb.mxu3 %v4617_v49 }
 0x8a6   : > { %4689 = vmatpush.msrb.mxu2 %v4598_v25 }
 0x8a7   : > { %4707 = vmatpush.msrb.mxu3 %v4616_v35 }
 0x8a9   : > { %4708 = vmatpush.msrb.mxu3 %v4615_v61 }
 0x8ab   : > { %4709 = vmatpush.msrb.mxu3 %v4614_v62 }
 0x8bc   : > { %v4367_v7 = vpop.f32.mrf.mxu0  ;;  %v4380_v12 = vpop.f32.mrf.mxu1 }
 0x8bd   : > { %v4368_v50 = vadd.f32 %v4367_v7, %v3710_v29  ;;  %v3713_v29 = vperm.slane %v8872_v37, 3  ;;  %v4715_v37 = vld [vmem:[%s9043_s6] sm:$0xff] }
 0x8bf   : > { %v4381_v14 = vadd.f32 %v4380_v12, %v4368_v50 }
 0x8c4   : > { %v4369_v16 = vpop.f32.mrf.mxu0  ;;  %v4382_v56 = vpop.f32.mrf.mxu1 }
 0x8c9   : > { %v4393_v15 = vpop.f32.mrf.mxu2  ;;  %v4406_v47 = vpop.f32.mrf.mxu3 }
 0x8ca   : > { %v4394_v17 = vadd.f32 %v4393_v15, %v4381_v14 }
 0x8cc   : > { %v4407_v20 = vadd.f32 %v4406_v47, %v4394_v17  ;;  %v4716_v47 = vld [vmem:[%s9043_s6 + $0x8] sm:$0xff] }
 0x8cd   : > { %v4419_v32 = vpop.f32.mrf.mxu0  ;;  %v4432_v21 = vpop.f32.mrf.mxu1  ;;  %4738 = vmatpush.msra.mxu0 %v4716_v47 }
 0x8ce   : > { %4650 = vmatmul.f32.vlgmr.msrb.gmra.mxu0 %v4407_v20  ;;  %v4420_v44 = vadd.f32 %v4419_v32, %v3711_v33  ;;  %v6947_v33 = vld [vmem:[%s9045_s20] ss:$0 sm:$0xff] }
 0x8cf   : > { %4739 = vmatpush.msra.mxu0 %v4715_v37 }
 0x8d0   : > { %v4433_v42 = vadd.f32 %v4432_v21, %v4420_v44 }
 0x8d1   : > { %v4395_v34 = vpop.f32.mrf.mxu2  ;;  %v4408_v55 = vpop.f32.mrf.mxu3 }
 0x8d5   : > { %v4421_v40 = vpop.f32.mrf.mxu0  ;;  %v4434_v41 = vpop.f32.mrf.mxu1 }
 0x8d9   : > { %v4445_v43 = vpop.f32.mrf.mxu2  ;;  %v4458_v22 = vpop.f32.mrf.mxu3 }
 0x8da   : > { %v4446_v57 = vadd.f32 %v4445_v43, %v4433_v42 }
 0x8dc   : > { %v4459_v23 = vadd.f32 %v4458_v22, %v4446_v57 }
 0x8dd   : > { %v4471_v52 = vpop.f32.mrf.mxu0  ;;  %v4484_v63 = vpop.f32.mrf.mxu1 }
 0x8de   : > { %4670 = vmatmul.f32.vlgmr.msrb.gmra.mxu1 %v4459_v23  ;;  %v4472_v27 = vadd.f32 %v4471_v52, %v3712_v26 }
 0x8e0   : > { %v4485_v54 = vadd.f32 %v4484_v63, %v4472_v27 }
 0x8e1   : > { %v4447_v59 = vpop.f32.mrf.mxu2  ;;  %v4460_v60 = vpop.f32.mrf.mxu3 }
 0x8e5   : > { %v4473_v8 = vpop.f32.mrf.mxu0  ;;  %v4486_v53 = vpop.f32.mrf.mxu1 }
 0x8e9   : > { %v4497_v1 = vpop.f32.mrf.mxu2  ;;  %v4510_v3 = vpop.f32.mrf.mxu3 }
 0x8ea   : > { %v4498_v38 = vadd.f32 %v4497_v1, %v4485_v54 }
 0x8ec   : > { %v4511_v4 = vadd.f32 %v4510_v3, %v4498_v38 }
 0x8ee   : > { %4690 = vmatmul.f32.vlgmr.msrb.gmra.mxu2 %v4511_v4 }
 0x8f1   : > { %v4499_v7 = vpop.f32.mrf.mxu2  ;;  %v4512_v12 = vpop.f32.mrf.mxu3 }
 0x8fd   : > { %v4523_v9 = vpop.f32.mrf.mxu0  ;;  %v4536_v10 = vpop.f32.mrf.mxu1 }
 0x8fe   : > { %v4524_v0 = vadd.f32 %v4523_v9, %v3713_v29 }
 0x900   : > { %v4537_v50 = vadd.f32 %v4536_v10, %v4524_v0 }
 0x905   : > { %v4525_v2 = vpop.f32.mrf.mxu0  ;;  %v4538_v36 = vpop.f32.mrf.mxu1 }
 0x909   : > { %v4549_v16 = vpop.f32.mrf.mxu2 }
 0x90a   : > { %v4562_v56 = vpop.f32.mrf.mxu3  ;;  %v4550_v11 = vadd.f32 %v4549_v16, %v4537_v50 }
 0x90c   : > { %v4563_v13 = vadd.f32 %v4562_v56, %v4550_v11 }
 0x90e   : > { %4710 = vmatmul.f32.vlgmr.msrb.gmra.mxu3 %v4563_v13 }
 0x911   : > { %v4551_v14 = vpop.f32.mrf.mxu2 }
 0x912   : > { %v4564_v15 = vpop.f32.mrf.mxu3 }
 0x94b   : > { %v4651_v17 = vpop.f32.mrf.mxu0 }
 0x94c   : > { %v4652_v19 = vadd.f32 %v6946_v48, %v4651_v17 }
 0x95b   : > { %v4671_v18 = vpop.f32.mrf.mxu1 }
 0x95c   : > { %v4672_v32 = vadd.f32 %v4671_v18, %v4652_v19 }
 0x971   : > { %v4691_v20 = vpop.f32.mrf.mxu2 }
 0x972   : > { %v4692_v21 = vadd.f32 %v4691_v20, %v4672_v32 }
 0x991   : > { %v4711_v25 = vpop.f32.mrf.mxu3 }
 0x992   : > { %v4712_v30 = vadd.f32 %v4711_v25, %v4692_v21 }
 0x994   : > { %v4714_v31 = vmax.f32 %v4712_v30, 0.0 }
 0x996   : > { %6498 = vmatmul.msk.f32.vlgmr.msra.gmra.mxu0 %vm1788_vm1, %v4714_v31 }
 0xa13   : > { %v4741_v34 = vpop.f32.mrf.mxu0 }
 0xa14   : > { %v4742_v55 = vadd.f32 %v6947_v33, %v4741_v34 }
 0xa16   : > { %4745 = vst.msk [vmem:[#allocation3] sm:$0x3] %vm4744_vm15, %v4742_v55 }
 0xa17 PF: > { %p6896_p6 = scmp.eq.s32.totalorder %s7113_s28, 1  ;;  %s6991_s10 = smov [#allocation3]  }
 0xa18   : > { %s4752_s27 = sshll.u32 %s6991_s10, 4  ;;  %s9046_s3 = sld [smem:[#allocation21_spill]]  ;;  %s4753_s27 = int_to_ptr.vmem [resolvable:$true] %s4752_s27 }
 0xa1e   : > { %s4754_s19 = sshll.u32 %s9046_s3, 4  ;;  %s4755_s19 = int_to_ptr.hbm [resolvable:$true] %s4754_s19 }
 0xa1f   : > { %6893 = dma.vmem_to_hbm [thread:$0]  (%p6896_p6), %s4753_s27, 32, %s4755_s19, [#allocation4]  }
 0xa20   : > { %6981 = dma.done.wait (%p6896_p6), [#allocation4], 32  }
 0xa21   : > { %6983 = vsyncadd (%p6896_p6), [#allocation4], 4294967264 }
 0xa22 PF: > { %s9047_s2 = sld [smem:[#allocation6_spill]] }
 0xa28   : > { %s33_s3 = sadd.s32 1, %s9047_s2  }
 0xa29   : > { %p30_p7 = scmp.ge.s32.totalorder %s33_s3, 4  }
 0xa2b   :  { %32 = sbr.rel (!%p30_p7) target bundleno = 17 (0x11), region = 176 }
 0xa30   :  { %4768 = vsyncpa [#allocation4], 1 }
 0xa31   :  { %4770 = vsyncpa [#allocation4 + $0x1], 1 }

</bundles_post_ra>
